<compile_context>
chip_gen: v6e
topology: v6e:2x2x1
jax: 0.10.0
libtpu: 0.0.40
codegen_flags: <defaults>
</compile_context>

<pallas_src>
import functools

import jax
import jax.numpy as jnp
from jax.experimental import pallas as pl
from jax.experimental.pallas import tpu as pltpu


LANE = 128
VMEM_BUDGET = 48 << 20   # sized for v7x's 64 MiB physical VMEM (v5e/v6e have 128 MiB)


def _round_up(x, m):
    return (x + m - 1) // m * m


def _pad2(w, rows, cols):
    return jnp.pad(w, ((0, rows - w.shape[0]), (0, cols - w.shape[1])))


# ----------------------------------------------------------------------------
# Pallas kernel: one block of TB graphs per grid step.  Everything runs in
# the Hp (= H rounded up to 128) padded lane space; pad lanes are exactly 0.
# ----------------------------------------------------------------------------
def _gnn_kernel(gru_step, TB, N, Hp,
                feat_ref, sup_ref, mask_ref, invn_ref,
                w_enc_ref, b_enc_ref,
                w_a_ref, b_a_ref, w_hg_ref, b_hg_ref,
                wh1_ref, bh1_ref,
                w_ae_ref, b_ae_ref, w_mlp_ref, b_mlp_ref,
                out_ref, emb_ref):
    dot = functools.partial(jnp.dot, preferred_element_type=jnp.float32)
    M = TB * N

    # ---- load every constant operand exactly once (hoisted out of the loop)
    x = feat_ref[...].reshape(M, -1)               # (M, D_in)
    A = sup_ref[...]                               # (TB, N, N)
    m3 = mask_ref[...]                             # (TB, N, 1)
    m = m3.reshape(M, 1)                           # (M, 1)  broadcast in-kernel
    inv_n = invn_ref[...]                          # (TB, 1, 1)

    w_enc = w_enc_ref[...]; b_enc = b_enc_ref[...]
    w_a = w_a_ref[...];     b_a = b_a_ref[...]     # (Hp, 3Hp): z|r|h  (a side)
    w_hg = w_hg_ref[...];   b_hg = b_hg_ref[...]   # (Hp, 2Hp): z|r    (h side)
    wh1 = wh1_ref[...];     bh1 = bh1_ref[...]     # (Hp, Hp)

    # ---- GraphLayer: encode (pad lanes: tanh(0) * m = 0) ----
    h = m * jnp.tanh(dot(x, w_enc) + b_enc)        # (M, Hp)

    # ---- GraphLayer: GRU message-passing steps (gru_step is static) ----
    # gru_step is small here; for gru_step > ~4 switch this to
    # lax.fori_loop(0, gru_step, step, h, unroll=True) to bound live ranges.
    for _ in range(gru_step):
        a = jnp.einsum('bij,bjh->bih', A, h.reshape(TB, N, Hp),
                       preferred_element_type=jnp.float32).reshape(M, Hp)
        ga = dot(a, w_a) + b_a                     # (M, 3Hp)
        gh = dot(h, w_hg) + b_hg                   # (M, 2Hp)
        # all column slices below are on 128-lane vreg-group boundaries
        zr = jax.nn.sigmoid(ga[:, :2 * Hp] + gh)   # (M, 2Hp)
        z = zr[:, :Hp]
        r = zr[:, Hp:]
        hh = jnp.tanh(ga[:, 2 * Hp:] + dot(r * h, wh1) + bh1)
        h = hh * z + h * (1.0 - z)

    emb_ref[...] = h.reshape(TB, N, Hp)            # lane-dense node embeddings

    # ---- ReadoutLayer: fused (embedding | attention) projection ----
    ae = dot(h, w_ae_ref[...]) + b_ae_ref[...]     # (M, Hp + 128)
    e = jnp.tanh(ae[:, :Hp])                       # (M, Hp)
    att = jax.nn.sigmoid(ae[:, Hp:Hp + 1])         # (M, 1)  (column 0 of group)
    g = (m * att) * e                              # (M, Hp)

    g3 = g.reshape(TB, N, Hp)
    gmax = jnp.where(m3 > 0.0, g3, -1e9)           # masked rows -> -1e9
    pooled = (jnp.sum(g3, axis=1, keepdims=True) * inv_n
              + jnp.max(gmax, axis=1, keepdims=True))        # (TB, 1, Hp)

    # ---- ReadoutLayer: classification MLP, lane-dense (Op = 128) output ----
    logits = dot(pooled.reshape(TB, Hp), w_mlp_ref[...]) + b_mlp_ref[...]
    out_ref[...] = logits.reshape(TB, 1, -1)


# ----------------------------------------------------------------------------
# Wrapper: pads/fuses weights to 128-lane groups, sizes the block, calls
# pallas_call, and undoes the lane padding outside the kernel.
# ----------------------------------------------------------------------------
def gnn_forward(feature, support, mask, params, gru_step, graphs_per_block=None):
    B, N, D_in = feature.shape
    H = params["w_enc"].shape[1]
    O = params["w_mlp"].shape[1]
    Hp = _round_up(H, LANE)
    Op = _round_up(O, LANE)

    # ---- pad + fuse weights once in the wrapper (layout plumbing) ----------
    # Each GRU gate / readout block gets its own 128-lane group so in-kernel
    # slices never cut inside a vreg.  Pad rows/cols are zero, so pad lanes of
    # h stay exactly zero through the recurrence.
    w_enc = _pad2(params["w_enc"], D_in, Hp)
    b_enc = _pad2(params["b_enc"], 1, Hp)
    w_a = jnp.concatenate([_pad2(params["wz0"], Hp, Hp),
                           _pad2(params["wr0"], Hp, Hp),
                           _pad2(params["wh0"], Hp, Hp)], axis=1)
    b_a = jnp.concatenate([_pad2(params["bz0"], 1, Hp),
                           _pad2(params["br0"], 1, Hp),
                           _pad2(params["bh0"], 1, Hp)], axis=1)
    w_hg = jnp.concatenate([_pad2(params["wz1"], Hp, Hp),
                            _pad2(params["wr1"], Hp, Hp)], axis=1)
    b_hg = jnp.concatenate([_pad2(params["bz1"], 1, Hp),
                            _pad2(params["br1"], 1, Hp)], axis=1)
    wh1 = _pad2(params["wh1"], Hp, Hp)
    bh1 = _pad2(params["bh1"], 1, Hp)
    w_ae = jnp.concatenate([_pad2(params["w_emb"], Hp, Hp),
                            _pad2(params["w_att"], Hp, LANE)], axis=1)
    b_ae = jnp.concatenate([_pad2(params["b_emb"], 1, Hp),
                            _pad2(params["b_att"], 1, LANE)], axis=1)
    w_mlp = _pad2(params["w_mlp"], Hp, Op)
    b_mlp = _pad2(params["b_mlp"], 1, Op)

    weights = [w_enc, b_enc, w_a, b_a, w_hg, b_hg, wh1, bh1,
               w_ae, b_ae, w_mlp, b_mlp]
    weight_bytes = 4 * sum(int(w.size) for w in weights)

    def block_bytes(tb):
        # double-buffered data blocks + (single-buffered) weights, f32
        io = 4 * (tb * N * D_in + tb * N * N + tb * N + tb
                  + tb * Op + tb * N * Hp)
        return 2 * io + weight_bytes

    # ---- block sizing: G >= 2 for v7x megacore, footprint within budget ----
    if graphs_per_block is None:
        TB = max(1, B // 2)
        while TB > 1 and (B % TB or block_bytes(TB) > VMEM_BUDGET):
            TB -= 1
    else:
        TB = graphs_per_block
    assert B % TB == 0, "graphs_per_block must divide the batch"
    G = B // TB

    est = block_bytes(TB)
    vmem_limit = int(min(max(2 * est, 32 << 20), 56 << 20))

    # per-graph 1/n_nodes precomputed (matches reference; empty graphs would
    # divide by zero there too)
    inv_n = (1.0 / jnp.sum(mask, axis=1, keepdims=True)).astype(jnp.float32)  # (B,1,1)
    mask_f = mask.astype(jnp.float32)                                          # (B,N,1)

    data_specs = [
        pl.BlockSpec((TB, N, D_in), lambda b: (b, 0, 0)),   # feature
        pl.BlockSpec((TB, N, N),    lambda b: (b, 0, 0)),   # support
        pl.BlockSpec((TB, N, 1),    lambda b: (b, 0, 0)),   # mask
        pl.BlockSpec((TB, 1, 1),    lambda b: (b, 0, 0)),   # 1/n_nodes
    ]
    out_specs = [
        pl.BlockSpec((TB, 1, Op), lambda b: (b, 0, 0)),     # logits (lane-dense)
        pl.BlockSpec((TB, N, Hp), lambda b: (b, 0, 0)),     # embeddings (lane-dense)
    ]
    out_shape = (
        jax.ShapeDtypeStruct((B, 1, Op), jnp.float32),
        jax.ShapeDtypeStruct((B, N, Hp), jnp.float32),
    )

    kernel = functools.partial(_gnn_kernel, gru_step, TB, N, Hp)

    def run(single_buffer_weights):
        if single_buffer_weights:
            w_specs = [pl.BlockSpec(w.shape, lambda b: (0, 0),
                                    pipeline_mode=pl.Buffered(1))
                       for w in weights]
        else:
            w_specs = [pl.BlockSpec(w.shape, lambda b: (0, 0)) for w in weights]
        return pl.pallas_call(
            kernel,
            out_shape=out_shape,
            grid_spec=pltpu.PrefetchScalarGridSpec(
                num_scalar_prefetch=0,
                grid=(G,),
                in_specs=data_specs + w_specs,
                out_specs=out_specs,
            ),
            compiler_params=pltpu.CompilerParams(
                dimension_semantics=("parallel",),
                vmem_limit_bytes=vmem_limit),
        )(feature, support, mask_f, inv_n, *weights)

    try:
        outputs_p, emb_p = run(True)
    except Exception:
        # Fallback for JAX versions without BlockSpec(pipeline_mode=...) support.
        outputs_p, emb_p = run(False)

    # undo lane padding outside the kernel (cheap XLA slices)
    outputs = outputs_p[:, 0, :O]
    embeddings = emb_p[:, :, :H]
    return outputs, embeddings


# ----------------------------------------------------------------------------
# Pure-JAX reference (mirrors the PyTorch GraphLayer/ReadoutLayer forward).
# ----------------------------------------------------------------------------
def gnn_reference(feature, support, mask, p, gru_step):
    h = jnp.tanh(feature @ p["w_enc"] + p["b_enc"])
    h = mask * h
    for _ in range(gru_step):
        a = support @ h
        z = jax.nn.sigmoid(a @ p["wz0"] + p["bz0"] + h @ p["wz1"] + p["bz1"])
        r = jax.nn.sigmoid(a @ p["wr0"] + p["br0"] + h @ p["wr1"] + p["br1"])
        hh = jnp.tanh(a @ p["wh0"] + p["bh0"] + (r * h) @ p["wh1"] + p["bh1"])
        h = hh * z + h * (1.0 - z)
    emb = h
    att = jax.nn.sigmoid(h @ p["w_att"] + p["b_att"])
    e = jnp.tanh(h @ p["w_emb"] + p["b_emb"])
    n_nodes = jnp.sum(mask, axis=1)                       # (B, 1)
    big_neg = (mask - 1.0) * 1e9
    g = mask * att * e
    pooled = jnp.sum(g, axis=1) / n_nodes + jnp.max(g + big_neg, axis=1)
    out = pooled @ p["w_mlp"] + p["b_mlp"].reshape(-1)
    return out, emb


# ----------------------------------------------------------------------------
# Deterministic parameter init (glorot-ish), shapes per the module __init__.
# ----------------------------------------------------------------------------
def init_params(key, input_dim, hidden_dim, output_dim):
    def glorot(k, shape):
        lim = jnp.sqrt(6.0 / (shape[0] + shape[1]))
        return jax.random.uniform(k, shape, jnp.float32, -lim, lim)

    keys = jax.random.split(key, 16)
    p = {}
    p["w_enc"] = glorot(keys[0], (input_dim, hidden_dim))
    p["b_enc"] = jnp.zeros((1, hidden_dim), jnp.float32)
    for i, name in enumerate(["z0", "z1", "r0", "r1", "h0", "h1"]):
        p[f"w{name}"] = glorot(keys[1 + i], (hidden_dim, hidden_dim))
        p[f"b{name}"] = jnp.zeros((1, hidden_dim), jnp.float32)
    p["w_att"] = glorot(keys[8], (hidden_dim, 1))
    p["b_att"] = jnp.zeros((1, 1), jnp.float32)
    p["w_emb"] = glorot(keys[9], (hidden_dim, hidden_dim))
    p["b_emb"] = jnp.zeros((1, hidden_dim), jnp.float32)
    p["w_mlp"] = glorot(keys[10], (hidden_dim, output_dim))
    p["b_mlp"] = jnp.zeros((1, output_dim), jnp.float32)
    return p


if __name__ == "__main__":
    B, N = 2, 16                      # batch of graphs, nodes per graph
    input_dim, hidden_dim, output_dim = 32, 32, 8
    gru_step = 2

    root = jax.random.PRNGKey(0)
    k_feat, k_sup, k_mask, k_param = jax.random.split(root, 4)

    feature = jax.random.normal(k_feat, (B, N, input_dim), jnp.float32)
    # symmetric-ish non-negative support matrix
    raw = jax.random.uniform(k_sup, (B, N, N), jnp.float32)
    support = (raw + jnp.swapaxes(raw, 1, 2)) * 0.5
    # mask: first graph keeps all 16 nodes, second keeps 10
    lengths = jnp.array([16, 10], jnp.int32)
    mask = (jnp.arange(N)[None, :] < lengths[:, None]).astype(jnp.float32)[..., None]
    feature = feature * mask
    support = support * mask * jnp.swapaxes(mask, 1, 2)

    params = init_params(k_param, input_dim, hidden_dim, output_dim)

    outputs, embeddings = gnn_forward(feature, support, mask, params, gru_step)
    outputs = jax.block_until_ready(outputs)
    embeddings = jax.block_until_ready(embeddings)

    ref_out, ref_emb = gnn_reference(feature, support, mask, params, gru_step)

    assert outputs.shape == (B, output_dim)
    assert embeddings.shape == (B, N, hidden_dim)
    assert jnp.allclose(outputs, ref_out, atol=2e-3, rtol=2e-3)
    assert jnp.allclose(embeddings, ref_emb, atol=2e-3, rtol=2e-3)

    print("KERNEL_OK")
</pallas_src>

<mosaic_0001>
module attributes {stable_mosaic.version = 11 : i64} {
  func.func @_gnn_kernel(%arg0: i32, %arg1: memref<1x16x32xf32, #tpu.memory_space<vmem>>, %arg2: memref<1x16x16xf32, #tpu.memory_space<vmem>>, %arg3: memref<1x16x1xf32, #tpu.memory_space<vmem>>, %arg4: memref<1x1x1xf32, #tpu.memory_space<vmem>>, %arg5: memref<32x128xf32, #tpu.memory_space<vmem>>, %arg6: memref<1x128xf32, #tpu.memory_space<vmem>>, %arg7: memref<128x384xf32, #tpu.memory_space<vmem>>, %arg8: memref<1x384xf32, #tpu.memory_space<vmem>>, %arg9: memref<128x256xf32, #tpu.memory_space<vmem>>, %arg10: memref<1x256xf32, #tpu.memory_space<vmem>>, %arg11: memref<128x128xf32, #tpu.memory_space<vmem>>, %arg12: memref<1x128xf32, #tpu.memory_space<vmem>>, %arg13: memref<128x256xf32, #tpu.memory_space<vmem>>, %arg14: memref<1x256xf32, #tpu.memory_space<vmem>>, %arg15: memref<128x128xf32, #tpu.memory_space<vmem>>, %arg16: memref<1x128xf32, #tpu.memory_space<vmem>>, %arg17: memref<1x1x128xf32, #tpu.memory_space<vmem>>, %arg18: memref<1x16x128xf32, #tpu.memory_space<vmem>>) attributes {dimension_semantics = [#tpu.dimension_semantics<parallel>], iteration_bounds = array<i64: 2>, scalar_prefetch = 0 : i64, scratch_operands = 0 : i64, tpu.core_type = #tpu.core_type<tc>, window_params = [{transform_indices = @transform_0, window_bounds = array<i64: 1, 16, 32>}, {transform_indices = @transform_1, window_bounds = array<i64: 1, 16, 16>}, {transform_indices = @transform_2, window_bounds = array<i64: 1, 16, 1>}, {transform_indices = @transform_3, window_bounds = array<i64: 1, 1, 1>}, {pipeline_mode = #tpu.pipeline_mode<synchronous>, transform_indices = @transform_4, window_bounds = array<i64: 32, 128>}, {pipeline_mode = #tpu.pipeline_mode<synchronous>, transform_indices = @transform_5, window_bounds = array<i64: 1, 128>}, {pipeline_mode = #tpu.pipeline_mode<synchronous>, transform_indices = @transform_6, window_bounds = array<i64: 128, 384>}, {pipeline_mode = #tpu.pipeline_mode<synchronous>, transform_indices = @transform_7, window_bounds = array<i64: 1, 384>}, {pipeline_mode = #tpu.pipeline_mode<synchronous>, transform_indices = @transform_8, window_bounds = array<i64: 128, 256>}, {pipeline_mode = #tpu.pipeline_mode<synchronous>, transform_indices = @transform_9, window_bounds = array<i64: 1, 256>}, {pipeline_mode = #tpu.pipeline_mode<synchronous>, transform_indices = @transform_10, window_bounds = array<i64: 128, 128>}, {pipeline_mode = #tpu.pipeline_mode<synchronous>, transform_indices = @transform_11, window_bounds = array<i64: 1, 128>}, {pipeline_mode = #tpu.pipeline_mode<synchronous>, transform_indices = @transform_12, window_bounds = array<i64: 128, 256>}, {pipeline_mode = #tpu.pipeline_mode<synchronous>, transform_indices = @transform_13, window_bounds = array<i64: 1, 256>}, {pipeline_mode = #tpu.pipeline_mode<synchronous>, transform_indices = @transform_14, window_bounds = array<i64: 128, 128>}, {pipeline_mode = #tpu.pipeline_mode<synchronous>, transform_indices = @transform_15, window_bounds = array<i64: 1, 128>}, {transform_indices = @transform_16, window_bounds = array<i64: 1, 1, 128>}, {transform_indices = @transform_17, window_bounds = array<i64: 1, 16, 128>}]} {
    %c0 = arith.constant 0 : index
    %c0_0 = arith.constant 0 : index
    %c0_1 = arith.constant 0 : index
    %0 = vector.load %arg1[%c0, %c0_0, %c0_1] : memref<1x16x32xf32, #tpu.memory_space<vmem>>, vector<1x16x32xf32>
    %1 = vector.shape_cast %0 : vector<1x16x32xf32> to vector<16x32xf32>
    %c0_2 = arith.constant 0 : index
    %c0_3 = arith.constant 0 : index
    %c0_4 = arith.constant 0 : index
    %2 = vector.load %arg2[%c0_2, %c0_3, %c0_4] : memref<1x16x16xf32, #tpu.memory_space<vmem>>, vector<1x16x16xf32>
    %c0_5 = arith.constant 0 : index
    %c0_6 = arith.constant 0 : index
    %c0_7 = arith.constant 0 : index
    %3 = vector.load %arg3[%c0_5, %c0_6, %c0_7] : memref<1x16x1xf32, #tpu.memory_space<vmem>>, vector<1x16x1xf32>
    %4 = vector.shape_cast %3 : vector<1x16x1xf32> to vector<16x1xf32>
    %c0_8 = arith.constant 0 : index
    %c0_9 = arith.constant 0 : index
    %c0_10 = arith.constant 0 : index
    %5 = vector.load %arg4[%c0_8, %c0_9, %c0_10] : memref<1x1x1xf32, #tpu.memory_space<vmem>>, vector<1x1x1xf32>
    %c0_11 = arith.constant 0 : index
    %c0_12 = arith.constant 0 : index
    %6 = vector.load %arg5[%c0_11, %c0_12] : memref<32x128xf32, #tpu.memory_space<vmem>>, vector<32x128xf32>
    %c0_13 = arith.constant 0 : index
    %c0_14 = arith.constant 0 : index
    %7 = vector.load %arg6[%c0_13, %c0_14] : memref<1x128xf32, #tpu.memory_space<vmem>>, vector<1x128xf32>
    %c0_15 = arith.constant 0 : index
    %c0_16 = arith.constant 0 : index
    %8 = vector.load %arg7[%c0_15, %c0_16] : memref<128x384xf32, #tpu.memory_space<vmem>>, vector<128x384xf32>
    %c0_17 = arith.constant 0 : index
    %c0_18 = arith.constant 0 : index
    %9 = vector.load %arg8[%c0_17, %c0_18] : memref<1x384xf32, #tpu.memory_space<vmem>>, vector<1x384xf32>
    %c0_19 = arith.constant 0 : index
    %c0_20 = arith.constant 0 : index
    %10 = vector.load %arg9[%c0_19, %c0_20] : memref<128x256xf32, #tpu.memory_space<vmem>>, vector<128x256xf32>
    %c0_21 = arith.constant 0 : index
    %c0_22 = arith.constant 0 : index
    %11 = vector.load %arg10[%c0_21, %c0_22] : memref<1x256xf32, #tpu.memory_space<vmem>>, vector<1x256xf32>
    %c0_23 = arith.constant 0 : index
    %c0_24 = arith.constant 0 : index
    %12 = vector.load %arg11[%c0_23, %c0_24] : memref<128x128xf32, #tpu.memory_space<vmem>>, vector<128x128xf32>
    %c0_25 = arith.constant 0 : index
    %c0_26 = arith.constant 0 : index
    %13 = vector.load %arg12[%c0_25, %c0_26] : memref<1x128xf32, #tpu.memory_space<vmem>>, vector<1x128xf32>
    %cst = arith.constant dense<0.000000e+00> : vector<16x128xf32>
    %14 = tpu.matmul %1, %6, %cst {dimension_numbers = #tpu.dot_dimension_numbers<[1], [0], [0], [1], [0, 0, 1, 1], [], []>} : vector<16x32xf32>, vector<32x128xf32>, vector<16x128xf32> -> vector<16x128xf32>
    %15 = vector.broadcast %7 : vector<1x128xf32> to vector<16x128xf32>
    %16 = arith.addf %14, %15 : vector<16x128xf32>
    %17 = math.tanh %16 : vector<16x128xf32>
    %18 = vector.broadcast %4 : vector<16x1xf32> to vector<16x128xf32>
    %19 = arith.mulf %18, %17 : vector<16x128xf32>
    %20 = vector.shape_cast %19 : vector<16x128xf32> to vector<1x16x128xf32>
    "tpu.trace_start"() <{level = 10 : i32, message = "bij,bjh->bih"}> : () -> ()
    %cst_27 = arith.constant dense<0.000000e+00> : vector<1x16x128xf32>
    %21 = tpu.matmul %2, %20, %cst_27 {dimension_numbers = #tpu.dot_dimension_numbers<[2], [1], [1], [2], [0, 0, 0, 1, 1, 2], [0], [0]>} : vector<1x16x16xf32>, vector<1x16x128xf32>, vector<1x16x128xf32> -> vector<1x16x128xf32>
    "tpu.trace_stop"() : () -> ()
    %22 = vector.shape_cast %21 : vector<1x16x128xf32> to vector<16x128xf32>
    %cst_28 = arith.constant dense<0.000000e+00> : vector<16x384xf32>
    %23 = tpu.matmul %22, %8, %cst_28 {dimension_numbers = #tpu.dot_dimension_numbers<[1], [0], [0], [1], [0, 0, 1, 1], [], []>} : vector<16x128xf32>, vector<128x384xf32>, vector<16x384xf32> -> vector<16x384xf32>
    %24 = vector.broadcast %9 : vector<1x384xf32> to vector<16x384xf32>
    %25 = arith.addf %23, %24 : vector<16x384xf32>
    %cst_29 = arith.constant dense<0.000000e+00> : vector<16x256xf32>
    %26 = tpu.matmul %19, %10, %cst_29 {dimension_numbers = #tpu.dot_dimension_numbers<[1], [0], [0], [1], [0, 0, 1, 1], [], []>} : vector<16x128xf32>, vector<128x256xf32>, vector<16x256xf32> -> vector<16x256xf32>
    %27 = vector.broadcast %11 : vector<1x256xf32> to vector<16x256xf32>
    %28 = arith.addf %26, %27 : vector<16x256xf32>
    %29 = vector.extract_strided_slice %25 {offsets = [0, 0], sizes = [16, 256], strides = [1, 1]} : vector<16x384xf32> to vector<16x256xf32>
    %30 = arith.addf %29, %28 : vector<16x256xf32>
    %31 = arith.negf %30 : vector<16x256xf32>
    %32 = math.exp %31 : vector<16x256xf32>
    %cst_30 = arith.constant 1.000000e+00 : f32
    %33 = vector.broadcast %cst_30 : f32 to vector<16x256xf32>
    %34 = arith.addf %33, %32 : vector<16x256xf32>
    %35 = arith.divf %33, %34 : vector<16x256xf32>
    %36 = vector.extract_strided_slice %35 {offsets = [0, 0], sizes = [16, 128], strides = [1, 1]} : vector<16x256xf32> to vector<16x128xf32>
    %37 = vector.extract_strided_slice %35 {offsets = [0, 128], sizes = [16, 128], strides = [1, 1]} : vector<16x256xf32> to vector<16x128xf32>
    %38 = vector.extract_strided_slice %25 {offsets = [0, 256], sizes = [16, 128], strides = [1, 1]} : vector<16x384xf32> to vector<16x128xf32>
    %39 = arith.mulf %37, %19 : vector<16x128xf32>
    %cst_31 = arith.constant dense<0.000000e+00> : vector<16x128xf32>
    %40 = tpu.matmul %39, %12, %cst_31 {dimension_numbers = #tpu.dot_dimension_numbers<[1], [0], [0], [1], [0, 0, 1, 1], [], []>} : vector<16x128xf32>, vector<128x128xf32>, vector<16x128xf32> -> vector<16x128xf32>
    %41 = arith.addf %38, %40 : vector<16x128xf32>
    %42 = vector.broadcast %13 : vector<1x128xf32> to vector<16x128xf32>
    %43 = arith.addf %41, %42 : vector<16x128xf32>
    %44 = math.tanh %43 : vector<16x128xf32>
    %45 = arith.mulf %44, %36 : vector<16x128xf32>
    %cst_32 = arith.constant 1.000000e+00 : f32
    %46 = vector.broadcast %cst_32 : f32 to vector<16x128xf32>
    %47 = arith.subf %46, %36 : vector<16x128xf32>
    %48 = arith.mulf %19, %47 : vector<16x128xf32>
    %49 = arith.addf %45, %48 : vector<16x128xf32>
    %50 = vector.shape_cast %49 : vector<16x128xf32> to vector<1x16x128xf32>
    "tpu.trace_start"() <{level = 10 : i32, message = "bij,bjh->bih"}> : () -> ()
    %cst_33 = arith.constant dense<0.000000e+00> : vector<1x16x128xf32>
    %51 = tpu.matmul %2, %50, %cst_33 {dimension_numbers = #tpu.dot_dimension_numbers<[2], [1], [1], [2], [0, 0, 0, 1, 1, 2], [0], [0]>} : vector<1x16x16xf32>, vector<1x16x128xf32>, vector<1x16x128xf32> -> vector<1x16x128xf32>
    "tpu.trace_stop"() : () -> ()
    %52 = vector.shape_cast %51 : vector<1x16x128xf32> to vector<16x128xf32>
    %cst_34 = arith.constant dense<0.000000e+00> : vector<16x384xf32>
    %53 = tpu.matmul %52, %8, %cst_34 {dimension_numbers = #tpu.dot_dimension_numbers<[1], [0], [0], [1], [0, 0, 1, 1], [], []>} : vector<16x128xf32>, vector<128x384xf32>, vector<16x384xf32> -> vector<16x384xf32>
    %54 = vector.broadcast %9 : vector<1x384xf32> to vector<16x384xf32>
    %55 = arith.addf %53, %54 : vector<16x384xf32>
    %cst_35 = arith.constant dense<0.000000e+00> : vector<16x256xf32>
    %56 = tpu.matmul %49, %10, %cst_35 {dimension_numbers = #tpu.dot_dimension_numbers<[1], [0], [0], [1], [0, 0, 1, 1], [], []>} : vector<16x128xf32>, vector<128x256xf32>, vector<16x256xf32> -> vector<16x256xf32>
    %57 = vector.broadcast %11 : vector<1x256xf32> to vector<16x256xf32>
    %58 = arith.addf %56, %57 : vector<16x256xf32>
    %59 = vector.extract_strided_slice %55 {offsets = [0, 0], sizes = [16, 256], strides = [1, 1]} : vector<16x384xf32> to vector<16x256xf32>
    %60 = arith.addf %59, %58 : vector<16x256xf32>
    %61 = arith.negf %60 : vector<16x256xf32>
    %62 = math.exp %61 : vector<16x256xf32>
    %cst_36 = arith.constant 1.000000e+00 : f32
    %63 = vector.broadcast %cst_36 : f32 to vector<16x256xf32>
    %64 = arith.addf %63, %62 : vector<16x256xf32>
    %65 = arith.divf %63, %64 : vector<16x256xf32>
    %66 = vector.extract_strided_slice %65 {offsets = [0, 0], sizes = [16, 128], strides = [1, 1]} : vector<16x256xf32> to vector<16x128xf32>
    %67 = vector.extract_strided_slice %65 {offsets = [0, 128], sizes = [16, 128], strides = [1, 1]} : vector<16x256xf32> to vector<16x128xf32>
    %68 = vector.extract_strided_slice %55 {offsets = [0, 256], sizes = [16, 128], strides = [1, 1]} : vector<16x384xf32> to vector<16x128xf32>
    %69 = arith.mulf %67, %49 : vector<16x128xf32>
    %cst_37 = arith.constant dense<0.000000e+00> : vector<16x128xf32>
    %70 = tpu.matmul %69, %12, %cst_37 {dimension_numbers = #tpu.dot_dimension_numbers<[1], [0], [0], [1], [0, 0, 1, 1], [], []>} : vector<16x128xf32>, vector<128x128xf32>, vector<16x128xf32> -> vector<16x128xf32>
    %71 = arith.addf %68, %70 : vector<16x128xf32>
    %72 = vector.broadcast %13 : vector<1x128xf32> to vector<16x128xf32>
    %73 = arith.addf %71, %72 : vector<16x128xf32>
    %74 = math.tanh %73 : vector<16x128xf32>
    %75 = arith.mulf %74, %66 : vector<16x128xf32>
    %cst_38 = arith.constant 1.000000e+00 : f32
    %76 = vector.broadcast %cst_38 : f32 to vector<16x128xf32>
    %77 = arith.subf %76, %66 : vector<16x128xf32>
    %78 = arith.mulf %49, %77 : vector<16x128xf32>
    %79 = arith.addf %75, %78 : vector<16x128xf32>
    %80 = vector.shape_cast %79 : vector<16x128xf32> to vector<1x16x128xf32>
    %c0_39 = arith.constant 0 : index
    %c0_40 = arith.constant 0 : index
    %c0_41 = arith.constant 0 : index
    %81 = vector.load %arg18[%c0_39, %c0_40, %c0_41] : memref<1x16x128xf32, #tpu.memory_space<vmem>>, vector<1x16x128xf32>
    tpu.vector_store %arg18[%c0_39, %c0_40, %c0_41], %80 {strides = array<i32>} : memref<1x16x128xf32, #tpu.memory_space<vmem>>, vector<1x16x128xf32>,
    %c0_42 = arith.constant 0 : index
    %c0_43 = arith.constant 0 : index
    %82 = vector.load %arg13[%c0_42, %c0_43] : memref<128x256xf32, #tpu.memory_space<vmem>>, vector<128x256xf32>
    %cst_44 = arith.constant dense<0.000000e+00> : vector<16x256xf32>
    %83 = tpu.matmul %79, %82, %cst_44 {dimension_numbers = #tpu.dot_dimension_numbers<[1], [0], [0], [1], [0, 0, 1, 1], [], []>} : vector<16x128xf32>, vector<128x256xf32>, vector<16x256xf32> -> vector<16x256xf32>
    %c0_45 = arith.constant 0 : index
    %c0_46 = arith.constant 0 : index
    %84 = vector.load %arg14[%c0_45, %c0_46] : memref<1x256xf32, #tpu.memory_space<vmem>>, vector<1x256xf32>
    %85 = vector.broadcast %84 : vector<1x256xf32> to vector<16x256xf32>
    %86 = arith.addf %83, %85 : vector<16x256xf32>
    %87 = vector.extract_strided_slice %86 {offsets = [0, 0], sizes = [16, 128], strides = [1, 1]} : vector<16x256xf32> to vector<16x128xf32>
    %88 = math.tanh %87 : vector<16x128xf32>
    %89 = vector.extract_strided_slice %86 {offsets = [0, 128], sizes = [16, 1], strides = [1, 1]} : vector<16x256xf32> to vector<16x1xf32>
    %90 = arith.negf %89 : vector<16x1xf32>
    %91 = math.exp %90 : vector<16x1xf32>
    %cst_47 = arith.constant 1.000000e+00 : f32
    %92 = vector.broadcast %cst_47 : f32 to vector<16x1xf32>
    %93 = arith.addf %92, %91 : vector<16x1xf32>
    %94 = arith.divf %92, %93 : vector<16x1xf32>
    %95 = arith.mulf %4, %94 : vector<16x1xf32>
    %96 = vector.broadcast %95 : vector<16x1xf32> to vector<16x128xf32>
    %97 = arith.mulf %96, %88 : vector<16x128xf32>
    %98 = vector.shape_cast %97 : vector<16x128xf32> to vector<1x16x128xf32>
    %cst_48 = arith.constant 0.000000e+00 : f32
    %99 = vector.broadcast %cst_48 : f32 to vector<1x16x1xf32>
    %100 = arith.cmpf ogt, %3, %99 : vector<1x16x1xf32>
    %cst_49 = arith.constant -1.000000e+09 : f32
    %101 = vector.shape_cast %100 : vector<1x16x1xi1> to vector<1x16x1xi1>
    %102 = vector.broadcast %101 : vector<1x16x1xi1> to vector<1x16x128xi1>
    %103 = vector.broadcast %cst_49 : f32 to vector<1x16x128xf32>
    %104 = arith.select %102, %98, %103 : vector<1x16x128xi1>, vector<1x16x128xf32>
    %cst_50 = arith.constant dense<0.000000e+00> : vector<1x128xf32>
    %105 = vector.multi_reduction <add>, %98, %cst_50 [1] : vector<1x16x128xf32> to vector<1x128xf32>
    %106 = vector.shape_cast %105 : vector<1x128xf32> to vector<1x1x128xf32>
    %107 = vector.broadcast %5 : vector<1x1x1xf32> to vector<1x1x128xf32>
    %108 = arith.mulf %106, %107 : vector<1x1x128xf32>
    %cst_51 = arith.constant dense<0xFF800000> : vector<1x128xf32>
    %109 = vector.multi_reduction <maximumf>, %104, %cst_51 [1] : vector<1x16x128xf32> to vector<1x128xf32>
    %110 = vector.shape_cast %109 : vector<1x128xf32> to vector<1x1x128xf32>
    %111 = arith.addf %108, %110 : vector<1x1x128xf32>
    %112 = vector.shape_cast %111 : vector<1x1x128xf32> to vector<1x128xf32>
    %c0_52 = arith.constant 0 : index
    %c0_53 = arith.constant 0 : index
    %113 = vector.load %arg15[%c0_52, %c0_53] : memref<128x128xf32, #tpu.memory_space<vmem>>, vector<128x128xf32>
    %cst_54 = arith.constant dense<0.000000e+00> : vector<1x128xf32>
    %114 = tpu.matmul %112, %113, %cst_54 {dimension_numbers = #tpu.dot_dimension_numbers<[1], [0], [0], [1], [0, 0, 1, 1], [], []>} : vector<1x128xf32>, vector<128x128xf32>, vector<1x128xf32> -> vector<1x128xf32>
    %c0_55 = arith.constant 0 : index
    %c0_56 = arith.constant 0 : index
    %115 = vector.load %arg16[%c0_55, %c0_56] : memref<1x128xf32, #tpu.memory_space<vmem>>, vector<1x128xf32>
    %116 = arith.addf %114, %115 : vector<1x128xf32>
    %117 = vector.shape_cast %116 : vector<1x128xf32> to vector<1x1x128xf32>
    %c0_57 = arith.constant 0 : index
    %c0_58 = arith.constant 0 : index
    %c0_59 = arith.constant 0 : index
    %118 = vector.load %arg17[%c0_57, %c0_58, %c0_59] : memref<1x1x128xf32, #tpu.memory_space<vmem>>, vector<1x1x128xf32>
    tpu.vector_store %arg17[%c0_57, %c0_58, %c0_59], %117 {strides = array<i32>} : memref<1x1x128xf32, #tpu.memory_space<vmem>>, vector<1x1x128xf32>,
    return
  }
  func.func @transform_0(%arg0: i32) -> (i32, i32, i32) {
    %c0_i32 = arith.constant 0 : i32
    %c0_i32_0 = arith.constant 0 : i32
    %c0_i32_1 = arith.constant 0 : i32
    return %arg0, %c0_i32, %c0_i32_0 : i32, i32, i32
  }
  func.func @transform_1(%arg0: i32) -> (i32, i32, i32) {
    %c0_i32 = arith.constant 0 : i32
    %c0_i32_0 = arith.constant 0 : i32
    %c0_i32_1 = arith.constant 0 : i32
    return %arg0, %c0_i32, %c0_i32_0 : i32, i32, i32
  }
  func.func @transform_2(%arg0: i32) -> (i32, i32, i32) {
    %c0_i32 = arith.constant 0 : i32
    %c0_i32_0 = arith.constant 0 : i32
    %c0_i32_1 = arith.constant 0 : i32
    return %arg0, %c0_i32, %c0_i32_0 : i32, i32, i32
  }
  func.func @transform_3(%arg0: i32) -> (i32, i32, i32) {
    %c0_i32 = arith.constant 0 : i32
    %c0_i32_0 = arith.constant 0 : i32
    %c0_i32_1 = arith.constant 0 : i32
    return %arg0, %c0_i32, %c0_i32_0 : i32, i32, i32
  }
  func.func @transform_4(%arg0: i32) -> (i32, i32) {
    %c0_i32 = arith.constant 0 : i32
    %c0_i32_0 = arith.constant 0 : i32
    %c0_i32_1 = arith.constant 0 : i32
    return %c0_i32, %c0_i32_0 : i32, i32
  }
  func.func @transform_5(%arg0: i32) -> (i32, i32) {
    %c0_i32 = arith.constant 0 : i32
    %c0_i32_0 = arith.constant 0 : i32
    %c0_i32_1 = arith.constant 0 : i32
    return %c0_i32, %c0_i32_0 : i32, i32
  }
  func.func @transform_6(%arg0: i32) -> (i32, i32) {
    %c0_i32 = arith.constant 0 : i32
    %c0_i32_0 = arith.constant 0 : i32
    %c0_i32_1 = arith.constant 0 : i32
    return %c0_i32, %c0_i32_0 : i32, i32
  }
  func.func @transform_7(%arg0: i32) -> (i32, i32) {
    %c0_i32 = arith.constant 0 : i32
    %c0_i32_0 = arith.constant 0 : i32
    %c0_i32_1 = arith.constant 0 : i32
    return %c0_i32, %c0_i32_0 : i32, i32
  }
  func.func @transform_8(%arg0: i32) -> (i32, i32) {
    %c0_i32 = arith.constant 0 : i32
    %c0_i32_0 = arith.constant 0 : i32
    %c0_i32_1 = arith.constant 0 : i32
    return %c0_i32, %c0_i32_0 : i32, i32
  }
  func.func @transform_9(%arg0: i32) -> (i32, i32) {
    %c0_i32 = arith.constant 0 : i32
    %c0_i32_0 = arith.constant 0 : i32
    %c0_i32_1 = arith.constant 0 : i32
    return %c0_i32, %c0_i32_0 : i32, i32
  }
  func.func @transform_10(%arg0: i32) -> (i32, i32) {
    %c0_i32 = arith.constant 0 : i32
    %c0_i32_0 = arith.constant 0 : i32
    %c0_i32_1 = arith.constant 0 : i32
    return %c0_i32, %c0_i32_0 : i32, i32
  }
  func.func @transform_11(%arg0: i32) -> (i32, i32) {
    %c0_i32 = arith.constant 0 : i32
    %c0_i32_0 = arith.constant 0 : i32
    %c0_i32_1 = arith.constant 0 : i32
    return %c0_i32, %c0_i32_0 : i32, i32
  }
  func.func @transform_12(%arg0: i32) -> (i32, i32) {
    %c0_i32 = arith.constant 0 : i32
    %c0_i32_0 = arith.constant 0 : i32
    %c0_i32_1 = arith.constant 0 : i32
    return %c0_i32, %c0_i32_0 : i32, i32
  }
  func.func @transform_13(%arg0: i32) -> (i32, i32) {
    %c0_i32 = arith.constant 0 : i32
    %c0_i32_0 = arith.constant 0 : i32
    %c0_i32_1 = arith.constant 0 : i32
    return %c0_i32, %c0_i32_0 : i32, i32
  }
  func.func @transform_14(%arg0: i32) -> (i32, i32) {
    %c0_i32 = arith.constant 0 : i32
    %c0_i32_0 = arith.constant 0 : i32
    %c0_i32_1 = arith.constant 0 : i32
    return %c0_i32, %c0_i32_0 : i32, i32
  }
  func.func @transform_15(%arg0: i32) -> (i32, i32) {
    %c0_i32 = arith.constant 0 : i32
    %c0_i32_0 = arith.constant 0 : i32
    %c0_i32_1 = arith.constant 0 : i32
    return %c0_i32, %c0_i32_0 : i32, i32
  }
  func.func @transform_16(%arg0: i32) -> (i32, i32, i32) {
    %c0_i32 = arith.constant 0 : i32
    %c0_i32_0 = arith.constant 0 : i32
    %c0_i32_1 = arith.constant 0 : i32
    return %arg0, %c0_i32, %c0_i32_0 : i32, i32, i32
  }
  func.func @transform_17(%arg0: i32) -> (i32, i32, i32) {
    %c0_i32 = arith.constant 0 : i32
    %c0_i32_0 = arith.constant 0 : i32
    %c0_i32_1 = arith.constant 0 : i32
    return %arg0, %c0_i32, %c0_i32_0 : i32, i32, i32
  }
}

module attributes {stable_mosaic.version = 11 : i64} {
  func.func @_gnn_kernel(%arg0: i32, %arg1: memref<1x16x32xf32, #tpu.memory_space<vmem>>, %arg2: memref<1x16x16xf32, #tpu.memory_space<vmem>>, %arg3: memref<1x16x1xf32, #tpu.memory_space<vmem>>, %arg4: memref<1x1x1xf32, #tpu.memory_space<vmem>>, %arg5: memref<32x128xf32, #tpu.memory_space<vmem>>, %arg6: memref<1x128xf32, #tpu.memory_space<vmem>>, %arg7: memref<128x384xf32, #tpu.memory_space<vmem>>, %arg8: memref<1x384xf32, #tpu.memory_space<vmem>>, %arg9: memref<128x256xf32, #tpu.memory_space<vmem>>, %arg10: memref<1x256xf32, #tpu.memory_space<vmem>>, %arg11: memref<128x128xf32, #tpu.memory_space<vmem>>, %arg12: memref<1x128xf32, #tpu.memory_space<vmem>>, %arg13: memref<128x256xf32, #tpu.memory_space<vmem>>, %arg14: memref<1x256xf32, #tpu.memory_space<vmem>>, %arg15: memref<128x128xf32, #tpu.memory_space<vmem>>, %arg16: memref<1x128xf32, #tpu.memory_space<vmem>>, %arg17: memref<1x1x128xf32, #tpu.memory_space<vmem>>, %arg18: memref<1x16x128xf32, #tpu.memory_space<vmem>>) attributes {dimension_semantics = [#tpu.dimension_semantics<parallel>], iteration_bounds = array<i64: 2>, scalar_prefetch = 0 : i64, scratch_operands = 0 : i64, tpu.core_type = #tpu.core_type<tc>, window_params = [{transform_indices = @transform_0, window_bounds = array<i64: 1, 16, 32>}, {transform_indices = @transform_1, window_bounds = array<i64: 1, 16, 16>}, {transform_indices = @transform_2, window_bounds = array<i64: 1, 16, 1>}, {transform_indices = @transform_3, window_bounds = array<i64: 1, 1, 1>}, {pipeline_mode = #tpu.pipeline_mode<synchronous>, transform_indices = @transform_4, window_bounds = array<i64: 32, 128>}, {pipeline_mode = #tpu.pipeline_mode<synchronous>, transform_indices = @transform_5, window_bounds = array<i64: 1, 128>}, {pipeline_mode = #tpu.pipeline_mode<synchronous>, transform_indices = @transform_6, window_bounds = array<i64: 128, 384>}, {pipeline_mode = #tpu.pipeline_mode<synchronous>, transform_indices = @transform_7, window_bounds = array<i64: 1, 384>}, {pipeline_mode = #tpu.pipeline_mode<synchronous>, transform_indices = @transform_8, window_bounds = array<i64: 128, 256>}, {pipeline_mode = #tpu.pipeline_mode<synchronous>, transform_indices = @transform_9, window_bounds = array<i64: 1, 256>}, {pipeline_mode = #tpu.pipeline_mode<synchronous>, transform_indices = @transform_10, window_bounds = array<i64: 128, 128>}, {pipeline_mode = #tpu.pipeline_mode<synchronous>, transform_indices = @transform_11, window_bounds = array<i64: 1, 128>}, {pipeline_mode = #tpu.pipeline_mode<synchronous>, transform_indices = @transform_12, window_bounds = array<i64: 128, 256>}, {pipeline_mode = #tpu.pipeline_mode<synchronous>, transform_indices = @transform_13, window_bounds = array<i64: 1, 256>}, {pipeline_mode = #tpu.pipeline_mode<synchronous>, transform_indices = @transform_14, window_bounds = array<i64: 128, 128>}, {pipeline_mode = #tpu.pipeline_mode<synchronous>, transform_indices = @transform_15, window_bounds = array<i64: 1, 128>}, {transform_indices = @transform_16, window_bounds = array<i64: 1, 1, 128>}, {transform_indices = @transform_17, window_bounds = array<i64: 1, 16, 128>}]} {
    %c0 = arith.constant 0 : index
    %c0_0 = arith.constant 0 : index
    %c0_1 = arith.constant 0 : index
    %0 = vector.load %arg1[%c0, %c0_0, %c0_1] : memref<1x16x32xf32, #tpu.memory_space<vmem>>, vector<1x16x32xf32>
    %1 = vector.shape_cast %0 : vector<1x16x32xf32> to vector<16x32xf32>
    %c0_2 = arith.constant 0 : index
    %c0_3 = arith.constant 0 : index
    %c0_4 = arith.constant 0 : index
    %2 = vector.load %arg2[%c0_2, %c0_3, %c0_4] : memref<1x16x16xf32, #tpu.memory_space<vmem>>, vector<1x16x16xf32>
    %c0_5 = arith.constant 0 : index
    %c0_6 = arith.constant 0 : index
    %c0_7 = arith.constant 0 : index
    %3 = vector.load %arg3[%c0_5, %c0_6, %c0_7] : memref<1x16x1xf32, #tpu.memory_space<vmem>>, vector<1x16x1xf32>
    %4 = vector.shape_cast %3 : vector<1x16x1xf32> to vector<16x1xf32>
    %c0_8 = arith.constant 0 : index
    %c0_9 = arith.constant 0 : index
    %c0_10 = arith.constant 0 : index
    %5 = vector.load %arg4[%c0_8, %c0_9, %c0_10] : memref<1x1x1xf32, #tpu.memory_space<vmem>>, vector<1x1x1xf32>
    %c0_11 = arith.constant 0 : index
    %c0_12 = arith.constant 0 : index
    %6 = vector.load %arg5[%c0_11, %c0_12] : memref<32x128xf32, #tpu.memory_space<vmem>>, vector<32x128xf32>
    %c0_13 = arith.constant 0 : index
    %c0_14 = arith.constant 0 : index
    %7 = vector.load %arg6[%c0_13, %c0_14] : memref<1x128xf32, #tpu.memory_space<vmem>>, vector<1x128xf32>
    %c0_15 = arith.constant 0 : index
    %c0_16 = arith.constant 0 : index
    %8 = vector.load %arg7[%c0_15, %c0_16] : memref<128x384xf32, #tpu.memory_space<vmem>>, vector<128x384xf32>
    %c0_17 = arith.constant 0 : index
    %c0_18 = arith.constant 0 : index
    %9 = vector.load %arg8[%c0_17, %c0_18] : memref<1x384xf32, #tpu.memory_space<vmem>>, vector<1x384xf32>
    %c0_19 = arith.constant 0 : index
    %c0_20 = arith.constant 0 : index
    %10 = vector.load %arg9[%c0_19, %c0_20] : memref<128x256xf32, #tpu.memory_space<vmem>>, vector<128x256xf32>
    %c0_21 = arith.constant 0 : index
    %c0_22 = arith.constant 0 : index
    %11 = vector.load %arg10[%c0_21, %c0_22] : memref<1x256xf32, #tpu.memory_space<vmem>>, vector<1x256xf32>
    %c0_23 = arith.constant 0 : index
    %c0_24 = arith.constant 0 : index
    %12 = vector.load %arg11[%c0_23, %c0_24] : memref<128x128xf32, #tpu.memory_space<vmem>>, vector<128x128xf32>
    %c0_25 = arith.constant 0 : index
    %c0_26 = arith.constant 0 : index
    %13 = vector.load %arg12[%c0_25, %c0_26] : memref<1x128xf32, #tpu.memory_space<vmem>>, vector<1x128xf32>
    %cst = arith.constant dense<0.000000e+00> : vector<16x128xf32>
    %14 = tpu.matmul %1, %6, %cst {dimension_numbers = #tpu.dot_dimension_numbers<[1], [0], [0], [1], [0, 0, 1, 1], [], []>} : vector<16x32xf32>, vector<32x128xf32>, vector<16x128xf32> -> vector<16x128xf32>
    %15 = vector.broadcast %7 : vector<1x128xf32> to vector<16x128xf32>
    %16 = arith.addf %14, %15 : vector<16x128xf32>
    %17 = math.tanh %16 : vector<16x128xf32>
    %18 = vector.broadcast %4 : vector<16x1xf32> to vector<16x128xf32>
    %19 = arith.mulf %18, %17 : vector<16x128xf32>
    %20 = vector.shape_cast %19 : vector<16x128xf32> to vector<1x16x128xf32>
    "tpu.trace_start"() <{level = 10 : i32, message = "bij,bjh->bih"}> : () -> ()
    %cst_27 = arith.constant dense<0.000000e+00> : vector<1x16x128xf32>
    %21 = tpu.matmul %2, %20, %cst_27 {dimension_numbers = #tpu.dot_dimension_numbers<[2], [1], [1], [2], [0, 0, 0, 1, 1, 2], [0], [0]>} : vector<1x16x16xf32>, vector<1x16x128xf32>, vector<1x16x128xf32> -> vector<1x16x128xf32>
    "tpu.trace_stop"() : () -> ()
    %22 = vector.shape_cast %21 : vector<1x16x128xf32> to vector<16x128xf32>
    %cst_28 = arith.constant dense<0.000000e+00> : vector<16x384xf32>
    %23 = tpu.matmul %22, %8, %cst_28 {dimension_numbers = #tpu.dot_dimension_numbers<[1], [0], [0], [1], [0, 0, 1, 1], [], []>} : vector<16x128xf32>, vector<128x384xf32>, vector<16x384xf32> -> vector<16x384xf32>
    %24 = vector.broadcast %9 : vector<1x384xf32> to vector<16x384xf32>
    %25 = arith.addf %23, %24 : vector<16x384xf32>
    %cst_29 = arith.constant dense<0.000000e+00> : vector<16x256xf32>
    %26 = tpu.matmul %19, %10, %cst_29 {dimension_numbers = #tpu.dot_dimension_numbers<[1], [0], [0], [1], [0, 0, 1, 1], [], []>} : vector<16x128xf32>, vector<128x256xf32>, vector<16x256xf32> -> vector<16x256xf32>
    %27 = vector.broadcast %11 : vector<1x256xf32> to vector<16x256xf32>
    %28 = arith.addf %26, %27 : vector<16x256xf32>
    %29 = vector.extract_strided_slice %25 {offsets = [0, 0], sizes = [16, 256], strides = [1, 1]} : vector<16x384xf32> to vector<16x256xf32>
    %30 = arith.addf %29, %28 : vector<16x256xf32>
    %31 = arith.negf %30 : vector<16x256xf32>
    %32 = math.exp %31 : vector<16x256xf32>
    %cst_30 = arith.constant 1.000000e+00 : f32
    %33 = vector.broadcast %cst_30 : f32 to vector<16x256xf32>
    %34 = arith.addf %33, %32 : vector<16x256xf32>
    %35 = arith.divf %33, %34 : vector<16x256xf32>
    %36 = vector.extract_strided_slice %35 {offsets = [0, 0], sizes = [16, 128], strides = [1, 1]} : vector<16x256xf32> to vector<16x128xf32>
    %37 = vector.extract_strided_slice %35 {offsets = [0, 128], sizes = [16, 128], strides = [1, 1]} : vector<16x256xf32> to vector<16x128xf32>
    %38 = vector.extract_strided_slice %25 {offsets = [0, 256], sizes = [16, 128], strides = [1, 1]} : vector<16x384xf32> to vector<16x128xf32>
    %39 = arith.mulf %37, %19 : vector<16x128xf32>
    %cst_31 = arith.constant dense<0.000000e+00> : vector<16x128xf32>
    %40 = tpu.matmul %39, %12, %cst_31 {dimension_numbers = #tpu.dot_dimension_numbers<[1], [0], [0], [1], [0, 0, 1, 1], [], []>} : vector<16x128xf32>, vector<128x128xf32>, vector<16x128xf32> -> vector<16x128xf32>
    %41 = arith.addf %38, %40 : vector<16x128xf32>
    %42 = vector.broadcast %13 : vector<1x128xf32> to vector<16x128xf32>
    %43 = arith.addf %41, %42 : vector<16x128xf32>
    %44 = math.tanh %43 : vector<16x128xf32>
    %45 = arith.mulf %44, %36 : vector<16x128xf32>
    %cst_32 = arith.constant 1.000000e+00 : f32
    %46 = vector.broadcast %cst_32 : f32 to vector<16x128xf32>
    %47 = arith.subf %46, %36 : vector<16x128xf32>
    %48 = arith.mulf %19, %47 : vector<16x128xf32>
    %49 = arith.addf %45, %48 : vector<16x128xf32>
    %50 = vector.shape_cast %49 : vector<16x128xf32> to vector<1x16x128xf32>
    "tpu.trace_start"() <{level = 10 : i32, message = "bij,bjh->bih"}> : () -> ()
    %cst_33 = arith.constant dense<0.000000e+00> : vector<1x16x128xf32>
    %51 = tpu.matmul %2, %50, %cst_33 {dimension_numbers = #tpu.dot_dimension_numbers<[2], [1], [1], [2], [0, 0, 0, 1, 1, 2], [0], [0]>} : vector<1x16x16xf32>, vector<1x16x128xf32>, vector<1x16x128xf32> -> vector<1x16x128xf32>
    "tpu.trace_stop"() : () -> ()
    %52 = vector.shape_cast %51 : vector<1x16x128xf32> to vector<16x128xf32>
    %cst_34 = arith.constant dense<0.000000e+00> : vector<16x384xf32>
    %53 = tpu.matmul %52, %8, %cst_34 {dimension_numbers = #tpu.dot_dimension_numbers<[1], [0], [0], [1], [0, 0, 1, 1], [], []>} : vector<16x128xf32>, vector<128x384xf32>, vector<16x384xf32> -> vector<16x384xf32>
    %54 = vector.broadcast %9 : vector<1x384xf32> to vector<16x384xf32>
    %55 = arith.addf %53, %54 : vector<16x384xf32>
    %cst_35 = arith.constant dense<0.000000e+00> : vector<16x256xf32>
    %56 = tpu.matmul %49, %10, %cst_35 {dimension_numbers = #tpu.dot_dimension_numbers<[1], [0], [0], [1], [0, 0, 1, 1], [], []>} : vector<16x128xf32>, vector<128x256xf32>, vector<16x256xf32> -> vector<16x256xf32>
    %57 = vector.broadcast %11 : vector<1x256xf32> to vector<16x256xf32>
    %58 = arith.addf %56, %57 : vector<16x256xf32>
    %59 = vector.extract_strided_slice %55 {offsets = [0, 0], sizes = [16, 256], strides = [1, 1]} : vector<16x384xf32> to vector<16x256xf32>
    %60 = arith.addf %59, %58 : vector<16x256xf32>
    %61 = arith.negf %60 : vector<16x256xf32>
    %62 = math.exp %61 : vector<16x256xf32>
    %cst_36 = arith.constant 1.000000e+00 : f32
    %63 = vector.broadcast %cst_36 : f32 to vector<16x256xf32>
    %64 = arith.addf %63, %62 : vector<16x256xf32>
    %65 = arith.divf %63, %64 : vector<16x256xf32>
    %66 = vector.extract_strided_slice %65 {offsets = [0, 0], sizes = [16, 128], strides = [1, 1]} : vector<16x256xf32> to vector<16x128xf32>
    %67 = vector.extract_strided_slice %65 {offsets = [0, 128], sizes = [16, 128], strides = [1, 1]} : vector<16x256xf32> to vector<16x128xf32>
    %68 = vector.extract_strided_slice %55 {offsets = [0, 256], sizes = [16, 128], strides = [1, 1]} : vector<16x384xf32> to vector<16x128xf32>
    %69 = arith.mulf %67, %49 : vector<16x128xf32>
    %cst_37 = arith.constant dense<0.000000e+00> : vector<16x128xf32>
    %70 = tpu.matmul %69, %12, %cst_37 {dimension_numbers = #tpu.dot_dimension_numbers<[1], [0], [0], [1], [0, 0, 1, 1], [], []>} : vector<16x128xf32>, vector<128x128xf32>, vector<16x128xf32> -> vector<16x128xf32>
    %71 = arith.addf %68, %70 : vector<16x128xf32>
    %72 = vector.broadcast %13 : vector<1x128xf32> to vector<16x128xf32>
    %73 = arith.addf %71, %72 : vector<16x128xf32>
    %74 = math.tanh %73 : vector<16x128xf32>
    %75 = arith.mulf %74, %66 : vector<16x128xf32>
    %cst_38 = arith.constant 1.000000e+00 : f32
    %76 = vector.broadcast %cst_38 : f32 to vector<16x128xf32>
    %77 = arith.subf %76, %66 : vector<16x128xf32>
    %78 = arith.mulf %49, %77 : vector<16x128xf32>
    %79 = arith.addf %75, %78 : vector<16x128xf32>
    %80 = vector.shape_cast %79 : vector<16x128xf32> to vector<1x16x128xf32>
    %c0_39 = arith.constant 0 : index
    %c0_40 = arith.constant 0 : index
    %c0_41 = arith.constant 0 : index
    %81 = vector.load %arg18[%c0_39, %c0_40, %c0_41] : memref<1x16x128xf32, #tpu.memory_space<vmem>>, vector<1x16x128xf32>
    tpu.vector_store %arg18[%c0_39, %c0_40, %c0_41], %80 {strides = array<i32>} : memref<1x16x128xf32, #tpu.memory_space<vmem>>, vector<1x16x128xf32>,
    %c0_42 = arith.constant 0 : index
    %c0_43 = arith.constant 0 : index
    %82 = vector.load %arg13[%c0_42, %c0_43] : memref<128x256xf32, #tpu.memory_space<vmem>>, vector<128x256xf32>
    %cst_44 = arith.constant dense<0.000000e+00> : vector<16x256xf32>
    %83 = tpu.matmul %79, %82, %cst_44 {dimension_numbers = #tpu.dot_dimension_numbers<[1], [0], [0], [1], [0, 0, 1, 1], [], []>} : vector<16x128xf32>, vector<128x256xf32>, vector<16x256xf32> -> vector<16x256xf32>
    %c0_45 = arith.constant 0 : index
    %c0_46 = arith.constant 0 : index
    %84 = vector.load %arg14[%c0_45, %c0_46] : memref<1x256xf32, #tpu.memory_space<vmem>>, vector<1x256xf32>
    %85 = vector.broadcast %84 : vector<1x256xf32> to vector<16x256xf32>
    %86 = arith.addf %83, %85 : vector<16x256xf32>
    %87 = vector.extract_strided_slice %86 {offsets = [0, 0], sizes = [16, 128], strides = [1, 1]} : vector<16x256xf32> to vector<16x128xf32>
    %88 = math.tanh %87 : vector<16x128xf32>
    %89 = vector.extract_strided_slice %86 {offsets = [0, 128], sizes = [16, 1], strides = [1, 1]} : vector<16x256xf32> to vector<16x1xf32>
    %90 = arith.negf %89 : vector<16x1xf32>
    %91 = math.exp %90 : vector<16x1xf32>
    %cst_47 = arith.constant 1.000000e+00 : f32
    %92 = vector.broadcast %cst_47 : f32 to vector<16x1xf32>
    %93 = arith.addf %92, %91 : vector<16x1xf32>
    %94 = arith.divf %92, %93 : vector<16x1xf32>
    %95 = arith.mulf %4, %94 : vector<16x1xf32>
    %96 = vector.broadcast %95 : vector<16x1xf32> to vector<16x128xf32>
    %97 = arith.mulf %96, %88 : vector<16x128xf32>
    %98 = vector.shape_cast %97 : vector<16x128xf32> to vector<1x16x128xf32>
    %cst_48 = arith.constant 0.000000e+00 : f32
    %99 = vector.broadcast %cst_48 : f32 to vector<1x16x1xf32>
    %100 = arith.cmpf ogt, %3, %99 : vector<1x16x1xf32>
    %cst_49 = arith.constant -1.000000e+09 : f32
    %101 = vector.shape_cast %100 : vector<1x16x1xi1> to vector<1x16x1xi1>
    %102 = vector.broadcast %101 : vector<1x16x1xi1> to vector<1x16x128xi1>
    %103 = vector.broadcast %cst_49 : f32 to vector<1x16x128xf32>
    %104 = arith.select %102, %98, %103 : vector<1x16x128xi1>, vector<1x16x128xf32>
    %cst_50 = arith.constant dense<0.000000e+00> : vector<1x128xf32>
    %105 = vector.multi_reduction <add>, %98, %cst_50 [1] : vector<1x16x128xf32> to vector<1x128xf32>
    %106 = vector.shape_cast %105 : vector<1x128xf32> to vector<1x1x128xf32>
    %107 = vector.broadcast %5 : vector<1x1x1xf32> to vector<1x1x128xf32>
    %108 = arith.mulf %106, %107 : vector<1x1x128xf32>
    %cst_51 = arith.constant dense<0xFF800000> : vector<1x128xf32>
    %109 = vector.multi_reduction <maximumf>, %104, %cst_51 [1] : vector<1x16x128xf32> to vector<1x128xf32>
    %110 = vector.shape_cast %109 : vector<1x128xf32> to vector<1x1x128xf32>
    %111 = arith.addf %108, %110 : vector<1x1x128xf32>
    %112 = vector.shape_cast %111 : vector<1x1x128xf32> to vector<1x128xf32>
    %c0_52 = arith.constant 0 : index
    %c0_53 = arith.constant 0 : index
    %113 = vector.load %arg15[%c0_52, %c0_53] : memref<128x128xf32, #tpu.memory_space<vmem>>, vector<128x128xf32>
    %cst_54 = arith.constant dense<0.000000e+00> : vector<1x128xf32>
    %114 = tpu.matmul %112, %113, %cst_54 {dimension_numbers = #tpu.dot_dimension_numbers<[1], [0], [0], [1], [0, 0, 1, 1], [], []>} : vector<1x128xf32>, vector<128x128xf32>, vector<1x128xf32> -> vector<1x128xf32>
    %c0_55 = arith.constant 0 : index
    %c0_56 = arith.constant 0 : index
    %115 = vector.load %arg16[%c0_55, %c0_56] : memref<1x128xf32, #tpu.memory_space<vmem>>, vector<1x128xf32>
    %116 = arith.addf %114, %115 : vector<1x128xf32>
    %117 = vector.shape_cast %116 : vector<1x128xf32> to vector<1x1x128xf32>
    %c0_57 = arith.constant 0 : index
    %c0_58 = arith.constant 0 : index
    %c0_59 = arith.constant 0 : index
    %118 = vector.load %arg17[%c0_57, %c0_58, %c0_59] : memref<1x1x128xf32, #tpu.memory_space<vmem>>, vector<1x1x128xf32>
    tpu.vector_store %arg17[%c0_57, %c0_58, %c0_59], %117 {strides = array<i32>} : memref<1x1x128xf32, #tpu.memory_space<vmem>>, vector<1x1x128xf32>,
    return
  }
  func.func @transform_0(%arg0: i32) -> (i32, i32, i32) {
    %c0_i32 = arith.constant 0 : i32
    %c0_i32_0 = arith.constant 0 : i32
    %c0_i32_1 = arith.constant 0 : i32
    return %arg0, %c0_i32, %c0_i32_0 : i32, i32, i32
  }
  func.func @transform_1(%arg0: i32) -> (i32, i32, i32) {
    %c0_i32 = arith.constant 0 : i32
    %c0_i32_0 = arith.constant 0 : i32
    %c0_i32_1 = arith.constant 0 : i32
    return %arg0, %c0_i32, %c0_i32_0 : i32, i32, i32
  }
  func.func @transform_2(%arg0: i32) -> (i32, i32, i32) {
    %c0_i32 = arith.constant 0 : i32
    %c0_i32_0 = arith.constant 0 : i32
    %c0_i32_1 = arith.constant 0 : i32
    return %arg0, %c0_i32, %c0_i32_0 : i32, i32, i32
  }
  func.func @transform_3(%arg0: i32) -> (i32, i32, i32) {
    %c0_i32 = arith.constant 0 : i32
    %c0_i32_0 = arith.constant 0 : i32
    %c0_i32_1 = arith.constant 0 : i32
    return %arg0, %c0_i32, %c0_i32_0 : i32, i32, i32
  }
  func.func @transform_4(%arg0: i32) -> (i32, i32) {
    %c0_i32 = arith.constant 0 : i32
    %c0_i32_0 = arith.constant 0 : i32
    %c0_i32_1 = arith.constant 0 : i32
    return %c0_i32, %c0_i32_0 : i32, i32
  }
  func.func @transform_5(%arg0: i32) -> (i32, i32) {
    %c0_i32 = arith.constant 0 : i32
    %c0_i32_0 = arith.constant 0 : i32
    %c0_i32_1 = arith.constant 0 : i32
    return %c0_i32, %c0_i32_0 : i32, i32
  }
  func.func @transform_6(%arg0: i32) -> (i32, i32) {
    %c0_i32 = arith.constant 0 : i32
    %c0_i32_0 = arith.constant 0 : i32
    %c0_i32_1 = arith.constant 0 : i32
    return %c0_i32, %c0_i32_0 : i32, i32
  }
  func.func @transform_7(%arg0: i32) -> (i32, i32) {
    %c0_i32 = arith.constant 0 : i32
    %c0_i32_0 = arith.constant 0 : i32
    %c0_i32_1 = arith.constant 0 : i32
    return %c0_i32, %c0_i32_0 : i32, i32
  }
  func.func @transform_8(%arg0: i32) -> (i32, i32) {
    %c0_i32 = arith.constant 0 : i32
    %c0_i32_0 = arith.constant 0 : i32
    %c0_i32_1 = arith.constant 0 : i32
    return %c0_i32, %c0_i32_0 : i32, i32
  }
  func.func @transform_9(%arg0: i32) -> (i32, i32) {
    %c0_i32 = arith.constant 0 : i32
    %c0_i32_0 = arith.constant 0 : i32
    %c0_i32_1 = arith.constant 0 : i32
    return %c0_i32, %c0_i32_0 : i32, i32
  }
  func.func @transform_10(%arg0: i32) -> (i32, i32) {
    %c0_i32 = arith.constant 0 : i32
    %c0_i32_0 = arith.constant 0 : i32
    %c0_i32_1 = arith.constant 0 : i32
    return %c0_i32, %c0_i32_0 : i32, i32
  }
  func.func @transform_11(%arg0: i32) -> (i32, i32) {
    %c0_i32 = arith.constant 0 : i32
    %c0_i32_0 = arith.constant 0 : i32
    %c0_i32_1 = arith.constant 0 : i32
    return %c0_i32, %c0_i32_0 : i32, i32
  }
  func.func @transform_12(%arg0: i32) -> (i32, i32) {
    %c0_i32 = arith.constant 0 : i32
    %c0_i32_0 = arith.constant 0 : i32
    %c0_i32_1 = arith.constant 0 : i32
    return %c0_i32, %c0_i32_0 : i32, i32
  }
  func.func @transform_13(%arg0: i32) -> (i32, i32) {
    %c0_i32 = arith.constant 0 : i32
    %c0_i32_0 = arith.constant 0 : i32
    %c0_i32_1 = arith.constant 0 : i32
    return %c0_i32, %c0_i32_0 : i32, i32
  }
  func.func @transform_14(%arg0: i32) -> (i32, i32) {
    %c0_i32 = arith.constant 0 : i32
    %c0_i32_0 = arith.constant 0 : i32
    %c0_i32_1 = arith.constant 0 : i32
    return %c0_i32, %c0_i32_0 : i32, i32
  }
  func.func @transform_15(%arg0: i32) -> (i32, i32) {
    %c0_i32 = arith.constant 0 : i32
    %c0_i32_0 = arith.constant 0 : i32
    %c0_i32_1 = arith.constant 0 : i32
    return %c0_i32, %c0_i32_0 : i32, i32
  }
  func.func @transform_16(%arg0: i32) -> (i32, i32, i32) {
    %c0_i32 = arith.constant 0 : i32
    %c0_i32_0 = arith.constant 0 : i32
    %c0_i32_1 = arith.constant 0 : i32
    return %arg0, %c0_i32, %c0_i32_0 : i32, i32, i32
  }
  func.func @transform_17(%arg0: i32) -> (i32, i32, i32) {
    %c0_i32 = arith.constant 0 : i32
    %c0_i32_0 = arith.constant 0 : i32
    %c0_i32_1 = arith.constant 0 : i32
    return %arg0, %c0_i32, %c0_i32_0 : i32, i32, i32
  }
}

</mosaic_0001>

<bundles_post_ra>
// kernel: tpu_custom_call.1
= control target key start
LH: loop header
LB: loop body
LE: loop exit
PB: predicated region body
PF: predicated region fallthrough
CT: control target
= control target key end

     0   :  { %s4170_s0 = inlined_call_operand.vmem [shape: f32[2,16,32], index: 0, kind: input, shape index: {}]   ;;  %s4171_s1 = inlined_call_operand.hbm [shape: f32[2,16,16], index: 1, kind: input, shape index: {}]   ;;  %s4172_s2 = inlined_call_operand.vmem [shape: f32[2,16,1], index: 2, kind: input, shape index: {}]   ;;  %s4173_s3 = inlined_call_operand.vmem [shape: f32[2,1,1], index: 3, kind: input, shape index: {}]   ;;  %s4174_s4 = inlined_call_operand.hbm [shape: f32[32,128], index: 4, kind: input, shape index: {}]   ;;  %s4175_s5 = inlined_call_operand.vmem [shape: f32[1,128], index: 5, kind: input, shape index: {}]   ;;  %s4176_s6 = inlined_call_operand.hbm [shape: f32[128,384], index: 6, kind: input, shape index: {}]   ;;  %s4177_s7 = inlined_call_operand.vmem [shape: f32[1,384], index: 7, kind: input, shape index: {}]   ;;  %s4178_s8 = inlined_call_operand.hbm [shape: f32[128,256], index: 8, kind: input, shape index: {}]   ;;  %s4179_s9 = inlined_call_operand.vmem [shape: f32[1,256], index: 9, kind: input, shape index: {}]   ;;  %s4180_s10 = inlined_call_operand.hbm [shape: f32[128,128], index: 10, kind: input, shape index: {}]   ;;  %s4181_s11 = inlined_call_operand.vmem [shape: f32[1,128], index: 11, kind: input, shape index: {}]   ;;  %s4182_s12 = inlined_call_operand.hbm [shape: f32[128,256], index: 12, kind: input, shape index: {}]   ;;  %s4183_s13 = inlined_call_operand.vmem [shape: f32[1,256], index: 13, kind: input, shape index: {}]   ;;  %s4184_s14 = inlined_call_operand.hbm [shape: f32[128,128], index: 14, kind: input, shape index: {}]   ;;  %s4185_s15 = inlined_call_operand.vmem [shape: f32[1,128], index: 15, kind: input, shape index: {}]   ;;  %s4186_s16 = inlined_call_operand.hbm [shape: f32[2,1,128], index: 16, kind: output, shape index: {0}]   ;;  %s4187_s17 = inlined_call_operand.hbm [shape: f32[2,16,128], index: 17, kind: output, shape index: {1}]  }
   0x1   :  { %4242 = sst [smem:[#allocation58_spill]] %s4170_s0 }
   0x2   :  { %4243 = sst [smem:[#allocation59_spill]] %s4171_s1 }
   0x3   :  { %4244 = sst [smem:[#allocation60_spill]] %s4172_s2 }
   0x4   :  { %4245 = sst [smem:[#allocation61_spill]] %s4173_s3 }
   0x5   :  { %4246 = sst [smem:[#allocation62_spill]] %s4174_s4 }
   0x6   :  { %4247 = sst [smem:[#allocation63_spill]] %s4176_s6 }
   0x7   :  { %4248 = sst [smem:[#allocation64_spill]] %s4178_s8 }
   0x8   :  { %4249 = sst [smem:[#allocation65_spill]] %s4180_s10 }
   0x9   :  { %4250 = sst [smem:[#allocation66_spill]] %s4182_s12 }
   0xa   :  { %4251 = sst [smem:[#allocation67_spill]] %s4184_s14 }
   0xb   :  { %4252 = sst [smem:[#allocation68_spill]] %s4185_s15 }
   0xc   :  { %4253 = sst [smem:[#allocation69_spill]] %s4186_s16 }
   0xd   :  { %4254 = sst [smem:[#allocation70_spill]] %s4187_s17 }
   0xe   :  { %23 = vsyncpa [#allocation3], 0 }
   0xf   :  { %25 = vsyncpa [#allocation3 + $0x1], 0 }
  0x10   :  { %26 = vsyncpa [#allocation6], 0 }
  0x11   :  { %27 = vsyncpa [#allocation9], 0 }
  0x12   :  { %28 = vsyncpa [#allocation12], 0 }
  0x13   :  { %29 = vsyncpa [#allocation4], 0 }
  0x14   :  { %31 = vsyncpa [#allocation4 + $0x1], 0 }
  0x15   :  { %32 = vsyncpa [#allocation16], 0 }
  0x16   :  { %34 = vsyncpa [#allocation16 + $0x1], 0  ;;  %s3258_s24 = smov 0   ;;  %s3260_s25 = smov 0  }
  0x17   :  { %s3262_s26 = smov 0   ;;  %s3264_s27 = smov 0  }
  0x18 LB: > { %4255 = sst [smem:[#allocation23_spill]] %s3142_s26  ;;  %s3148_s28 = smov [#allocation5]   ;;  %s3146_s27 = sphi %s3264_s27, %s4358_s27   ;;  %s3142_s26 = sphi %s3262_s26, %s4360_s26   ;;  %s3138_s25 = sphi %s3260_s25, %s4362_s25   ;;  %s3134_s24 = sphi %s3258_s24, %s4361_s24  }
  0x19   : > { %s465_s29 = sshll.u32 %s3148_s28, 4  ;;  %s3279_s0 = sadd.s32 4294967295, %s3146_s27   ;;  %s466_s29 = int_to_ptr.vmem [resolvable:$true] %s465_s29 }
  0x1a   : > { %p2318_p0 = scmp.ge.s32.totalorder %s3146_s27, 1  ;;  %p4196_p1 = scmp.eq.s32.totalorder %s3279_s0, 0 }
  0x1b   : > { %p453_p2 = scmp.lt.s32.totalorder %s3146_s27, 3  ;;  %s3149_s18 = smov [#allocation8]  }
  0x1c   : > { %s497_s19 = sshll.u32 %s3149_s18, 4  ;;  %s3150_s20 = smov [#allocation11]   ;;  %s3297_s19 = int_to_ptr.vmem [resolvable:$true] %s497_s19 }
  0x1d   : > { %p3284_p3 = pnand %p2318_p0, %p453_p2  ;;  %s3299_s21 = sshll.u32 %s3150_s20, 4  ;;  %s530_s21 = int_to_ptr.vmem [resolvable:$true] %s3299_s21 }
  0x1e   : > { %s2867_s23 = scalar_lea.vmem %s466_s29, 512  ;;  %p2875_p11 = scmp.lt.s32.totalorder %s466_s29, %s466_s29 }
  0x1f   : > { %s4256_s30 = scalar_select %p3284_p3, 1, 0 }
  0x20   : > { %p2703_p5 = pneg %p3284_p3  ;;  %p2868_p8 = scmp.ne.s32.totalorder %s466_s29, %s2867_s23 }
  0x21   : > { %p2876_p12 = scmp.lt.s32.totalorder %s2867_s23, %s2867_s23 }
  0x22   : > { %p3293_p6 = pnand %p2703_p5, %p4196_p1 }
  0x23   : > { %p2877_p13 = por %p2876_p12, %p2875_p11 }
  0x24   : > { %p3303_p7 = pneg %p3293_p6 }
  0x26   : > { %p2870_p9 = pnand %p2868_p8, %p3303_p7 }
  0x28   : > { %p2871_p10 = pneg %p2870_p9 }
  0x2a   : > { %p2878_p0 = pnand %p2877_p13, %p2871_p10 }
  0x2c   : > { %2881 = shalt.err (!%p2878_p0)
}
  0x2d   : > { %s4191_s28 = smov 128   ;;  %s4193_s18 = smov 8  }
  0x2e   : > { %s4259_s4 = sld [smem:[#allocation62_spill]]  ;;  %s2893_s15 = scalar_lea.vmem %s3297_s19, 4096 }
  0x2f   : > { %p2894_p2 = scmp.ne.s32.totalorder %s3297_s19, %s2893_s15  ;;  %p2901_p9 = scmp.lt.s32.totalorder %s3297_s19, %s3297_s19 }
  0x30   : > { %p2902_p10 = scmp.lt.s32.totalorder %s2893_s15, %s2893_s15 }
  0x31   : > { %p2896_p5 = pnand %p2894_p2, %p3303_p7 }
  0x32   : > { %p2903_p11 = por %p2902_p10, %p2901_p9 }
  0x33   : > { %p2897_p8 = pneg %p2896_p5 }
  0x34   : > { %2706 = dma.hbm_to_vmem [thread:$0]  (!%p3293_p6), %s4259_s4, 512, %s466_s29, [#allocation6], %s4191_s28, %s4191_s28, %s4193_s18  }
  0x35   : > { %p2904_p12 = pnand %p2903_p11, %p2897_p8 }
  0x37   : > { %2907 = shalt.err (!%p2904_p12)
}
  0x38   : > { %s3153_s23 = smov 256   ;;  %s3154_s17 = smov 16  }
  0x39   : > { %s4260_s8 = sld [smem:[#allocation64_spill]]  ;;  %s2919_s20 = scalar_lea.vmem %s530_s21, 4096 }
  0x3a   : > { %p2920_p13 = scmp.ne.s32.totalorder %s530_s21, %s2919_s20  ;;  %p2927_p5 = scmp.lt.s32.totalorder %s530_s21, %s530_s21 }
  0x3b   : > { %p2928_p8 = scmp.lt.s32.totalorder %s2919_s20, %s2919_s20 }
  0x3c   : > { %p2922_p0 = pnand %p2920_p13, %p3303_p7 }
  0x3d   : > { %p2929_p9 = por %p2928_p8, %p2927_p5 }
  0x3e   : > { %p2923_p2 = pneg %p2922_p0 }
  0x3f   : > { %2712 = dma.hbm_to_vmem [thread:$0]  (!%p3293_p6), %s4260_s8, 4096, %s3297_s19, [#allocation9], %s3153_s23, %s3153_s23, %s3154_s17  }
  0x40   : > { %p2930_p10 = pnand %p2929_p9, %p2923_p2 }
  0x42   : > { %2933 = shalt.err (!%p2930_p10)
}
  0x43   : > { %s4261_s12 = sld [smem:[#allocation66_spill]]  ;;  %s3155_s16 = smov [#allocation7]  }
  0x44   : > { %s481_s19 = sshll.u32 %s3155_s16, 4  ;;  %s482_s19 = int_to_ptr.vmem [resolvable:$true] %s481_s19 }
  0x45   : > { %s2945_s29 = scalar_lea.vmem %s482_s19, 6144  ;;  %p2953_p0 = scmp.lt.s32.totalorder %s482_s19, %s482_s19 }
  0x46   : > { %p2946_p11 = scmp.ne.s32.totalorder %s482_s19, %s2945_s29  ;;  %p2954_p4 = scmp.lt.s32.totalorder %s2945_s29, %s2945_s29 }
  0x48   : > { %p2948_p12 = pnand %p2946_p11, %p3303_p7  ;;  %p2955_p5 = por %p2954_p4, %p2953_p0 }
  0x49   : > { %2718 = dma.hbm_to_vmem [thread:$0]  (!%p3293_p6), %s4261_s12, 4096, %s530_s21, [#allocation12], %s3153_s23, %s3153_s23, %s3154_s17  }
  0x4a   : > { %p2949_p13 = pneg %p2948_p12 }
  0x4c   : > { %p2956_p2 = pnand %p2955_p5, %p2949_p13 }
  0x4e   : > { %2959 = shalt.err (!%p2956_p2)
}
  0x4f   : > { %s3156_s20 = smov 384   ;;  %s3157_s18 = smov 24  }
  0x50   : > { %s4262_s6 = sld [smem:[#allocation63_spill]]  ;;  %s3158_s21 = smov [#allocation10]  }
  0x51   : > { %s513_s23 = sshll.u32 %s3158_s21, 4  ;;  %s3159_s15 = smov [#allocation13]   ;;  %s514_s23 = int_to_ptr.vmem [resolvable:$true] %s513_s23 }
  0x52   : > { %s545_s16 = sshll.u32 %s3159_s15, 4  ;;  %s2971_s4 = scalar_lea.vmem %s514_s23, 2048  ;;  %s546_s16 = int_to_ptr.vmem [resolvable:$true] %s545_s16 }
  0x53   : > { %p2972_p8 = scmp.ne.s32.totalorder %s514_s23, %s2971_s4  ;;  %p2979_p10 = scmp.lt.s32.totalorder %s514_s23, %s514_s23 }
  0x54   : > { %p2980_p11 = scmp.lt.s32.totalorder %s2971_s4, %s2971_s4 }
  0x55   : > { %p2974_p4 = pnand %p2972_p8, %p3303_p7 }
  0x56   : > { %2709 = dma.hbm_to_vmem [thread:$0]  (!%p3293_p6), %s4262_s6, 6144, %s482_s19, [#allocation6], %s3156_s20, %s3156_s20, %s3157_s18  }
  0x57   : > { %p2975_p9 = pneg %p2974_p4  ;;  %p2981_p12 = por %p2980_p11, %p2979_p10 }
  0x59   : > { %p2982_p13 = pnand %p2981_p12, %p2975_p9 }
  0x5b   : > { %2985 = shalt.err (!%p2982_p13)
}
  0x5c   : > { %s4263_s29 = smov 8   ;;  %s4264_s18 = smov 128  }
  0x5d   : > { %s4265_s10 = sld [smem:[#allocation65_spill]]  ;;  %s2997_s28 = scalar_lea.vmem %s546_s16, 2048 }
  0x5e   : > { %p2998_p0 = scmp.ne.s32.totalorder %s546_s16, %s2997_s28  ;;  %p3005_p8 = scmp.lt.s32.totalorder %s546_s16, %s546_s16 }
  0x5f   : > { %p3006_p4 = scmp.lt.s32.totalorder %s2997_s28, %s2997_s28 }
  0x60   : > { %p3000_p5 = pnand %p2998_p0, %p3303_p7 }
  0x61   : > { %p3007_p10 = por %p3006_p4, %p3005_p8 }
  0x62   : > { %p3001_p2 = pneg %p3000_p5 }
  0x63   : > { %2715 = dma.hbm_to_vmem [thread:$0]  (!%p3293_p6), %s4265_s10, 2048, %s514_s23, [#allocation9], %s4264_s18, %s4264_s18, %s4263_s29  }
  0x64   : > { %p3008_p9 = pnand %p3007_p10, %p3001_p2 }
  0x66   : > { %3011 = shalt.err (!%p3008_p9)
}
  0x67   : > { %s4266_s14 = sld [smem:[#allocation67_spill]]  ;;  %s2317_s1 = sadd.s32 4294967294, %s3146_s27  }
  0x68   : > { %s3366_s22 = sadd.s32 1, %s3146_s27   ;;  %s73_s23 = sadd.s32 1, %s3142_s26 }
  0x69   : > { %4267 = sst [smem:[#allocation24_spill]] %s3366_s22  ;;  %s70_s21 = ssub.s32 %s3146_s27, %s3366_s22 }
  0x6a   : > { %p71_p7 = scmp.eq.s32.totalorder %s70_s21, 0  ;;  %p80_p11 = scmp.ne.s32.totalorder %s3142_s26, %s3138_s25 }
  0x6b   : > { %p81_p12 = scmp.eq.s32.totalorder %s3146_s27, 0  ;;  %p86_p13 = scmp.ne.s32.totalorder %s3138_s25, %s3134_s24 }
  0x6c   : > { %s3377_s15 = scalar_select %p71_p7, %s3142_s26, %s73_s23  }
  0x6d   : > { %2721 = dma.hbm_to_vmem [thread:$0]  (!%p3293_p6), %s4266_s14, 2048, %s546_s16, [#allocation12], %s4264_s18, %s4264_s18, %s4263_s29  }
  0x6e   : > { %4268 = sst [smem:[#allocation25_spill]] %s3377_s15  ;;  %p3379_p0 = por %p81_p12, %p80_p11 }
  0x6f   : > { %p3385_p6 = por %p4196_p1, %p86_p13  ;;  %p414_p5 = scmp.eq.s32.totalorder %s3279_s0, 1 }
  0x70   : > { %p420_p2 = scmp.eq.s32.totalorder %s2317_s1, 1  ;;  %p2739_p8 = scmp.lt.s32.totalorder %s3146_s27, 2 }
  0x71   : > { %s4270_s16 = scalar_select %p3385_p6, 1, 0 }
  0x72   : > { %s570_s20 = sand.u32 1, %s3142_s26   ;;  %p3392_p4 = por %p414_p5, %p80_p11 }
  0x73   : > { %p3396_p10 = por %p420_p2, %p86_p13  ;;  %s2326_s17 = sshll.u32 %s570_s20, 4 }
  0x74   : > { %s4271_s28 = scalar_select %p3392_p4, 1, 0 }
  0x75   : > { %s4272_s4 = scalar_select %p3396_p10, 1, 0 }
  0x76   : > { %s2366_s21 = sshll.u32 %s3146_s27, 8  ;;  %s4273_s8 = sld [smem:[#allocation59_spill]] }
  0x77   : > { %s574_s1 = scalar_lea.vmem [#allocation2], %s2326_s17  ;;  %p3410_p9 = pnand %p2739_p8, %p3379_p0 }
  0x78   : > { %s581_s12 = sshll.u32 %s574_s1, 4  ;;  %s3414_s15 = scalar_lea.sflag [#allocation3], %s570_s20  ;;  %s3406_s12 = int_to_ptr.vmem [resolvable:$true] %s581_s12 }
  0x79   : > { %p3014_p11 = pneg %p3410_p9 }
  0x7c   : > { %s3404_s10 = scalar_lea.hbm %s4273_s8, %s2366_s21  ;;  %s3017_s17 = scalar_lea.hbm %s4273_s8, 512 }
  0x7d   : > { %s3012_s26 = scalar_lea.hbm %s3404_s10, 256  ;;  %p3018_p0 = scmp.lt.s32.totalorder %s3404_s10, %s4273_s8 }
  0x7e   : > { %p3013_p7 = scmp.ne.s32.totalorder %s3404_s10, %s3012_s26  ;;  %p3019_p5 = scmp.lt.s32.totalorder %s3017_s17, %s3012_s26 }
  0x80   : > { %p3015_p12 = pnand %p3014_p11, %p3013_p7  ;;  %p3020_p2 = por %p3019_p5, %p3018_p0 }
  0x82   : > { %p3016_p13 = pneg %p3015_p12 }
  0x84   : > { %p3021_p8 = pnand %p3020_p2, %p3016_p13 }
  0x86   : > { %3024 = shalt.err (!%p3021_p8)
}
  0x87   : > { %s3025_s19 = scalar_lea.vmem %s3406_s12, 256  ;;  %s3160_s20 = smov [#allocation2]  }
  0x88   : > { %p3026_p1 = scmp.ne.s32.totalorder %s3406_s12, %s3025_s19  ;;  %s3030_s22 = sshll.u32 %s3160_s20, 4  ;;  %s3031_s22 = int_to_ptr.vmem [resolvable:$false] %s3030_s22 }
  0x89   : > { %s3032_s6 = scalar_lea.vmem %s3031_s22, 512  ;;  %p3033_p12 = scmp.lt.s32.totalorder %s3406_s12, %s3031_s22 }
  0x8a   : > { %p3028_p10 = pnand %p3026_p1, %p3014_p11  ;;  %p3034_p4 = scmp.lt.s32.totalorder %s3032_s6, %s3025_s19 }
  0x8c   : > { %p3029_p7 = pneg %p3028_p10  ;;  %p3035_p6 = por %p3034_p4, %p3033_p12 }
  0x8e   : > { %p3036_p3 = pnand %p3035_p6, %p3029_p7 }
  0x90   : > { %3039 = shalt.err (!%p3036_p3)
}
  0x91   : > { %2725 = dma.hbm_to_vmem [thread:$0]  (!%p3410_p9), %s3404_s10, 256, %s3406_s12, %s3414_s15, %s4264_s18, %s4264_s18, %s4263_s29  }
  0x92   : > { %p4275_p1 = scmp.ne.s32.totalorder %s4256_s30, 0 }
  0x94   : > { %607 = sbr.rel (%p4275_p1) target bundleno = 2345 (0x929), region = 84 }
  0x99   : > { %s3441_s26 = sand.u32 1, %s3138_s25   ;;  %p4276_p3 = scmp.ne.s32.totalorder %s4270_s16, 0 }
  0x9a   : > { %s2330_s22 = sshll.u32 %s3441_s26, 4  ;;  %s610_s21 = scalar_lea.sflag [#allocation3], %s3441_s26 }
  0x9b   : > { %s3447_s14 = scalar_lea.vmem [#allocation2], %s2330_s22 }
  0x9c   : > { %3109 = dma.done.wait (%p4276_p3), %s610_s21, 256  }
  0x9d   : > { %3111 = vsyncadd (%p4276_p3), %s610_s21, 4294967040  ;;  %p4277_p6 = scmp.eq.s32.totalorder %s3279_s0, 0 }
  0x9f   : > { %3113 = dma.done.wait (%p4277_p6), [#allocation6], 6656   ;;  %p4278_p4 = pmov %p4277_p6 }
  0xa1   : > { %3115 = vsyncadd (%p4278_p4), [#allocation6], 4294960640  ;;  %p4279_p10 = pmov %p4278_p4 }
  0xa2   : > { %p4280_p9 = pmov %p4278_p4 }
  0xa3   : > { %3117 = dma.done.wait (%p4279_p10), [#allocation9], 6144  }
  0xa4   : > { %3119 = vsyncadd (%p4280_p9), [#allocation9], 4294961152  ;;  %p4281_p11 = pmov %p4278_p4 }
  0xa5   : > { %p4282_p13 = pmov %p4278_p4 }
  0xa6   : > { %3121 = dma.done.wait (%p4281_p11), [#allocation12], 6144  }
  0xa7   : > { %3123 = vsyncadd (%p4282_p13), [#allocation12], 4294961152  ;;  %p705_p0 = scmp.lt.s32.totalorder %s3279_s0, 1  ;;  %v4202_v0 = vmov 0   ;;  %s4283_s18 = sld [smem:[#allocation58_spill]]  ;;  %vm835_vm0 = vcmask 261120  }
  0xa8   : > { %2796 = vset.pattern.permute.xlu0 %v4202_v0  ;;  %2797 = vset.pattern.permute.xlu1 %v4202_v0  ;;  %s4284_s2 = sld [smem:[#allocation60_spill]]  ;;  %v728_v1 = vld [vmem:[#allocation5 + $0x18] sm:$0xff]  ;;  %v727_v2 = vld [vmem:[#allocation5 + $0x10] sm:$0xff]  ;;  %v726_v4 = vld [vmem:[#allocation5 + $0x8] sm:$0xff]  ;;  %vm931_vm2 = vcmask 130048   ;;  %vm3163_vm4 = vmmov 0  }
  0xa9   : > { %s3469_s10 = scalar_select %p705_p0, %s3279_s0, 1  ;;  %2473 = vmatprep.subr.mxu0 %v728_v1  ;;  %v725_v6 = vld [vmem:[#allocation5] sm:$0xff]  ;;  %v3494_v12 = vld [vmem:[#allocation7 + $0x178] sm:$0xff]  ;;  %v3502_v14 = vld [vmem:[#allocation7 + $0x148] sm:$0xff] }
  0xaa   : > { %2474 = vmatpush3.msra.mxu0 %v728_v1  ;;  %s4285_s3 = sld [smem:[#allocation61_spill]]  ;;  %v3490_v11 = vld [vmem:[%s3447_s14] sm:$0xff]  ;;  %v3510_v16 = vld [vmem:[#allocation7 + $0x118] sm:$0xff]  ;;  %v3518_v18 = vld [vmem:[#allocation7 + $0xe8] sm:$0xff]  ;;  %s2100_s21 = scalar_lea.sflag [#allocation16], %s3441_s26 }
  0xab   : > { %s2367_s12 = sshll.u32 %s3469_s10, 4  ;;  %2475 = vmatprep.subr.mxu0 %v727_v2  ;;  %2488 = vmatprep.mubr.msk.f32.mxu1 %vm931_vm2, %v3490_v11  ;;  %v3498_v13 = vld [vmem:[#allocation7 + $0x160] sm:$0xff]  ;;  %v3506_v15 = vld [vmem:[#allocation7 + $0x130] sm:$0xff]  ;;  %v3526_v20 = vld [vmem:[#allocation7 + $0xb8] sm:$0xff]  ;;  %p4353_p2 = scmp.ne.s32.totalorder %s4271_s28, 0 }
  0xac   : > { %2476 = vmatpush3.msra.mxu0 %v727_v2  ;;  %v3514_v17 = vld [vmem:[#allocation7 + $0x100] sm:$0xff]  ;;  %v3522_v19 = vld [vmem:[#allocation7 + $0xd0] sm:$0xff]  ;;  %v3534_v22 = vld [vmem:[#allocation7 + $0x88] sm:$0xff] }
  0xad   : > { %s709_s15 = scalar_lea.vmem %s4283_s18, %s2367_s12  ;;  %2477 = vmatprep.subr.mxu0 %v726_v4  ;;  %v3530_v21 = vld [vmem:[#allocation7 + $0xa0] sm:$0xff]  ;;  %v3538_v23 = vld [vmem:[#allocation7 + $0x70] sm:$0xff]  ;;  %v3542_v24 = vld [vmem:[#allocation7 + $0x58] sm:$0xff] }
  0xae   : > { %s3478_s23 = scalar_lea.vmem %s4284_s2, %s2367_s12  ;;  %v718_v3 = vld [vmem:[%s709_s15] sm:$0xff]  ;;  %2478 = vmatpush3.msra.mxu0 %v726_v4  ;;  %v719_v8 = vld [vmem:[%s709_s15 + $0x8] sm:$0xff]  ;;  %v3562_v38 = vld [vmem:[#allocation7 + $0x170] sm:$0xff]  ;;  %s4053_s15 = scalar_lea.vmem [#allocation15], %s2330_s22 }
  0xaf   : > { %2481 = vmatprep.mubr.msk.f32.mxu0 %vm835_vm0, %v718_v3  ;;  %v723_v5 = vld [vmem:[%s3478_s23 + $0x8] sm:$0xff]  ;;  %v722_v7 = vld [vmem:[%s3478_s23] sm:$0xff]  ;;  %2479 = vmatprep.subr.mxu0 %v725_v6  ;;  %v3568_v40 = vld [vmem:[#allocation7 + $0x158] sm:$0xff]  ;;  %s2126_s17 = sshll.u32 %s4053_s15, 4  ;;  %s4094_s17 = int_to_ptr.vmem [resolvable:$true] %s2126_s17 }
  0xb0   : > { %926 = vperm.xlu0 %2796, %v723_v5   ;;  %vm1968_vm1 = vcmp.gt.f32.partialorder %v722_v7, 0.0  ;;  %2480 = vmatpush3.msra.mxu0 %v725_v6  ;;  %s717_s20 = scalar_lea.vmem %s4285_s3, %s3469_s10  ;;  %v3546_v25 = vld [vmem:[#allocation7 + $0x40] sm:$0xff]  ;;  %v3560_v37 = vld [vmem:[%s3447_s14 + $0x8] sm:$0xff]  ;;  %v3573_v41 = vld [vmem:[#allocation7 + $0x150] sm:$0xff]  ;;  %s3040_s14 = scalar_lea.vmem %s4094_s17, 256 }
  0xb1   : > { %v1970_v9 = vsel %vm1968_vm1, 1, %v4202_v0  ;;  %2482 = vmatmul.mubr.msk.f32.vlgmr.msra.gmra.mxu0 %vm835_vm0, %v719_v8  ;;  %v724_v10 = vld [vmem:[%s717_s20] sm:$0x1]  ;;  %2491 = vmatprep.subr.mxu0 %v3494_v12  ;;  %v3565_v39 = vld [vmem:[#allocation7 + $0x168] sm:$0xff]  ;;  %v3579_v43 = vld [vmem:[#allocation7 + $0x138] sm:$0xff]  ;;  %s4352_s20 = sld [smem:[#allocation70_spill]]  ;;  %p3041_p5 = scmp.ne.s32.totalorder %s4094_s17, %s3040_s14 }
  0xb2   : > { %2492 = vmatpush3.msra.mxu0 %v3494_v12  ;;  %v2342_v26 = vld [vmem:[%s4175_s5] ss:$0 sm:$0xff]  ;;  %v3582_v44 = vld [vmem:[#allocation7 + $0x128] sm:$0xff]  ;;  %v3588_v46 = vld [vmem:[#allocation7 + $0x110] sm:$0xff]  ;;  %s3164_s10 = smov [#allocation15]  }
  0xb3   : > { %2493 = vmatprep.subr.mxu0 %v3498_v13  ;;  %v3576_v42 = vld [vmem:[#allocation7 + $0x140] sm:$0xff]  ;;  %v3591_v47 = vld [vmem:[#allocation7 + $0x108] sm:$0xff]  ;;  %v3594_v48 = vld [vmem:[#allocation7 + $0xf8] sm:$0xff]  ;;  %p3042_p8 = pnand %p3041_p5, %p4353_p2  ;;  %s3044_s12 = sshll.u32 %s3164_s10, 4  ;;  %s3045_s12 = int_to_ptr.vmem [resolvable:$false] %s3044_s12 }
  0xb4   : > { %921 = vperm.xlu0 %2796, %v722_v7   ;;  %2494 = vmatpush3.msra.mxu0 %v3498_v13  ;;  %v3585_v45 = vld [vmem:[#allocation7 + $0x120] sm:$0xff]  ;;  %v3597_v49 = vld [vmem:[#allocation7 + $0xf0] sm:$0xff]  ;;  %v3603_v51 = vld [vmem:[#allocation7 + $0xd8] sm:$0xff]  ;;  %s3046_s30 = scalar_lea.vmem %s3045_s12, 512  ;;  %p3047_p12 = scmp.lt.s32.totalorder %s4094_s17, %s3045_s12 }
  0xb5   : > { %2495 = vmatprep.subr.mxu0 %v3502_v14  ;;  %v3600_v50 = vld [vmem:[#allocation7 + $0xe0] sm:$0xff]  ;;  %v3606_v52 = vld [vmem:[#allocation7 + $0xc8] sm:$0xff]  ;;  %v3612_v54 = vld [vmem:[#allocation7 + $0xb0] sm:$0xff]  ;;  %p3043_p7 = pneg %p3042_p8  ;;  %p3048_p1 = scmp.lt.s32.totalorder %s3046_s30, %s3040_s14 }
  0xb6   : > { %2496 = vmatpush3.msra.mxu0 %v3502_v14  ;;  %v3609_v53 = vld [vmem:[#allocation7 + $0xc0] sm:$0xff]  ;;  %v3615_v55 = vld [vmem:[#allocation7 + $0xa8] sm:$0xff]  ;;  %v3618_v56 = vld [vmem:[#allocation7 + $0x98] sm:$0xff] }
  0xb7   : > { %2497 = vmatprep.subr.mxu0 %v3506_v15  ;;  %v3621_v57 = vld [vmem:[#allocation7 + $0x90] sm:$0xff]  ;;  %v3624_v58 = vld [vmem:[#allocation7 + $0x80] sm:$0xff]  ;;  %v3627_v59 = vld [vmem:[#allocation7 + $0x78] sm:$0xff]  ;;  %p3049_p3 = por %p3048_p1, %p3047_p12 }
  0xb8   : > { %1973 = vperm.xlu0 %2796, %v1970_v9   ;;  %2498 = vmatpush3.msra.mxu0 %v3506_v15  ;;  %v3630_v60 = vld [vmem:[#allocation7 + $0x68] sm:$0xff]  ;;  %v3633_v61 = vld [vmem:[#allocation7 + $0x60] sm:$0xff]  ;;  %v3636_v62 = vld [vmem:[#allocation7 + $0x50] sm:$0xff] }
  0xb9   : > { %2499 = vmatprep.subr.mxu0 %v3510_v16  ;;  %v3639_v63 = vld [vmem:[#allocation7 + $0x48] sm:$0xff]  ;;  %v3642_v1 = vld [vmem:[#allocation7 + $0x38] sm:$0xff]  ;;  %v3645_v2 = vld [vmem:[#allocation7 + $0x30] sm:$0xff]  ;;  %p3050_p6 = pnand %p3049_p3, %p3043_p7 }
  0xba   : > { %2500 = vmatpush3.msra.mxu0 %v3510_v16  ;;  %v3648_v3 = vld [vmem:[#allocation7 + $0x20] sm:$0xff]  ;;  %v3651_v4 = vld [vmem:[#allocation7 + $0x18] sm:$0xff]  ;;  %v3656_v5 = vld [vmem:[#allocation7 + $0x8] sm:$0xff] }
  0xbb   : > { %2501 = vmatprep.subr.mxu0 %v3514_v17  ;;  %v3658_v6 = vld [vmem:[#allocation7 + $0x28] sm:$0xff]  ;;  %v3662_v7 = vld [vmem:[#allocation7] sm:$0xff]  ;;  %v3666_v8 = vld [vmem:[#allocation7 + $0x10] sm:$0xff] }
  0xbc   : > { %1991 = vperm.xlu0 %2796, %v724_v10   ;;  %2502 = vmatpush3.msra.mxu0 %v3514_v17  ;;  %v3668_v9 = vld [vmem:[#allocation8 + $0xf8] sm:$0xff]  ;;  %v4206_v10 = vmov 0.0   ;;  %v3698_v0 = vld [vmem:[#allocation8 + $0xb0] sm:$0xff] }
  0xbd   : > { %2503 = vmatprep.subr.mxu0 %v3518_v18  ;;  %4291 = vst [vmem:[#allocation31_spill] sm:$0xff] %v3698_v0 }
  0xbe   : > { %2504 = vmatpush3.msra.mxu0 %v3518_v18 }
  0xbf   : > { %2505 = vmatprep.subr.mxu0 %v3522_v19 }
  0xc0   : > { %2506 = vmatpush3.msra.mxu0 %v3522_v19 }
  0xc1   : > { %2507 = vmatprep.subr.mxu0 %v3526_v20 }
  0xc2   : > { %2508 = vmatpush3.msra.mxu0 %v3526_v20 }
  0xc3   : > { %2509 = vmatprep.subr.mxu0 %v3530_v21 }
  0xc4   : > { %2510 = vmatpush3.msra.mxu0 %v3530_v21 }
  0xc5   : > { %2511 = vmatprep.subr.mxu0 %v3534_v22 }
  0xc6   : > { %2512 = vmatpush3.msra.mxu0 %v3534_v22 }
  0xc7   : > { %2513 = vmatprep.subr.mxu0 %v3538_v23 }
  0xc8   : > { %2514 = vmatpush3.msra.mxu0 %v3538_v23 }
  0xc9   : > { %2515 = vmatprep.subr.mxu0 %v3542_v24 }
  0xca   : > { %2516 = vmatpush3.msra.mxu0 %v3542_v24 }
  0xcb   : > { %2517 = vmatprep.subr.mxu0 %v3546_v25 }
  0xcc   : > { %2518 = vmatpush3.msra.mxu0 %v3546_v25 }
  0xcd   : > { %2519 = vmatprep.subr.mxu0 %v3658_v6 }
  0xce   : > { %2520 = vmatpush3.msra.mxu0 %v3658_v6 }
  0xcf   : > { %2521 = vmatprep.subr.mxu0 %v3666_v8 }
  0xd0   : > { %2522 = vmatpush3.msra.mxu0 %v3666_v8 }
 0x12b   : > { %v927_v31 = vpop.permute.xlu0 %926 }
 0x12f   : > { %v922_v35 = vpop.permute.xlu0 %921 }
 0x171   : > { %v2483_v27 = vpop.f32.mrf.mxu0 }
 0x172   : > { %v914_v28 = vadd.f32 %v2483_v27, %v2342_v26  ;;  %v3674_v27 = vld [vmem:[#allocation8 + $0xf0] sm:$0xff] }
 0x173   : > { %v908_v29 = vpop.f32.mrf.mxu0 }
 0x174   : > { %2798 = vtanh.f32 %v914_v28  ;;  %v909_v30 = vadd.f32 %v2342_v26, %v908_v29  ;;  %v3676_v29 = vld [vmem:[#allocation8 + $0xe8] sm:$0xff] }
 0x176   : > { %2800 = vtanh.f32 %v909_v30  ;;  %v3678_v30 = vld [vmem:[#allocation8 + $0xe0] sm:$0xff] }
 0x177   : > { %4286 = vst [vmem:[#allocation26_spill] sm:$0xff] %v3678_v30 }
 0x181   : > { %v2799_v32 = vpop.eup %2798 }
 0x182   : > { %v3553_v33 = vmul.f32 %v2799_v32, %v927_v31  ;;  %v3681_v31 = vld [vmem:[#allocation8 + $0xd8] sm:$0xff]  ;;  %v3685_v32 = vld [vmem:[#allocation8 + $0xd0] sm:$0xff] }
 0x183   : > { %v2801_v34 = vpop.eup %2800  ;;  %4287 = vst [vmem:[#allocation27_spill] sm:$0xff] %v3681_v31  ;;  %4288 = vst [vmem:[#allocation28_spill] sm:$0xff] %v3685_v32 }
 0x184   : > { %v3555_v36 = vmul.f32 %v2801_v34, %v922_v35  ;;  %2484 = vmatprep.subr.mxu1 %v3553_v33  ;;  %v3688_v34 = vld [vmem:[#allocation8 + $0xc8] sm:$0xff]  ;;  %v3691_v35 = vld [vmem:[#allocation8 + $0xc0] sm:$0xff] }
 0x185   : > { %2485 = vmatpush3.msra.mxu1 %v3553_v33  ;;  %4289 = vst [vmem:[#allocation29_spill] sm:$0xff] %v3691_v35 }
 0x186   : > { %2486 = vmatprep.subr.mxu1 %v3555_v36 }
 0x187   : > { %2487 = vmatpush3.msra.mxu1 %v3555_v36 }
 0x188   : > { %2489 = vmatmul.mubr.msk.f32.vlgmr.msra.gmra.mxu1 %vm931_vm2, %v3560_v37  ;;  %1029 = vmatprep.subr.mxu1 %v3562_v38 }
 0x189   : > { %1030 = vmatpush1.msra.mxu1 %v3565_v39  ;;  %1093 = vmatprep.mubr.f32.mxu1 %v4206_v10 }
 0x18a   : > { %1031 = vmatprep.subr.mxu1 %v3568_v40 }
 0x18b   : > { %1032 = vmatpush1.msra.mxu1 %v3573_v41 }
 0x18c   : > { %1033 = vmatprep.subr.mxu1 %v3576_v42 }
 0x18d   : > { %1034 = vmatpush1.msra.mxu1 %v3579_v43 }
 0x18e   : > { %1035 = vmatprep.subr.mxu1 %v3582_v44 }
 0x18f   : > { %1036 = vmatpush1.msra.mxu1 %v3585_v45 }
 0x190   : > { %1037 = vmatprep.subr.mxu1 %v3588_v46 }
 0x191   : > { %1038 = vmatpush1.msra.mxu1 %v3591_v47 }
 0x192   : > { %1039 = vmatprep.subr.mxu1 %v3594_v48 }
 0x193   : > { %1040 = vmatpush1.msra.mxu1 %v3597_v49 }
 0x194   : > { %1041 = vmatprep.subr.mxu1 %v3600_v50 }
 0x195   : > { %1042 = vmatpush1.msra.mxu1 %v3603_v51 }
 0x196   : > { %1043 = vmatprep.subr.mxu1 %v3606_v52 }
 0x197   : > { %1044 = vmatpush1.msra.mxu1 %v3609_v53 }
 0x198   : > { %1045 = vmatprep.subr.mxu1 %v3612_v54 }
 0x199   : > { %1046 = vmatpush1.msra.mxu1 %v3615_v55 }
 0x19a   : > { %1047 = vmatprep.subr.mxu1 %v3618_v56 }
 0x19b   : > { %1048 = vmatpush1.msra.mxu1 %v3621_v57 }
 0x19c   : > { %1049 = vmatprep.subr.mxu1 %v3624_v58 }
 0x19d   : > { %1050 = vmatpush1.msra.mxu1 %v3627_v59 }
 0x19e   : > { %1051 = vmatprep.subr.mxu1 %v3630_v60 }
 0x19f   : > { %1052 = vmatpush1.msra.mxu1 %v3633_v61 }
 0x1a0   : > { %1053 = vmatprep.subr.mxu1 %v3636_v62 }
 0x1a1   : > { %1054 = vmatpush1.msra.mxu1 %v3639_v63 }
 0x1a2   : > { %1055 = vmatprep.subr.mxu1 %v3642_v1 }
 0x1a3   : > { %1056 = vmatpush1.msra.mxu1 %v3645_v2 }
 0x1a4   : > { %1057 = vmatprep.subr.mxu1 %v3648_v3 }
 0x1a5   : > { %1058 = vmatpush1.msra.mxu1 %v3651_v4 }
 0x1a6   : > { %1059 = vmatprep.subr.mxu1 %v3656_v5 }
 0x1a7   : > { %1060 = vmatpush1.msra.mxu1 %v3662_v7 }
 0x1a8   : > { %1192 = vmatprep.subr.mxu1 %v3668_v9 }
 0x248   : > { %v2490_v26 = vpop.f32.mrf.mxu1 }
 0x24a   : > { %v1004_v28 = vpop.f32.mrf.mxu1 }
 0x24b   : > { %1094 = vmatmul.mubr.f32.vlgmr.msra.gmra.mxu1 %v1004_v28  ;;  %2523 = vmatprep.mubr.f32.mxu0 %v1004_v28  ;;  %v3694_v28 = vld [vmem:[#allocation8 + $0xb8] sm:$0xff] }
 0x24c   : > { %1193 = vmatpush1.msra.mxu1 %v3674_v27  ;;  %2524 = vmatmul.mubr.f32.vlgmr.msra.gmra.mxu0 %v2490_v26  ;;  %4290 = vst [vmem:[#allocation30_spill] sm:$0xff] %v3694_v28 }
 0x24d   : > { %1194 = vmatprep.subr.mxu1 %v3676_v29  ;;  %1099 = vmatprep.mubr.f32.mxu1 %v4206_v10 }
 0x24e   : > { %1195 = vmatpush1.msra.mxu1 %v3678_v30  ;;  %v3701_v30 = vld [vmem:[#allocation8 + $0xa8] sm:$0xff] }
 0x24f   : > { %1196 = vmatprep.subr.mxu1 %v3681_v31  ;;  %1100 = vmatmul.mubr.f32.gmra.mxu1 %v2490_v26  ;;  %4292 = vst [vmem:[#allocation32_spill] sm:$0xff] %v3701_v30  ;;  %v3704_v31 = vld [vmem:[#allocation8 + $0xa0] sm:$0xff]  ;;  %v3707_v26 = vld [vmem:[#allocation8 + $0x98] sm:$0xff] }
 0x250   : > { %1197 = vmatpush1.msra.mxu1 %v3685_v32  ;;  %1256 = vmatprep.mubr.f32.mxu1 %v4206_v10  ;;  %4293 = vst [vmem:[#allocation33_spill] sm:$0xff] %v3704_v31  ;;  %4294 = vst [vmem:[#allocation34_spill] sm:$0xff] %v3707_v26  ;;  %v3710_v32 = vld [vmem:[#allocation8 + $0x90] sm:$0xff]  ;;  %v3713_v10 = vld [vmem:[#allocation8 + $0x88] sm:$0xff] }
 0x251   : > { %1198 = vmatprep.subr.mxu1 %v3688_v34  ;;  %4295 = vst [vmem:[#allocation35_spill] sm:$0xff] %v3710_v32  ;;  %4296 = vst [vmem:[#allocation36_spill] sm:$0xff] %v3713_v10 }
 0x252   : > { %1199 = vmatpush1.msra.mxu1 %v3691_v35  ;;  %v3716_v35 = vld [vmem:[#allocation8 + $0x80] sm:$0xff] }
 0x253   : > { %1200 = vmatprep.subr.mxu1 %v3694_v28  ;;  %4297 = vst [vmem:[#allocation37_spill] sm:$0xff] %v3716_v35  ;;  %v3719_v28 = vld [vmem:[#allocation8 + $0x78] sm:$0xff] }
 0x254   : > { %1201 = vmatpush1.msra.mxu1 %v3698_v0  ;;  %4298 = vst [vmem:[#allocation38_spill] sm:$0xff] %v3719_v28  ;;  %v3722_v0 = vld [vmem:[#allocation8 + $0x70] sm:$0xff] }
 0x255   : > { %1202 = vmatprep.subr.mxu1 %v3701_v30  ;;  %4299 = vst [vmem:[#allocation39_spill] sm:$0xff] %v3722_v0  ;;  %v3725_v30 = vld [vmem:[#allocation8 + $0x68] sm:$0xff] }
 0x256   : > { %1203 = vmatpush1.msra.mxu1 %v3704_v31  ;;  %4300 = vst [vmem:[#allocation40_spill] sm:$0xff] %v3725_v30  ;;  %v3728_v31 = vld [vmem:[#allocation8 + $0x60] sm:$0xff] }
 0x257   : > { %1204 = vmatprep.subr.mxu1 %v3707_v26  ;;  %4301 = vst [vmem:[#allocation41_spill] sm:$0xff] %v3728_v31  ;;  %v3731_v26 = vld [vmem:[#allocation8 + $0x58] sm:$0xff] }
 0x258   : > { %1205 = vmatpush1.msra.mxu1 %v3710_v32  ;;  %4302 = vst [vmem:[#allocation42_spill] sm:$0xff] %v3731_v26  ;;  %v3734_v32 = vld [vmem:[#allocation8 + $0x50] sm:$0xff] }
 0x259   : > { %1206 = vmatprep.subr.mxu1 %v3713_v10  ;;  %4303 = vst [vmem:[#allocation43_spill] sm:$0xff] %v3734_v32  ;;  %v3737_v10 = vld [vmem:[#allocation8 + $0x48] sm:$0xff] }
 0x25a   : > { %1207 = vmatpush1.msra.mxu1 %v3716_v35  ;;  %4304 = vst [vmem:[#allocation44_spill] sm:$0xff] %v3737_v10  ;;  %v3740_v35 = vld [vmem:[#allocation8 + $0x40] sm:$0xff] }
 0x25b   : > { %1208 = vmatprep.subr.mxu1 %v3719_v28  ;;  %4305 = vst [vmem:[#allocation45_spill] sm:$0xff] %v3740_v35  ;;  %v3743_v28 = vld [vmem:[#allocation8 + $0x38] sm:$0xff] }
 0x25c   : > { %1209 = vmatpush1.msra.mxu1 %v3722_v0  ;;  %v3746_v0 = vld [vmem:[#allocation8 + $0x30] sm:$0xff] }
 0x25d   : > { %1210 = vmatprep.subr.mxu1 %v3725_v30  ;;  %v3749_v30 = vld [vmem:[#allocation8 + $0x28] sm:$0xff] }
 0x25e   : > { %1211 = vmatpush1.msra.mxu1 %v3728_v31  ;;  %4306 = vst [vmem:[#allocation46_spill] sm:$0xff] %v3749_v30  ;;  %v3752_v31 = vld [vmem:[#allocation8 + $0x20] sm:$0xff] }
 0x25f   : > { %1212 = vmatprep.subr.mxu1 %v3731_v26  ;;  %4307 = vst [vmem:[#allocation47_spill] sm:$0xff] %v3752_v31  ;;  %v3755_v26 = vld [vmem:[#allocation8 + $0x18] sm:$0xff] }
 0x260   : > { %1213 = vmatpush1.msra.mxu1 %v3734_v32  ;;  %4308 = vst [vmem:[#allocation48_spill] sm:$0xff] %v3755_v26  ;;  %v3758_v32 = vld [vmem:[#allocation8 + $0x10] sm:$0xff] }
 0x261   : > { %1214 = vmatprep.subr.mxu1 %v3737_v10  ;;  %4309 = vst [vmem:[#allocation49_spill] sm:$0xff] %v3758_v32  ;;  %v3761_v10 = vld [vmem:[#allocation8 + $0x8] sm:$0xff] }
 0x262   : > { %1215 = vmatpush1.msra.mxu1 %v3740_v35  ;;  %4310 = vst [vmem:[#allocation50_spill] sm:$0xff] %v3761_v10  ;;  %v3764_v35 = vld [vmem:[#allocation8] sm:$0xff] }
 0x263   : > { %1216 = vmatprep.subr.mxu1 %v3743_v28  ;;  %4311 = vst [vmem:[#allocation51_spill] sm:$0xff] %v3764_v35 }
 0x264   : > { %1217 = vmatpush1.msra.mxu1 %v3746_v0 }
 0x265   : > { %1218 = vmatprep.subr.mxu1 %v3749_v30  ;;  %v4312_v30 = vmov 0.0  }
 0x266   : > { %1219 = vmatpush1.msra.mxu1 %v3752_v31 }
 0x267   : > { %1220 = vmatprep.subr.mxu1 %v3755_v26 }
 0x268   : > { %1221 = vmatpush1.msra.mxu1 %v3758_v32 }
 0x269   : > { %1222 = vmatprep.subr.mxu1 %v3761_v10 }
 0x26a   : > { %1223 = vmatpush1.msra.mxu1 %v3764_v35 }
 0x26b   : > { %1257 = vmatmul.mubr.f32.vlgmr.msra.gmra.mxu1 %v3555_v36  ;;  %1469 = vmatprep.subr.mxu1 %v3562_v38  ;;  %v3806_v38 = vld [vmem:[#allocation10 + $0x78] sm:$0xff] }
 0x26c   : > { %1262 = vmatprep.mubr.f32.mxu1 %v4312_v30  ;;  %1470 = vmatpush1.msra.mxu1 %v3565_v39  ;;  %v3810_v39 = vld [vmem:[#allocation10 + $0x70] sm:$0xff] }
 0x26d   : > { %1471 = vmatprep.subr.mxu1 %v3568_v40  ;;  %2526 = vmatprep.subr.mxu0 %v3806_v38  ;;  %v3814_v40 = vld [vmem:[#allocation10 + $0x68] sm:$0xff] }
 0x26e   : > { %1472 = vmatpush1.msra.mxu1 %v3573_v41  ;;  %2527 = vmatpush3.msra.mxu0 %v3806_v38  ;;  %v3818_v41 = vld [vmem:[#allocation10 + $0x60] sm:$0xff] }
 0x26f   : > { %1263 = vmatmul.mubr.f32.gmra.mxu1 %v3553_v33  ;;  %1473 = vmatprep.subr.mxu1 %v3576_v42  ;;  %v3822_v42 = vld [vmem:[#allocation10 + $0x58] sm:$0xff] }
 0x270   : > { %1474 = vmatpush1.msra.mxu1 %v3579_v43  ;;  %1533 = vmatprep.mubr.f32.mxu1 %v4312_v30  ;;  %v3826_v43 = vld [vmem:[#allocation10 + $0x50] sm:$0xff] }
 0x271   : > { %1475 = vmatprep.subr.mxu1 %v3582_v44  ;;  %2528 = vmatprep.subr.mxu0 %v3810_v39  ;;  %v3830_v44 = vld [vmem:[#allocation10 + $0x48] sm:$0xff] }
 0x272   : > { %1476 = vmatpush1.msra.mxu1 %v3585_v45  ;;  %2529 = vmatpush3.msra.mxu0 %v3810_v39  ;;  %v3834_v45 = vld [vmem:[#allocation10 + $0x40] sm:$0xff] }
 0x273   : > { %1477 = vmatprep.subr.mxu1 %v3588_v46  ;;  %2530 = vmatprep.subr.mxu0 %v3814_v40  ;;  %v3838_v46 = vld [vmem:[#allocation10 + $0x38] sm:$0xff] }
 0x274   : > { %1478 = vmatpush1.msra.mxu1 %v3591_v47  ;;  %2531 = vmatpush3.msra.mxu0 %v3814_v40  ;;  %v3841_v47 = vld [vmem:[#allocation10 + $0x30] sm:$0xff] }
 0x275   : > { %1479 = vmatprep.subr.mxu1 %v3594_v48  ;;  %2532 = vmatprep.subr.mxu0 %v3818_v41  ;;  %v3844_v48 = vld [vmem:[#allocation10 + $0x28] sm:$0xff] }
 0x276   : > { %1480 = vmatpush1.msra.mxu1 %v3597_v49  ;;  %2533 = vmatpush3.msra.mxu0 %v3818_v41  ;;  %v3848_v49 = vld [vmem:[#allocation10 + $0x20] sm:$0xff] }
 0x277   : > { %1481 = vmatprep.subr.mxu1 %v3600_v50  ;;  %2534 = vmatprep.subr.mxu0 %v3822_v42  ;;  %v3852_v50 = vld [vmem:[#allocation10 + $0x18] sm:$0xff] }
 0x278   : > { %1482 = vmatpush1.msra.mxu1 %v3603_v51  ;;  %2535 = vmatpush3.msra.mxu0 %v3822_v42  ;;  %4313 = vst [vmem:[#allocation52_spill] sm:$0xff] %v3852_v50  ;;  %v3856_v51 = vld [vmem:[#allocation10 + $0x10] sm:$0xff] }
 0x279   : > { %1483 = vmatprep.subr.mxu1 %v3606_v52  ;;  %2536 = vmatprep.subr.mxu0 %v3826_v43  ;;  %4314 = vst [vmem:[#allocation53_spill] sm:$0xff] %v3856_v51  ;;  %v3860_v52 = vld [vmem:[#allocation10 + $0x8] sm:$0xff] }
 0x27a   : > { %1484 = vmatpush1.msra.mxu1 %v3609_v53  ;;  %2537 = vmatpush3.msra.mxu0 %v3826_v43  ;;  %4315 = vst [vmem:[#allocation54_spill] sm:$0xff] %v3860_v52  ;;  %v3865_v53 = vld [vmem:[#allocation10] sm:$0xff] }
 0x27b   : > { %1485 = vmatprep.subr.mxu1 %v3612_v54  ;;  %2538 = vmatprep.subr.mxu0 %v3830_v44  ;;  %4316 = vst [vmem:[#allocation55_spill] sm:$0xff] %v3865_v53 }
 0x27c   : > { %1486 = vmatpush1.msra.mxu1 %v3615_v55  ;;  %2539 = vmatpush3.msra.mxu0 %v3830_v44  ;;  %v1014_v55 = vlaneseq }
 0x27d   : > { %1487 = vmatprep.subr.mxu1 %v3618_v56  ;;  %2540 = vmatprep.subr.mxu0 %v3834_v45 }
 0x27e   : > { %1488 = vmatpush1.msra.mxu1 %v3621_v57  ;;  %2541 = vmatpush3.msra.mxu0 %v3834_v45  ;;  %v1015_v57 = vshrl.u32 %v1014_v55, 7 }
 0x27f   : > { %1489 = vmatprep.subr.mxu1 %v3624_v58  ;;  %2542 = vmatprep.subr.mxu0 %v3838_v46  ;;  %v778_v58 = vld [vmem:[%s4177_s7] sm:$0x7] }
 0x280   : > { %1490 = vmatpush1.msra.mxu1 %v3627_v59  ;;  %2543 = vmatpush3.msra.mxu0 %v3838_v46 }
 0x281   : > { %1491 = vmatprep.subr.mxu1 %v3630_v60  ;;  %2544 = vmatprep.subr.mxu0 %v3841_v47  ;;  %v811_v60 = vld [vmem:[%s4179_s9] sm:$0x3] }
 0x282   : > { %1492 = vmatpush1.msra.mxu1 %v3633_v61  ;;  %2545 = vmatpush3.msra.mxu0 %v3841_v47  ;;  %v3876_v61 = vsub.s32 0, %v1015_v57 }
 0x283   : > { %1493 = vmatprep.subr.mxu1 %v3636_v62  ;;  %2546 = vmatprep.subr.mxu0 %v3844_v48  ;;  %v3878_v62 = vsub.s32 1, %v1015_v57 }
 0x284   : > { %1494 = vmatpush1.msra.mxu1 %v3639_v63  ;;  %2547 = vmatpush3.msra.mxu0 %v3844_v48  ;;  %4317 = vst [vmem:[#allocation56_spill] sm:$0xff] %v3876_v61  ;;  %v3881_v63 = vrot.slane %v778_v58, %v3876_v61 }
 0x285   : > { %1495 = vmatprep.subr.mxu1 %v3642_v1  ;;  %2548 = vmatprep.subr.mxu0 %v3848_v49  ;;  %4318 = vst [vmem:[#allocation57_spill] sm:$0xff] %v3878_v62  ;;  %v3884_v1 = vrot.slane %v811_v60, %v3876_v61 }
 0x286   : > { %1496 = vmatpush1.msra.mxu1 %v3645_v2  ;;  %2549 = vmatpush3.msra.mxu0 %v3848_v49 }
 0x287   : > { %1497 = vmatprep.subr.mxu1 %v3648_v3  ;;  %2550 = vmatprep.subr.mxu0 %v3852_v50  ;;  %v3887_v3 = vrot.slane %v778_v58, %v3878_v62 }
 0x288   : > { %1498 = vmatpush1.msra.mxu1 %v3651_v4  ;;  %2551 = vmatpush3.msra.mxu0 %v3852_v50  ;;  %v3890_v4 = vrot.slane %v811_v60, %v3878_v62 }
 0x289   : > { %1499 = vmatprep.subr.mxu1 %v3656_v5  ;;  %2552 = vmatprep.subr.mxu0 %v3856_v51 }
 0x28a   : > { %1500 = vmatpush1.msra.mxu1 %v3662_v7  ;;  %2553 = vmatpush3.msra.mxu0 %v3856_v51 }
 0x28b   : > { %1621 = vmatprep.subr.mxu1 %v3668_v9  ;;  %2554 = vmatprep.subr.mxu0 %v3860_v52 }
 0x28c   : > { %2555 = vmatpush3.msra.mxu0 %v3860_v52 }
 0x28d   : > { %2556 = vmatprep.subr.mxu0 %v3865_v53 }
 0x28e   : > { %2557 = vmatpush3.msra.mxu0 %v3865_v53 }
 0x30b   : > { %v1095_v54 = vpop.f32.mrf.mxu1 }
 0x30c   : > { %v1096_v7 = vadd.f32 %v1095_v54, %v3881_v63 }
 0x30d   : > { %v1097_v56 = vpop.f32.mrf.mxu1 }
 0x30e   : > { %v1098_v53 = vadd.f32 %v1097_v56, %v3887_v3 }
 0x30f   : > { %v1101_v59 = vpop.f32.mrf.mxu1 }
 0x310   : > { %v1102_v51 = vadd.f32 %v1101_v59, %v3881_v63 }
 0x311   : > { %v1103_v2 = vpop.f32.mrf.mxu1 }
 0x312   : > { %v1104_v60 = vadd.f32 %v1103_v2, %v3887_v3 }
 0x32b   : > { %v1258_v5 = vpop.f32.mrf.mxu1 }
 0x32c   : > { %v1259_v9 = vadd.f32 %v1258_v5, %v3884_v1 }
 0x32d   : > { %v1260_v55 = vpop.f32.mrf.mxu1 }
 0x32e   : > { %v1269_v52 = vadd.f32 %v1259_v9, %v1096_v7  ;;  %v1261_v35 = vadd.f32 %v1260_v55, %v3890_v4 }
 0x32f   : > { %v1264_v61 = vpop.f32.mrf.mxu1 }
 0x330   : > { %v1270_v10 = vadd.f32 %v1261_v35, %v1098_v53  ;;  %v1265_v32 = vadd.f32 %v1264_v61, %v3884_v1 }
 0x331   : > { %v1266_v50 = vpop.f32.mrf.mxu1 }
 0x332   : > { %v2348_v62 = vmul.f32 -1.442695, %v1270_v10  ;;  %v1271_v26 = vadd.f32 %v1265_v32, %v1102_v51  ;;  %v1267_v54 = vadd.f32 %v1266_v50, %v3890_v4  ;;  %v2347_v50 = vmul.f32 -1.442695, %v1269_v52 }
 0x334   : > { %2802 = vpow2.f32 %v2348_v62  ;;  %v1272_v5 = vadd.f32 %v1267_v54, %v1104_v60  ;;  %v2349_v32 = vmul.f32 -1.442695, %v1271_v26  ;;  %v2525_v62 = vpop.f32.mrf.mxu0 }
 0x336   : > { %v2350_v31 = vmul.f32 -1.442695, %v1272_v5  ;;  %v1172_v5 = vpop.f32.mrf.mxu0 }
 0x338   : > { %2804 = vpow2.f32 %v2350_v31  ;;  %v1024_v31 = vsub.s32 2, %v1015_v57 }
 0x33a   : > { %v3904_v2 = vrot.slane %v778_v58, %v1024_v31 }
 0x33c   : > { %v1173_v52 = vadd.f32 %v1172_v5, %v3904_v2  ;;  %v1846_v5 = vld [vmem:[#allocation11 + $0xd8] sm:$0xff] }
 0x341   : > { %v2803_v56 = vpop.eup %2802 }
 0x342   : > { %v1286_v7 = vadd.f32 1.0, %v2803_v56  ;;  %v1178_v56 = vadd.f32 %v2525_v62, %v3904_v2 }
 0x344   : > { %2806 = vrcp.f32 %v1286_v7 }
 0x345   : > { %v2805_v9 = vpop.eup %2804 }
 0x346   : > { %v1288_v55 = vadd.f32 1.0, %v2805_v9 }
 0x348   : > { %2808 = vrcp.f32 %v1288_v55 }
 0x349   : > { %2810 = vpow2.f32 %v2349_v32 }
 0x34a   : > { %2812 = vpow2.f32 %v2347_v50 }
 0x351   : > { %v2807_v35 = vpop.eup %2806 }
 0x352   : > { %v1297_v53 = vmul.f32 %v2807_v35, %v3555_v36 }
 0x354   : > { %2558 = vmatprep.mubr.f32.mxu0 %v1297_v53 }
 0x355   : > { %v2809_v59 = vpop.eup %2808 }
 0x356   : > { %v1298_v10 = vmul.f32 %v2809_v59, %v3553_v33  ;;  %v2811_v51 = vpop.eup %2810 }
 0x357   : > { %v2813_v61 = vpop.eup %2812  ;;  %v1287_v60 = vadd.f32 1.0, %v2811_v51 }
 0x358   : > { %2559 = vmatmul.mubr.f32.vlgmr.msra.gmra.mxu0 %v1298_v10  ;;  %v1285_v54 = vadd.f32 1.0, %v2813_v61 }
 0x359   : > { %2565 = vmatprep.mubr.msk.f32.mxu0 %vm931_vm2, %v3490_v11  ;;  %2814 = vrcp.f32 %v1287_v60  ;;  %v3910_v11 = vld [vmem:[%s4181_s11] ss:$0 sm:$0xff] }
 0x35a   : > { %2816 = vrcp.f32 %v1285_v54 }
 0x366   : > { %v2815_v35 = vpop.eup %2814 }
 0x367   : > { %v2817_v53 = vpop.eup %2816  ;;  %v1389_v59 = vsub.f32 1.0, %v2815_v35 }
 0x368   : > { %v1388_v10 = vsub.f32 1.0, %v2817_v53 }
 0x369   : > { %v1391_v31 = vmul.f32 %v1389_v59, %v3553_v33  ;;  %v4331_v33 = vld [vmem:[#allocation38_spill] sm:$0xff] }
 0x36a   : > { %v1390_v60 = vmul.f32 %v1388_v10, %v3555_v36  ;;  %v4332_v36 = vld [vmem:[#allocation39_spill] sm:$0xff] }
 0x418   : > { %v2560_v26 = vpop.f32.mrf.mxu0 }
 0x419   : > { %v1375_v57 = vadd.f32 %v2560_v26, %v1178_v56  ;;  %v1845_v56 = vld [vmem:[#allocation11 + $0xd0] sm:$0xff]  ;;  %v1844_v26 = vld [vmem:[#allocation11 + $0xc8] sm:$0xff] }
 0x41a   : > { %v1365_v7 = vpop.f32.mrf.mxu0 }
 0x41b   : > { %v1383_v58 = vadd.f32 %v3910_v11, %v1375_v57  ;;  %v1374_v9 = vadd.f32 %v1365_v7, %v1173_v52 }
 0x41d   : > { %2818 = vtanh.f32 %v1383_v58  ;;  %v1382_v55 = vadd.f32 %v3910_v11, %v1374_v9 }
 0x41f   : > { %2820 = vtanh.f32 %v1382_v55 }
 0x42a   : > { %v2819_v32 = vpop.eup %2818 }
 0x42b   : > { %v1387_v50 = vmul.f32 %v2819_v32, %v2815_v35 }
 0x42c   : > { %v2821_v51 = vpop.eup %2820 }
 0x42d   : > { %v3916_v61 = vadd.f32 %v1391_v31, %v1387_v50  ;;  %v1386_v62 = vmul.f32 %v2821_v51, %v2817_v53 }
 0x42f   : > { %2561 = vmatprep.subr.mxu0 %v3916_v61  ;;  %v3920_v54 = vadd.f32 %v1390_v60, %v1386_v62 }
 0x430   : > { %2562 = vmatpush3.msra.mxu0 %v3916_v61 }
 0x431   : > { %2563 = vmatprep.subr.mxu0 %v3920_v54 }
 0x432   : > { %2564 = vmatpush3.msra.mxu0 %v3920_v54 }
 0x433   : > { %2566 = vmatmul.mubr.msk.f32.vlgmr.msra.gmra.mxu0 %vm931_vm2, %v3560_v37  ;;  %2568 = vmatprep.subr.mxu0 %v3494_v12  ;;  %v4333_v37 = vld [vmem:[#allocation40_spill] sm:$0xff] }
 0x434   : > { %2569 = vmatpush3.msra.mxu0 %v3494_v12 }
 0x435   : > { %2570 = vmatprep.subr.mxu0 %v3498_v13 }
 0x436   : > { %2571 = vmatpush3.msra.mxu0 %v3498_v13 }
 0x437   : > { %2572 = vmatprep.subr.mxu0 %v3502_v14 }
 0x438   : > { %2573 = vmatpush3.msra.mxu0 %v3502_v14  ;;  %v4319_v14 = vld [vmem:[#allocation26_spill] sm:$0xff] }
 0x439   : > { %2574 = vmatprep.subr.mxu0 %v3506_v15 }
 0x43a   : > { %2575 = vmatpush3.msra.mxu0 %v3506_v15  ;;  %v4320_v15 = vld [vmem:[#allocation27_spill] sm:$0xff] }
 0x43b   : > { %2576 = vmatprep.subr.mxu0 %v3510_v16 }
 0x43c   : > { %2577 = vmatpush3.msra.mxu0 %v3510_v16  ;;  %v4321_v16 = vld [vmem:[#allocation28_spill] sm:$0xff] }
 0x43d   : > { %2578 = vmatprep.subr.mxu0 %v3514_v17 }
 0x43e   : > { %2579 = vmatpush3.msra.mxu0 %v3514_v17  ;;  %v4322_v17 = vld [vmem:[#allocation29_spill] sm:$0xff] }
 0x43f   : > { %2580 = vmatprep.subr.mxu0 %v3518_v18 }
 0x440   : > { %2581 = vmatpush3.msra.mxu0 %v3518_v18  ;;  %v4323_v18 = vld [vmem:[#allocation30_spill] sm:$0xff] }
 0x441   : > { %2582 = vmatprep.subr.mxu0 %v3522_v19 }
 0x442   : > { %2583 = vmatpush3.msra.mxu0 %v3522_v19  ;;  %v4324_v19 = vld [vmem:[#allocation31_spill] sm:$0xff] }
 0x443   : > { %2584 = vmatprep.subr.mxu0 %v3526_v20 }
 0x444   : > { %2585 = vmatpush3.msra.mxu0 %v3526_v20  ;;  %v4325_v20 = vld [vmem:[#allocation32_spill] sm:$0xff] }
 0x445   : > { %2586 = vmatprep.subr.mxu0 %v3530_v21 }
 0x446   : > { %2587 = vmatpush3.msra.mxu0 %v3530_v21  ;;  %v4326_v21 = vld [vmem:[#allocation33_spill] sm:$0xff] }
 0x447   : > { %2588 = vmatprep.subr.mxu0 %v3534_v22 }
 0x448   : > { %2589 = vmatpush3.msra.mxu0 %v3534_v22  ;;  %v4327_v22 = vld [vmem:[#allocation34_spill] sm:$0xff] }
 0x449   : > { %2590 = vmatprep.subr.mxu0 %v3538_v23 }
 0x44a   : > { %2591 = vmatpush3.msra.mxu0 %v3538_v23  ;;  %v4328_v23 = vld [vmem:[#allocation35_spill] sm:$0xff] }
 0x44b   : > { %2592 = vmatprep.subr.mxu0 %v3542_v24 }
 0x44c   : > { %2593 = vmatpush3.msra.mxu0 %v3542_v24  ;;  %v4329_v24 = vld [vmem:[#allocation36_spill] sm:$0xff] }
 0x44d   : > { %2594 = vmatprep.subr.mxu0 %v3546_v25 }
 0x44e   : > { %2595 = vmatpush3.msra.mxu0 %v3546_v25  ;;  %v4330_v25 = vld [vmem:[#allocation37_spill] sm:$0xff] }
 0x44f   : > { %2596 = vmatprep.subr.mxu0 %v3658_v6 }
 0x450   : > { %2597 = vmatpush3.msra.mxu0 %v3658_v6  ;;  %v4334_v6 = vld [vmem:[#allocation41_spill] sm:$0xff] }
 0x451   : > { %2598 = vmatprep.subr.mxu0 %v3666_v8 }
 0x452   : > { %2599 = vmatpush3.msra.mxu0 %v3666_v8  ;;  %v4335_v8 = vld [vmem:[#allocation42_spill] sm:$0xff] }
 0x453   : > { %2603 = vmatprep.subr.mxu0 %v3806_v38 }
 0x4f3   : > { %v2567_v12 = vpop.f32.mrf.mxu0 }
 0x4f5   : > { %v1460_v13 = vpop.f32.mrf.mxu0 }
 0x4f6   : > { %1534 = vmatmul.mubr.f32.vlgmr.msra.gmra.mxu1 %v1460_v13  ;;  %2600 = vmatprep.mubr.f32.mxu0 %v1460_v13 }
 0x4f7   : > { %1622 = vmatpush1.msra.mxu1 %v3674_v27  ;;  %2601 = vmatmul.mubr.f32.vlgmr.msra.gmra.mxu0 %v2567_v12  ;;  %v4336_v27 = vld [vmem:[#allocation43_spill] sm:$0xff] }
 0x4f8   : > { %1623 = vmatprep.subr.mxu1 %v3676_v29  ;;  %1539 = vmatprep.mubr.f32.mxu1 %v4312_v30  ;;  %v4337_v29 = vld [vmem:[#allocation44_spill] sm:$0xff] }
 0x4f9   : > { %1624 = vmatpush1.msra.mxu1 %v4319_v14  ;;  %2604 = vmatpush3.msra.mxu0 %v3806_v38  ;;  %v4339_v38 = vld [vmem:[#allocation46_spill] sm:$0xff] }
 0x4fa   : > { %1625 = vmatprep.subr.mxu1 %v4320_v15  ;;  %1540 = vmatmul.mubr.f32.gmra.mxu1 %v2567_v12 }
 0x4fb   : > { %1626 = vmatpush1.msra.mxu1 %v4321_v16  ;;  %1685 = vmatprep.mubr.f32.mxu1 %v4312_v30 }
 0x4fc   : > { %1627 = vmatprep.subr.mxu1 %v3688_v34  ;;  %2605 = vmatprep.subr.mxu0 %v3810_v39  ;;  %v4338_v34 = vld [vmem:[#allocation45_spill] sm:$0xff] }
 0x4fd   : > { %1628 = vmatpush1.msra.mxu1 %v4322_v17  ;;  %2606 = vmatpush3.msra.mxu0 %v3810_v39  ;;  %v4340_v39 = vld [vmem:[#allocation47_spill] sm:$0xff] }
 0x4fe   : > { %1629 = vmatprep.subr.mxu1 %v4323_v18  ;;  %2607 = vmatprep.subr.mxu0 %v3814_v40 }
 0x4ff   : > { %1630 = vmatpush1.msra.mxu1 %v4324_v19  ;;  %2608 = vmatpush3.msra.mxu0 %v3814_v40  ;;  %v4341_v40 = vld [vmem:[#allocation48_spill] sm:$0xff] }
 0x500   : > { %1631 = vmatprep.subr.mxu1 %v4325_v20  ;;  %2609 = vmatprep.subr.mxu0 %v3818_v41 }
 0x501   : > { %1632 = vmatpush1.msra.mxu1 %v4326_v21  ;;  %2610 = vmatpush3.msra.mxu0 %v3818_v41  ;;  %v4342_v41 = vld [vmem:[#allocation52_spill] sm:$0xff] }
 0x502   : > { %1633 = vmatprep.subr.mxu1 %v4327_v22  ;;  %2611 = vmatprep.subr.mxu0 %v3822_v42 }
 0x503   : > { %1634 = vmatpush1.msra.mxu1 %v4328_v23  ;;  %2612 = vmatpush3.msra.mxu0 %v3822_v42  ;;  %v4343_v42 = vld [vmem:[#allocation49_spill] sm:$0xff] }
 0x504   : > { %1635 = vmatprep.subr.mxu1 %v4329_v24  ;;  %2613 = vmatprep.subr.mxu0 %v3826_v43  ;;  %v1843_v23 = vld [vmem:[#allocation11 + $0xc0] sm:$0xff]  ;;  %v1841_v24 = vld [vmem:[#allocation11 + $0xb0] sm:$0xff] }
 0x505   : > { %1636 = vmatpush1.msra.mxu1 %v4330_v25  ;;  %2614 = vmatpush3.msra.mxu0 %v3826_v43  ;;  %v4346_v43 = vld [vmem:[#allocation51_spill] sm:$0xff] }
 0x506   : > { %1637 = vmatprep.subr.mxu1 %v4331_v33  ;;  %2615 = vmatprep.subr.mxu0 %v3830_v44  ;;  %v1840_v25 = vld [vmem:[#allocation11 + $0xa8] sm:$0xff]  ;;  %v1839_v33 = vld [vmem:[#allocation11 + $0xa0] sm:$0xff] }
 0x507   : > { %1638 = vmatpush1.msra.mxu1 %v4332_v36  ;;  %2616 = vmatpush3.msra.mxu0 %v3830_v44  ;;  %v4347_v44 = vld [vmem:[#allocation54_spill] sm:$0xff]  ;;  %v1838_v36 = vld [vmem:[#allocation11 + $0x98] sm:$0xff] }
 0x508   : > { %1639 = vmatprep.subr.mxu1 %v4333_v37  ;;  %2617 = vmatprep.subr.mxu0 %v3834_v45  ;;  %v1837_v37 = vld [vmem:[#allocation11 + $0x90] sm:$0xff] }
 0x509   : > { %1640 = vmatpush1.msra.mxu1 %v4334_v6  ;;  %2618 = vmatpush3.msra.mxu0 %v3834_v45  ;;  %v4348_v45 = vld [vmem:[#allocation55_spill] sm:$0xff] }
 0x50a   : > { %1641 = vmatprep.subr.mxu1 %v4335_v8  ;;  %2619 = vmatprep.subr.mxu0 %v3838_v46  ;;  %v1836_v6 = vld [vmem:[#allocation11 + $0x88] sm:$0xff]  ;;  %v1835_v8 = vld [vmem:[#allocation11 + $0x80] sm:$0xff] }
 0x50b   : > { %1642 = vmatpush1.msra.mxu1 %v4336_v27  ;;  %2620 = vmatpush3.msra.mxu0 %v3838_v46  ;;  %v1850_v46 = vld [vmem:[#allocation11 + $0xf8] sm:$0xff] }
 0x50c   : > { %1643 = vmatprep.subr.mxu1 %v4337_v29  ;;  %2621 = vmatprep.subr.mxu0 %v3841_v47  ;;  %v1834_v27 = vld [vmem:[#allocation11 + $0x78] sm:$0xff]  ;;  %v1833_v29 = vld [vmem:[#allocation11 + $0x70] sm:$0xff] }
 0x50d   : > { %1644 = vmatpush1.msra.mxu1 %v4338_v34  ;;  %2622 = vmatpush3.msra.mxu0 %v3841_v47  ;;  %v1849_v47 = vld [vmem:[#allocation11 + $0xf0] sm:$0xff]  ;;  %v1832_v34 = vld [vmem:[#allocation11 + $0x68] sm:$0xff] }
 0x50e   : > { %1645 = vmatprep.subr.mxu1 %v3743_v28  ;;  %2623 = vmatprep.subr.mxu0 %v3844_v48  ;;  %v4344_v28 = vld [vmem:[#allocation50_spill] sm:$0xff] }
 0x50f   : > { %1646 = vmatpush1.msra.mxu1 %v3746_v0  ;;  %2624 = vmatpush3.msra.mxu0 %v3844_v48  ;;  %v4345_v0 = vld [vmem:[#allocation53_spill] sm:$0xff]  ;;  %v1848_v48 = vld [vmem:[#allocation11 + $0xe8] sm:$0xff] }
 0x510   : > { %1647 = vmatprep.subr.mxu1 %v4339_v38  ;;  %2625 = vmatprep.subr.mxu0 %v3848_v49  ;;  %v1831_v38 = vld [vmem:[#allocation11 + $0x60] sm:$0xff] }
 0x511   : > { %1648 = vmatpush1.msra.mxu1 %v4340_v39  ;;  %2626 = vmatpush3.msra.mxu0 %v3848_v49  ;;  %v1847_v49 = vld [vmem:[#allocation11 + $0xe0] sm:$0xff]  ;;  %v1830_v39 = vld [vmem:[#allocation11 + $0x58] sm:$0xff] }
 0x512   : > { %1649 = vmatprep.subr.mxu1 %v4341_v40  ;;  %2627 = vmatprep.subr.mxu0 %v4342_v41  ;;  %v1829_v40 = vld [vmem:[#allocation11 + $0x50] sm:$0xff] }
 0x513   : > { %1650 = vmatpush1.msra.mxu1 %v4343_v42  ;;  %2628 = vmatpush3.msra.mxu0 %v4342_v41  ;;  %v1828_v41 = vld [vmem:[#allocation11 + $0x48] sm:$0xff]  ;;  %v1827_v42 = vld [vmem:[#allocation11 + $0x40] sm:$0xff] }
 0x514   : > { %1651 = vmatprep.subr.mxu1 %v4344_v28  ;;  %2629 = vmatprep.subr.mxu0 %v4345_v0  ;;  %v1826_v28 = vld [vmem:[#allocation11 + $0x38] sm:$0xff] }
 0x515   : > { %1652 = vmatpush1.msra.mxu1 %v4346_v43  ;;  %2630 = vmatpush3.msra.mxu0 %v4345_v0  ;;  %v1825_v0 = vld [vmem:[#allocation11 + $0x30] sm:$0xff]  ;;  %v1824_v43 = vld [vmem:[#allocation11 + $0x28] sm:$0xff] }
 0x516   : > { %1686 = vmatmul.mubr.f32.vlgmr.msra.gmra.mxu1 %v3920_v54  ;;  %2631 = vmatprep.subr.mxu0 %v4347_v44 }
 0x517   : > { %1691 = vmatprep.mubr.f32.mxu1 %v4312_v30  ;;  %2632 = vmatpush3.msra.mxu0 %v4347_v44  ;;  %v1823_v44 = vld [vmem:[#allocation11 + $0x20] sm:$0xff] }
 0x518   : > { %2633 = vmatprep.subr.mxu0 %v4348_v45  ;;  %1863 = vmatprep.subr.mxu1 %v1850_v46  ;;  %v1821_v46 = vld [vmem:[#allocation11 + $0x10] sm:$0xff] }
 0x519   : > { %2634 = vmatpush3.msra.mxu0 %v4348_v45  ;;  %1864 = vmatpush1.msra.mxu1 %v1849_v47  ;;  %v1822_v45 = vld [vmem:[#allocation11 + $0x18] sm:$0xff]  ;;  %v1820_v47 = vld [vmem:[#allocation11 + $0x8] sm:$0xff] }
 0x51a   : > { %1692 = vmatmul.mubr.f32.gmra.mxu1 %v3916_v61  ;;  %2638 = vmatprep.subr.mxu0 %v4312_v30 }
 0x51b   : > { %1927 = vmatprep.mubr.f32.mxu1 %v4312_v30  ;;  %1865 = vmatprep.subr.mxu1 %v1848_v48  ;;  %v1819_v48 = vld [vmem:[#allocation11] sm:$0xff] }
 0x51c   : > { %1866 = vmatpush1.msra.mxu1 %v1847_v49 }
 0x51d   : > { %1867 = vmatprep.subr.mxu1 %v1846_v5 }
 0x51e   : > { %1868 = vmatpush1.msra.mxu1 %v1845_v56 }
 0x51f   : > { %1869 = vmatprep.subr.mxu1 %v1844_v26 }
 0x520   : > { %1870 = vmatpush1.msra.mxu1 %v1843_v23 }
 0x5b6   : > { %v1535_v52 = vpop.f32.mrf.mxu1 }
 0x5b7   : > { %v1536_v55 = vadd.f32 %v1535_v52, %v3881_v63  ;;  %v2602_v52 = vpop.f32.mrf.mxu0 }
 0x5b8   : > { %v1537_v57 = vpop.f32.mrf.mxu1 }
 0x5b9   : > { %v1538_v59 = vadd.f32 %v1537_v57, %v3887_v3 }
 0x5ba   : > { %v1541_v7 = vpop.f32.mrf.mxu1 }
 0x5bb   : > { %v1542_v31 = vadd.f32 %v1541_v7, %v3881_v63 }
 0x5bc   : > { %v1543_v58 = vpop.f32.mrf.mxu1 }
 0x5bd   : > { %v1544_v12 = vadd.f32 %v1543_v58, %v3887_v3  ;;  %v1612_v58 = vpop.f32.mrf.mxu0 }
 0x5d6   : > { %v1687_v9 = vpop.f32.mrf.mxu1 }
 0x5d7   : > { %v1688_v35 = vadd.f32 %v1687_v9, %v3884_v1  ;;  %v1618_v9 = vadd.f32 %v2602_v52, %v3904_v2  ;;  %v4351_v52 = vld [vmem:[#allocation56_spill] sm:$0xff] }
 0x5d8   : > { %v1689_v53 = vpop.f32.mrf.mxu1 }
 0x5d9   : > { %v4032_v10 = vadd.f32 %v1688_v35, %v1536_v55  ;;  %v1690_v32 = vadd.f32 %v1689_v53, %v3890_v4  ;;  %v1613_v35 = vadd.f32 %v1612_v58, %v3904_v2 }
 0x5da   : > { %v1693_v50 = vpop.f32.mrf.mxu1 }
 0x5db   : > { %v1699_v51 = vadd.f32 %v1690_v32, %v1538_v59  ;;  %v1694_v62 = vadd.f32 %v1693_v50, %v3884_v1  ;;  %v2354_v5 = vmul.f32 -1.442695, %v4032_v10 }
 0x5dc   : > { %v1695_v60 = vpop.f32.mrf.mxu1 }
 0x5dd   : > { %v2355_v13 = vmul.f32 -1.442695, %v1699_v51  ;;  %v4038_v14 = vadd.f32 %v1694_v62, %v1542_v31  ;;  %v1696_v15 = vadd.f32 %v1695_v60, %v3890_v4  ;;  %v1842_v4 = vld [vmem:[#allocation11 + $0xb8] sm:$0xff] }
 0x5de   : > { %1871 = vmatprep.subr.mxu1 %v1842_v4 }
 0x5df   : > { %2822 = vpow2.f32 %v2355_v13  ;;  %v1701_v16 = vadd.f32 %v1696_v15, %v1544_v12  ;;  %1872 = vmatpush1.msra.mxu1 %v1841_v24  ;;  %v2356_v49 = vmul.f32 -1.442695, %v4038_v14 }
 0x5e0   : > { %1873 = vmatprep.subr.mxu1 %v1840_v25 }
 0x5e1   : > { %v2357_v17 = vmul.f32 -1.442695, %v1701_v16  ;;  %1874 = vmatpush1.msra.mxu1 %v1839_v33 }
 0x5e2   : > { %1875 = vmatprep.subr.mxu1 %v1838_v36 }
 0x5e3   : > { %2824 = vpow2.f32 %v2357_v17  ;;  %1876 = vmatpush1.msra.mxu1 %v1837_v37 }
 0x5e4   : > { %1877 = vmatprep.subr.mxu1 %v1836_v6 }
 0x5e5   : > { %1878 = vmatpush1.msra.mxu1 %v1835_v8 }
 0x5e6   : > { %1879 = vmatprep.subr.mxu1 %v1834_v27  ;;  %v2019_v27 = vld [vmem:[#allocation13 + $0x60] sm:$0xff] }
 0x5e7   : > { %1880 = vmatpush1.msra.mxu1 %v1833_v29  ;;  %v2854_v29 = vld [vmem:[%s3478_s23] sm:$0xff] }
 0x5e8   : > { %1881 = vmatprep.subr.mxu1 %v1832_v34 }
 0x5e9   : > { %1882 = vmatpush1.msra.mxu1 %v1831_v38  ;;  %v2018_v38 = vld [vmem:[#allocation13 + $0x58] sm:$0xff] }
 0x5ea   : > { %1883 = vmatprep.subr.mxu1 %v1830_v39 }
 0x5eb   : > { %1884 = vmatpush1.msra.mxu1 %v1829_v40  ;;  %v2017_v40 = vld [vmem:[#allocation13 + $0x50] sm:$0xff] }
 0x5ec   : > { %v2823_v18 = vpop.eup %2822  ;;  %1885 = vmatprep.subr.mxu1 %v1828_v41  ;;  %v2855_v41 = vld [vmem:[%s3478_s23 + $0x8] sm:$0xff]  ;;  %s2369_s23 = sshll.u32 %s3279_s0, 8 }
 0x5ed   : > { %v1715_v19 = vadd.f32 1.0, %v2823_v18  ;;  %1886 = vmatpush1.msra.mxu1 %v1827_v42  ;;  %vm1969_vm3 = vcmp.gt.f32.partialorder %v2855_v41, 0.0  ;;  %s4100_s6 = scalar_lea.hbm %s4352_s20, %s2369_s23 }
 0x5ee   : > { %1887 = vmatprep.subr.mxu1 %v1826_v28  ;;  %v2016_v28 = vld [vmem:[#allocation13 + $0x48] sm:$0xff] }
 0x5ef   : > { %2826 = vrcp.f32 %v1715_v19  ;;  %1888 = vmatpush1.msra.mxu1 %v1825_v0  ;;  %v2021_v19 = vld [vmem:[#allocation13 + $0x70] sm:$0xff]  ;;  %v4350_v0 = vmov 0  }
 0x5f0   : > { %v2825_v20 = vpop.eup %2824  ;;  %1889 = vmatprep.subr.mxu1 %v1824_v43  ;;  %v1971_v43 = vsel %vm1969_vm3, 1, %v4350_v0 }
 0x5f1   : > { %v1717_v63 = vadd.f32 1.0, %v2825_v20  ;;  %1890 = vmatpush1.msra.mxu1 %v1823_v44  ;;  %v4349_v20 = vld [vmem:[#allocation57_spill] sm:$0xff] }
 0x5f2   : > { %1891 = vmatprep.subr.mxu1 %v1822_v45  ;;  %v2015_v44 = vld [vmem:[#allocation13 + $0x40] sm:$0xff]  ;;  %v2014_v45 = vld [vmem:[#allocation13 + $0x38] sm:$0xff] }
 0x5f3   : > { %2828 = vrcp.f32 %v1717_v63  ;;  %1892 = vmatpush1.msra.mxu1 %v1821_v46  ;;  %v2013_v46 = vld [vmem:[#allocation13 + $0x30] sm:$0xff] }
 0x5f4   : > { %1893 = vmatprep.subr.mxu1 %v1820_v47  ;;  %2830 = vpow2.f32 %v2356_v49  ;;  %v2012_v47 = vld [vmem:[#allocation13 + $0x28] sm:$0xff]  ;;  %v2010_v49 = vld [vmem:[#allocation13 + $0x18] sm:$0xff] }
 0x5f5   : > { %1894 = vmatpush1.msra.mxu1 %v1819_v48  ;;  %2832 = vpow2.f32 %v2354_v5  ;;  %v2011_v48 = vld [vmem:[#allocation13 + $0x20] sm:$0xff]  ;;  %v2009_v5 = vld [vmem:[#allocation13 + $0x10] sm:$0xff] }
 0x5fc   : > { %v2827_v21 = vpop.eup %2826 }
 0x5fd   : > { %v1726_v1 = vmul.f32 %v2827_v21, %v3920_v54 }
 0x5ff   : > { %2635 = vmatprep.mubr.f32.mxu0 %v1726_v1 }
 0x600   : > { %v2829_v3 = vpop.eup %2828 }
 0x601   : > { %v1727_v22 = vmul.f32 %v2829_v3, %v3916_v61  ;;  %v2831_v56 = vpop.eup %2830 }
 0x602   : > { %v2833_v26 = vpop.eup %2832  ;;  %v1716_v57 = vadd.f32 1.0, %v2831_v56  ;;  %v2008_v56 = vld [vmem:[#allocation13 + $0x8] sm:$0xff] }
 0x603   : > { %2636 = vmatmul.mubr.f32.vlgmr.msra.gmra.mxu0 %v1727_v22  ;;  %v1714_v7 = vadd.f32 1.0, %v2833_v26  ;;  %v2007_v26 = vld [vmem:[#allocation13] sm:$0xff] }
 0x604   : > { %2834 = vrcp.f32 %v1716_v57  ;;  %2670 = vmatprep.mubr.msk.f32.mxu0 %vm3163_vm4, %v4312_v30 }
 0x605   : > { %2836 = vrcp.f32 %v1714_v7 }
 0x611   : > { %v2835_v31 = vpop.eup %2834 }
 0x612   : > { %v2837_v51 = vpop.eup %2836  ;;  %v1812_v62 = vsub.f32 1.0, %v2835_v31 }
 0x613   : > { %v1811_v60 = vsub.f32 1.0, %v2837_v51 }
 0x614   : > { %v1814_v14 = vmul.f32 %v1812_v62, %v3916_v61  ;;  %v2020_v61 = vld [vmem:[#allocation13 + $0x68] sm:$0xff] }
 0x615   : > { %v1813_v16 = vmul.f32 %v1811_v60, %v3920_v54  ;;  %v4064_v54 = vld [vmem:[%s4183_s13] sm:$0x3] }
 0x616   : > { %v1860_v63 = vrot.slane %v4064_v54, %v4349_v20  ;;  %v1856_v57 = vrot.slane %v4064_v54, %v4351_v52 }
 0x6c3   : > { %v2637_v55 = vpop.f32.mrf.mxu0 }
 0x6c4   : > { %v1804_v53 = vadd.f32 %v2637_v55, %v1618_v9 }
 0x6c5   : > { %v1794_v59 = vpop.f32.mrf.mxu0 }
 0x6c6   : > { %v1806_v32 = vadd.f32 %v3910_v11, %v1804_v53  ;;  %v1803_v10 = vadd.f32 %v1794_v59, %v1613_v35 }
 0x6c8   : > { %2838 = vtanh.f32 %v1806_v32  ;;  %v1805_v50 = vadd.f32 %v3910_v11, %v1803_v10  ;;  %v2022_v11 = vld [vmem:[#allocation13 + $0x78] sm:$0xff] }
 0x6c9   : > { %2639 = vmatpush3.msra.mxu0 %v2022_v11 }
 0x6ca   : > { %2840 = vtanh.f32 %v1805_v50  ;;  %2640 = vmatprep.subr.mxu0 %v4312_v30  ;;  %v1974_v50 = vpop.permute.xlu0 %1973 }
 0x6cb   : > { %2641 = vmatpush3.msra.mxu0 %v2021_v19  ;;  %vm1978_vm5 = vcmp.eq.s32.totalorder %v1974_v50, 1 }
 0x6cc   : > { %2642 = vmatprep.subr.mxu0 %v4312_v30 }
 0x6cd   : > { %2643 = vmatpush3.msra.mxu0 %v2020_v61 }
 0x6ce   : > { %2644 = vmatprep.subr.mxu0 %v4312_v30 }
 0x6cf   : > { %2645 = vmatpush3.msra.mxu0 %v2019_v27 }
 0x6d0   : > { %2646 = vmatprep.subr.mxu0 %v4312_v30 }
 0x6d1   : > { %2647 = vmatpush3.msra.mxu0 %v2018_v38 }
 0x6d2   : > { %2648 = vmatprep.subr.mxu0 %v4312_v30 }
 0x6d3   : > { %2649 = vmatpush3.msra.mxu0 %v2017_v40 }
 0x6d4   : > { %2650 = vmatprep.subr.mxu0 %v4312_v30 }
 0x6d5   : > { %v2839_v12 = vpop.eup %2838  ;;  %2651 = vmatpush3.msra.mxu0 %v2016_v28 }
 0x6d6   : > { %v1810_v13 = vmul.f32 %v2839_v12, %v2835_v31  ;;  %2652 = vmatprep.subr.mxu0 %v4312_v30 }
 0x6d7   : > { %v2841_v2 = vpop.eup %2840  ;;  %2653 = vmatpush3.msra.mxu0 %v2015_v44 }
 0x6d8   : > { %v1809_v15 = vmul.f32 %v2841_v2, %v2837_v51  ;;  %v1816_v17 = vadd.f32 %v1814_v14, %v1810_v13  ;;  %2654 = vmatprep.subr.mxu0 %v4312_v30 }
 0x6d9   : > { %2655 = vmatpush3.msra.mxu0 %v2014_v45 }
 0x6da   : > { %v1815_v18 = vadd.f32 %v1813_v16, %v1809_v15  ;;  %1818 = vst [vmem:[%s4053_s15 + $0x8] sm:$0xff] %v1816_v17  ;;  %2656 = vmatprep.subr.mxu0 %v4312_v30 }
 0x6db   : > { %2657 = vmatpush3.msra.mxu0 %v2013_v46 }
 0x6dc   : > { %1928 = vmatmul.mubr.f32.vlgmr.msra.gmra.mxu1 %v1815_v18  ;;  %1817 = vst [vmem:[%s4053_s15] sm:$0xff] %v1815_v18  ;;  %2658 = vmatprep.subr.mxu0 %v4312_v30  ;;  %v1992_v18 = vpop.permute.xlu0 %1991 }
 0x6dd   : > { %1933 = vmatprep.mubr.f32.mxu1 %v4312_v30  ;;  %2659 = vmatpush3.msra.mxu0 %v2012_v47  ;;  %v1997_v61 = vrot.slane %v1992_v18, %v4351_v52 }
 0x6de   : > { %2660 = vmatprep.subr.mxu0 %v4312_v30 }
 0x6df   : > { %2661 = vmatpush3.msra.mxu0 %v2011_v48 }
 0x6e0   : > { %1934 = vmatmul.mubr.f32.gmra.mxu1 %v1816_v17  ;;  %2662 = vmatprep.subr.mxu0 %v4312_v30 }
 0x6e1   : > { %2663 = vmatpush3.msra.mxu0 %v2010_v49 }
 0x6e2   : > { %2664 = vmatprep.subr.mxu0 %v4312_v30 }
 0x6e3   : > { %2665 = vmatpush3.msra.mxu0 %v2009_v5 }
 0x6e4   : > { %2666 = vmatprep.subr.mxu0 %v4312_v30 }
 0x6e5   : > { %2667 = vmatpush3.msra.mxu0 %v2008_v56 }
 0x6e6   : > { %2668 = vmatprep.subr.mxu0 %v4312_v30 }
 0x6e7   : > { %2669 = vmatpush3.msra.mxu0 %v2007_v26 }
 0x79c   : > { %v4068_v21 = vpop.f32.mrf.mxu1 }
 0x79d   : > { %v1930_v7 = vadd.f32 %v4068_v21, %v1856_v57 }
 0x79e   : > { %v1931_v1 = vpop.f32.mrf.mxu1 }
 0x79f   : > { %v1932_v3 = vadd.f32 %v1931_v1, %v1860_v63 }
 0x7a0   : > { %v4070_v22 = vpop.f32.mrf.mxu1 }
 0x7a1   : > { %v2358_v23 = vmul.f32 -1.442695, %v1932_v3  ;;  %v1936_v58 = vadd.f32 %v4070_v22, %v1856_v57 }
 0x7a2   : > { %v1937_v4 = vpop.f32.mrf.mxu1 }
 0x7a3   : > { %2842 = vpow2.f32 %v2358_v23  ;;  %v1938_v24 = vadd.f32 %v1937_v4, %v1860_v63 }
 0x7a5   : > { %v2359_v25 = vmul.f32 -1.442695, %v1938_v24 }
 0x7a7   : > { %2844 = vpow2.f32 %v2359_v25 }
 0x7b0   : > { %v2843_v33 = vpop.eup %2842 }
 0x7b1   : > { %v1948_v36 = vadd.f32 1.0, %v2843_v33 }
 0x7b3   : > { %2846 = vrcp.f32 %v1948_v36 }
 0x7b4   : > { %v2845_v37 = vpop.eup %2844 }
 0x7b5   : > { %v1949_v6 = vadd.f32 1.0, %v2845_v37 }
 0x7b7   : > { %2848 = vrcp.f32 %v1949_v6 }
 0x7b8   : > { %2850 = vtanh.f32 %v1930_v7 }
 0x7b9   : > { %2852 = vtanh.f32 %v1936_v58 }
 0x7c0   : > { %v2847_v8 = vpop.eup %2846 }
 0x7c1   : > { %v1954_v34 = vmul.f32 %v2854_v29, %v2847_v8 }
 0x7c3   : > { %1958 = vperm.xlu1 %2797, %v1954_v34  }
 0x7c4   : > { %v2849_v39 = vpop.eup %2848 }
 0x7c5   : > { %v1955_v42 = vmul.f32 %v2855_v41, %v2849_v39  ;;  %v2851_v55 = vpop.eup %2850 }
 0x7c6   : > { %v2853_v35 = vpop.eup %2852 }
 0x7c7   : > { %1963 = vperm.xlu1 %2797, %v1955_v42  }
 0x7cb   : > { %1976 = vperm.xlu1 %2797, %v1971_v43  }
 0x83e   : > { %v1959_v9 = vpop.permute.xlu1 %1958 }
 0x83f   : > { %v1966_v59 = vmul.f32 %v2851_v55, %v1959_v9 }
 0x841   : > { %v1980_v51 = vsel %vm1978_vm5, %v1966_v59, -1e+09 }
 0x842   : > { %v1964_v53 = vpop.permute.xlu1 %1963 }
 0x843   : > { %v1967_v32 = vmul.f32 %v2853_v35, %v1964_v53 }
 0x845   : > { %v1982_v10 = vadd.f32 %v1967_v32, %v1966_v59 }
 0x846   : > { %v1977_v31 = vpop.permute.xlu1 %1976 }
 0x847   : > { %v1983_v30 = vrot.slane %v1982_v10, 4  ;;  %vm1979_vm6 = vcmp.eq.s32.totalorder %v1977_v31, 1 }
 0x848   : > { %v1981_v62 = vsel %vm1979_vm6, %v1967_v32, -1e+09 }
 0x849   : > { %v1984_v60 = vadd.f32 %v1983_v30, %v1982_v10  ;;  %v1999_v12 = vmax.f32 %v1980_v51, %v1981_v62 }
 0x84b   : > { %v1985_v13 = vrot.slane %v1984_v60, 2  ;;  %v2000_v14 = vrot.slane %v1999_v12, 4 }
 0x84d   : > { %v1986_v2 = vadd.f32 %v1985_v13, %v1984_v60  ;;  %v2001_v15 = vmax.f32 %v1999_v12, %v2000_v14 }
 0x84f   : > { %v1987_v16 = vrot.slane %v1986_v2, 1  ;;  %v2002_v17 = vrot.slane %v2001_v15, 2 }
 0x851   : > { %v1988_v11 = vadd.f32 %v1987_v16, %v1986_v2  ;;  %v2003_v19 = vmax.f32 %v2001_v15, %v2002_v17 }
 0x853   : > { %v2004_v54 = vrot.slane %v2003_v19, 1  ;;  %v1998_v63 = vmul.f32 %v1997_v61, %v1988_v11 }
 0x855   : > { %v2005_v20 = vmax.f32 %v2003_v19, %v2004_v54 }
 0x857   : > { %v2006_v21 = vadd.f32 %v2005_v20, %v1998_v63 }
 0x859   : > { %2671 = vmatmul.mubr.f32.vlgmr.msra.gmra.mxu0 %v2006_v21 }
 0x85a   : > { %3053 = shalt.err (!%p3050_p6)
}
 0x85b   : > { %s3054_s29 = scalar_lea.hbm %s4100_s6, 256  ;;  %s3058_s22 = scalar_lea.hbm %s4352_s20, 512 }
 0x85c   : > { %p3055_p4 = scmp.ne.s32.totalorder %s4100_s6, %s3054_s29  ;;  %p3059_p11 = scmp.lt.s32.totalorder %s4100_s6, %s4352_s20 }
 0x85d   : > { %p3060_p13 = scmp.lt.s32.totalorder %s3058_s22, %s3054_s29 }
 0x85e   : > { %p3056_p10 = pnand %p3055_p4, %p4353_p2 }
 0x85f   : > { %p3061_p0 = por %p3060_p13, %p3059_p11 }
 0x860   : > { %p3057_p9 = pneg %p3056_p10 }
 0x862   : > { %p3062_p5 = pnand %p3061_p0, %p3057_p9 }
 0x864   : > { %3065 = shalt.err (!%p3062_p5)
}
 0x865   : > { %s3165_s1 = smov 128   ;;  %s3166_s19 = smov 8  }
 0x866   : > { %2700 = dma.vmem_to_hbm [thread:$0]  (%p4353_p2), %s4094_s17, 256, %s4100_s6, %s2100_s21, %s3165_s1, %s3165_s1, %s3166_s19  }
 0x867   : > { %s4354_s12 = sld [smem:[#allocation68_spill]]  ;;  %s2361_s30 = sshll.u32 %s3279_s0, 4 }
 0x868   : > { %s697_s29 = scalar_lea.vmem [#allocation14], %s3441_s26  ;;  %s4355_s16 = sld [smem:[#allocation69_spill]] }
 0x869   : > { %s2113_s18 = sshll.u32 %s697_s29, 4  ;;  %s2096_s2 = scalar_lea.sflag [#allocation4], %s3441_s26  ;;  %s2114_s18 = int_to_ptr.vmem [resolvable:$true] %s2113_s18 }
 0x86a   : > { %s3066_s3 = scalar_lea.vmem %s2114_s18, 16  ;;  %s3167_s17 = smov [#allocation14]  }
 0x86b   : > { %p3067_p8 = scmp.ne.s32.totalorder %s2114_s18, %s3066_s3  ;;  %s3070_s0 = sshll.u32 %s3167_s17, 4  ;;  %s3071_s0 = int_to_ptr.vmem [resolvable:$false] %s3070_s0 }
 0x86c   : > { %s3072_s6 = scalar_lea.vmem %s3071_s0, 32  ;;  %p3073_p1 = scmp.lt.s32.totalorder %s2114_s18, %s3071_s0 }
 0x86d   : > { %v2023_v1 = vld [vmem:[%s4354_s12] sm:$0x1]  ;;  %p3068_p7 = pnand %p3067_p8, %p4353_p2  ;;  %p3074_p3 = scmp.lt.s32.totalorder %s3072_s6, %s3066_s3 }
 0x86e   : > { %s4133_s23 = scalar_lea.hbm %s4355_s16, %s2361_s30 }
 0x86f   : > { %p3069_p12 = pneg %p3068_p7  ;;  %p3075_p6 = por %p3074_p3, %p3073_p1 }
 0x871   : > { %p3076_p4 = pnand %p3075_p6, %p3069_p12 }
 0x919   : > { %v2090_v3 = vpop.f32.mrf.mxu0 }
 0x91a   : > { %v2091_v22 = vadd.f32 %v2090_v3, %v2023_v1 }
 0x91b   : > { %v2672_v23 = vpop.f32.mrf.mxu0 }
 0x91c   : > { %2094 = vst [vmem:[%s697_s29] sm:$0x1] %v2091_v22 }
 0x91d   : > { %3079 = shalt.err (!%p3076_p4)
}
 0x91e   : > { %s3080_s21 = scalar_lea.hbm %s4133_s23, 16  ;;  %s3084_s19 = scalar_lea.hbm %s4355_s16, 32 }
 0x91f   : > { %p3081_p10 = scmp.ne.s32.totalorder %s4133_s23, %s3080_s21  ;;  %p3085_p13 = scmp.lt.s32.totalorder %s4133_s23, %s4355_s16 }
 0x920   : > { %p3086_p0 = scmp.lt.s32.totalorder %s3084_s19, %s3080_s21 }
 0x921   : > { %p3082_p9 = pnand %p3081_p10, %p4353_p2 }
 0x922   : > { %p3087_p5 = por %p3086_p0, %p3085_p13 }
 0x923   : > { %p3083_p11 = pneg %p3082_p9 }
 0x925   : > { %p3088_p8 = pnand %p3087_p5, %p3083_p11 }
 0x927   : > { %3091 = shalt.err (!%p3088_p8)
}
 0x928   : > { %2699 = dma.vmem_to_hbm [thread:$0]  (%p4353_p2), %s2114_s18, 16, %s4133_s23, %s2096_s2  }
 0x929 PF: > { %s2141_s3 = sand.u32 1, %s3134_s24   ;;  %p4356_p7 = scmp.ne.s32.totalorder %s4272_s4, 0 }
 0x92a   : > { %p4357_p12 = scmp.ge.s32.totalorder %s3146_s27, 2  ;;  %s2142_s12 = scalar_lea.sflag [#allocation4], %s2141_s3 }
 0x92c   : > { %p2727_p1 = pnand %p4357_p12, %p4356_p7 }
 0x92e   : > { %p2728_p3 = pneg %p2727_p1 }
 0x930   : > { %3125 = dma.done.wait (%p2728_p3), %s2142_s12, 16  }
 0x931   : > { %3127 = vsyncadd (%p2728_p3), %s2142_s12, 4294967280  ;;  %s2150_s30 = scalar_lea.sflag [#allocation16], %s2141_s3 }
 0x932   : > { %3129 = dma.done.wait (%p2728_p3), %s2150_s30, 256  }
 0x933   : > { %3131 = vsyncadd (%p2728_p3), %s2150_s30, 4294967040  ;;  %s4358_s27 = sld [smem:[#allocation24_spill]]  ;;  %s4361_s24 = smov %s3138_s25 }
 0x934   : > { %s4359_s28 = sld [smem:[#allocation23_spill]] }
 0x935   : > { %s4360_s26 = sld [smem:[#allocation25_spill]] }
 0x939   : > { %p37_p2 = scmp.ge.s32.totalorder %s4358_s27, 4  }
 0x93a   : > { %s4362_s25 = smov %s4359_s28 }
 0x93b   :  { %39 = sbr.rel (!%p37_p2) target bundleno = 24 (0x18), region = 179 }
 0x940   :  { %2155 = vsyncpa [#allocation3], 1 }
 0x941   :  { %2157 = vsyncpa [#allocation3 + $0x1], 1 }
 0x942   :  { %2158 = vsyncpa [#allocation6], 1 }
 0x943   :  { %2159 = vsyncpa [#allocation9], 1 }
 0x944   :  { %2160 = vsyncpa [#allocation12], 1 }
 0x945   :  { %2161 = vsyncpa [#allocation4], 1 }
 0x946   :  { %2163 = vsyncpa [#allocation4 + $0x1], 1 }
 0x947   :  { %2164 = vsyncpa [#allocation16], 1 }
 0x948   :  { %2166 = vsyncpa [#allocation16 + $0x1], 1 }

// kernel: tpu_custom_call.1
= control target key start
LH: loop header
LB: loop body
LE: loop exit
PB: predicated region body
PF: predicated region fallthrough
CT: control target
= control target key end

     0   :  { %s4170_s0 = inlined_call_operand.vmem [shape: f32[2,16,32], index: 0, kind: input, shape index: {}]   ;;  %s4171_s1 = inlined_call_operand.hbm [shape: f32[2,16,16], index: 1, kind: input, shape index: {}]   ;;  %s4172_s2 = inlined_call_operand.vmem [shape: f32[2,16,1], index: 2, kind: input, shape index: {}]   ;;  %s4173_s3 = inlined_call_operand.vmem [shape: f32[2,1,1], index: 3, kind: input, shape index: {}]   ;;  %s4174_s4 = inlined_call_operand.hbm [shape: f32[32,128], index: 4, kind: input, shape index: {}]   ;;  %s4175_s5 = inlined_call_operand.vmem [shape: f32[1,128], index: 5, kind: input, shape index: {}]   ;;  %s4176_s6 = inlined_call_operand.hbm [shape: f32[128,384], index: 6, kind: input, shape index: {}]   ;;  %s4177_s7 = inlined_call_operand.vmem [shape: f32[1,384], index: 7, kind: input, shape index: {}]   ;;  %s4178_s8 = inlined_call_operand.hbm [shape: f32[128,256], index: 8, kind: input, shape index: {}]   ;;  %s4179_s9 = inlined_call_operand.vmem [shape: f32[1,256], index: 9, kind: input, shape index: {}]   ;;  %s4180_s10 = inlined_call_operand.hbm [shape: f32[128,128], index: 10, kind: input, shape index: {}]   ;;  %s4181_s11 = inlined_call_operand.vmem [shape: f32[1,128], index: 11, kind: input, shape index: {}]   ;;  %s4182_s12 = inlined_call_operand.hbm [shape: f32[128,256], index: 12, kind: input, shape index: {}]   ;;  %s4183_s13 = inlined_call_operand.vmem [shape: f32[1,256], index: 13, kind: input, shape index: {}]   ;;  %s4184_s14 = inlined_call_operand.hbm [shape: f32[128,128], index: 14, kind: input, shape index: {}]   ;;  %s4185_s15 = inlined_call_operand.vmem [shape: f32[1,128], index: 15, kind: input, shape index: {}]   ;;  %s4186_s16 = inlined_call_operand.hbm [shape: f32[2,1,128], index: 16, kind: output, shape index: {0}]   ;;  %s4187_s17 = inlined_call_operand.hbm [shape: f32[2,16,128], index: 17, kind: output, shape index: {1}]  }
   0x1   :  { %4242 = sst [smem:[#allocation58_spill]] %s4170_s0 }
   0x2   :  { %4243 = sst [smem:[#allocation59_spill]] %s4171_s1 }
   0x3   :  { %4244 = sst [smem:[#allocation60_spill]] %s4172_s2 }
   0x4   :  { %4245 = sst [smem:[#allocation61_spill]] %s4173_s3 }
   0x5   :  { %4246 = sst [smem:[#allocation62_spill]] %s4174_s4 }
   0x6   :  { %4247 = sst [smem:[#allocation63_spill]] %s4176_s6 }
   0x7   :  { %4248 = sst [smem:[#allocation64_spill]] %s4178_s8 }
   0x8   :  { %4249 = sst [smem:[#allocation65_spill]] %s4180_s10 }
   0x9   :  { %4250 = sst [smem:[#allocation66_spill]] %s4182_s12 }
   0xa   :  { %4251 = sst [smem:[#allocation67_spill]] %s4184_s14 }
   0xb   :  { %4252 = sst [smem:[#allocation68_spill]] %s4185_s15 }
   0xc   :  { %4253 = sst [smem:[#allocation69_spill]] %s4186_s16 }
   0xd   :  { %4254 = sst [smem:[#allocation70_spill]] %s4187_s17 }
   0xe   :  { %23 = vsyncpa [#allocation3], 0 }
   0xf   :  { %25 = vsyncpa [#allocation3 + $0x1], 0 }
  0x10   :  { %26 = vsyncpa [#allocation6], 0 }
  0x11   :  { %27 = vsyncpa [#allocation9], 0 }
  0x12   :  { %28 = vsyncpa [#allocation12], 0 }
  0x13   :  { %29 = vsyncpa [#allocation4], 0 }
  0x14   :  { %31 = vsyncpa [#allocation4 + $0x1], 0 }
  0x15   :  { %32 = vsyncpa [#allocation16], 0 }
  0x16   :  { %34 = vsyncpa [#allocation16 + $0x1], 0  ;;  %s3258_s24 = smov 0   ;;  %s3260_s25 = smov 0  }
  0x17   :  { %s3262_s26 = smov 0   ;;  %s3264_s27 = smov 0  }
  0x18 LB: > { %4255 = sst [smem:[#allocation23_spill]] %s3142_s26  ;;  %s3148_s28 = smov [#allocation5]   ;;  %s3146_s27 = sphi %s3264_s27, %s4358_s27   ;;  %s3142_s26 = sphi %s3262_s26, %s4360_s26   ;;  %s3138_s25 = sphi %s3260_s25, %s4362_s25   ;;  %s3134_s24 = sphi %s3258_s24, %s4361_s24  }
  0x19   : > { %s465_s29 = sshll.u32 %s3148_s28, 4  ;;  %s3279_s0 = sadd.s32 4294967295, %s3146_s27   ;;  %s466_s29 = int_to_ptr.vmem [resolvable:$true] %s465_s29 }
  0x1a   : > { %p2318_p0 = scmp.ge.s32.totalorder %s3146_s27, 1  ;;  %p4196_p1 = scmp.eq.s32.totalorder %s3279_s0, 0 }
  0x1b   : > { %p453_p2 = scmp.lt.s32.totalorder %s3146_s27, 3  ;;  %s3149_s18 = smov [#allocation8]  }
  0x1c   : > { %s497_s19 = sshll.u32 %s3149_s18, 4  ;;  %s3150_s20 = smov [#allocation11]   ;;  %s3297_s19 = int_to_ptr.vmem [resolvable:$true] %s497_s19 }
  0x1d   : > { %p3284_p3 = pnand %p2318_p0, %p453_p2  ;;  %s3299_s21 = sshll.u32 %s3150_s20, 4  ;;  %s530_s21 = int_to_ptr.vmem [resolvable:$true] %s3299_s21 }
  0x1e   : > { %s2867_s23 = scalar_lea.vmem %s466_s29, 512  ;;  %p2875_p11 = scmp.lt.s32.totalorder %s466_s29, %s466_s29 }
  0x1f   : > { %s4256_s30 = scalar_select %p3284_p3, 1, 0 }
  0x20   : > { %p2703_p5 = pneg %p3284_p3  ;;  %p2868_p8 = scmp.ne.s32.totalorder %s466_s29, %s2867_s23 }
  0x21   : > { %p2876_p12 = scmp.lt.s32.totalorder %s2867_s23, %s2867_s23 }
  0x22   : > { %p3293_p6 = pnand %p2703_p5, %p4196_p1 }
  0x23   : > { %p2877_p13 = por %p2876_p12, %p2875_p11 }
  0x24   : > { %p3303_p7 = pneg %p3293_p6 }
  0x26   : > { %p2870_p9 = pnand %p2868_p8, %p3303_p7 }
  0x28   : > { %p2871_p10 = pneg %p2870_p9 }
  0x2a   : > { %p2878_p0 = pnand %p2877_p13, %p2871_p10 }
  0x2c   : > { %2881 = shalt.err (!%p2878_p0)
}
  0x2d   : > { %s4191_s28 = smov 128   ;;  %s4193_s18 = smov 8  }
  0x2e   : > { %s4259_s4 = sld [smem:[#allocation62_spill]]  ;;  %s2893_s15 = scalar_lea.vmem %s3297_s19, 4096 }
  0x2f   : > { %p2894_p2 = scmp.ne.s32.totalorder %s3297_s19, %s2893_s15  ;;  %p2901_p9 = scmp.lt.s32.totalorder %s3297_s19, %s3297_s19 }
  0x30   : > { %p2902_p10 = scmp.lt.s32.totalorder %s2893_s15, %s2893_s15 }
  0x31   : > { %p2896_p5 = pnand %p2894_p2, %p3303_p7 }
  0x32   : > { %p2903_p11 = por %p2902_p10, %p2901_p9 }
  0x33   : > { %p2897_p8 = pneg %p2896_p5 }
  0x34   : > { %2706 = dma.hbm_to_vmem [thread:$0]  (!%p3293_p6), %s4259_s4, 512, %s466_s29, [#allocation6], %s4191_s28, %s4191_s28, %s4193_s18  }
  0x35   : > { %p2904_p12 = pnand %p2903_p11, %p2897_p8 }
  0x37   : > { %2907 = shalt.err (!%p2904_p12)
}
  0x38   : > { %s3153_s23 = smov 256   ;;  %s3154_s17 = smov 16  }
  0x39   : > { %s4260_s8 = sld [smem:[#allocation64_spill]]  ;;  %s2919_s20 = scalar_lea.vmem %s530_s21, 4096 }
  0x3a   : > { %p2920_p13 = scmp.ne.s32.totalorder %s530_s21, %s2919_s20  ;;  %p2927_p5 = scmp.lt.s32.totalorder %s530_s21, %s530_s21 }
  0x3b   : > { %p2928_p8 = scmp.lt.s32.totalorder %s2919_s20, %s2919_s20 }
  0x3c   : > { %p2922_p0 = pnand %p2920_p13, %p3303_p7 }
  0x3d   : > { %p2929_p9 = por %p2928_p8, %p2927_p5 }
  0x3e   : > { %p2923_p2 = pneg %p2922_p0 }
  0x3f   : > { %2712 = dma.hbm_to_vmem [thread:$0]  (!%p3293_p6), %s4260_s8, 4096, %s3297_s19, [#allocation9], %s3153_s23, %s3153_s23, %s3154_s17  }
  0x40   : > { %p2930_p10 = pnand %p2929_p9, %p2923_p2 }
  0x42   : > { %2933 = shalt.err (!%p2930_p10)
}
  0x43   : > { %s4261_s12 = sld [smem:[#allocation66_spill]]  ;;  %s3155_s16 = smov [#allocation7]  }
  0x44   : > { %s481_s19 = sshll.u32 %s3155_s16, 4  ;;  %s482_s19 = int_to_ptr.vmem [resolvable:$true] %s481_s19 }
  0x45   : > { %s2945_s29 = scalar_lea.vmem %s482_s19, 6144  ;;  %p2953_p0 = scmp.lt.s32.totalorder %s482_s19, %s482_s19 }
  0x46   : > { %p2946_p11 = scmp.ne.s32.totalorder %s482_s19, %s2945_s29  ;;  %p2954_p4 = scmp.lt.s32.totalorder %s2945_s29, %s2945_s29 }
  0x48   : > { %p2948_p12 = pnand %p2946_p11, %p3303_p7  ;;  %p2955_p5 = por %p2954_p4, %p2953_p0 }
  0x49   : > { %2718 = dma.hbm_to_vmem [thread:$0]  (!%p3293_p6), %s4261_s12, 4096, %s530_s21, [#allocation12], %s3153_s23, %s3153_s23, %s3154_s17  }
  0x4a   : > { %p2949_p13 = pneg %p2948_p12 }
  0x4c   : > { %p2956_p2 = pnand %p2955_p5, %p2949_p13 }
  0x4e   : > { %2959 = shalt.err (!%p2956_p2)
}
  0x4f   : > { %s3156_s20 = smov 384   ;;  %s3157_s18 = smov 24  }
  0x50   : > { %s4262_s6 = sld [smem:[#allocation63_spill]]  ;;  %s3158_s21 = smov [#allocation10]  }
  0x51   : > { %s513_s23 = sshll.u32 %s3158_s21, 4  ;;  %s3159_s15 = smov [#allocation13]   ;;  %s514_s23 = int_to_ptr.vmem [resolvable:$true] %s513_s23 }
  0x52   : > { %s545_s16 = sshll.u32 %s3159_s15, 4  ;;  %s2971_s4 = scalar_lea.vmem %s514_s23, 2048  ;;  %s546_s16 = int_to_ptr.vmem [resolvable:$true] %s545_s16 }
  0x53   : > { %p2972_p8 = scmp.ne.s32.totalorder %s514_s23, %s2971_s4  ;;  %p2979_p10 = scmp.lt.s32.totalorder %s514_s23, %s514_s23 }
  0x54   : > { %p2980_p11 = scmp.lt.s32.totalorder %s2971_s4, %s2971_s4 }
  0x55   : > { %p2974_p4 = pnand %p2972_p8, %p3303_p7 }
  0x56   : > { %2709 = dma.hbm_to_vmem [thread:$0]  (!%p3293_p6), %s4262_s6, 6144, %s482_s19, [#allocation6], %s3156_s20, %s3156_s20, %s3157_s18  }
  0x57   : > { %p2975_p9 = pneg %p2974_p4  ;;  %p2981_p12 = por %p2980_p11, %p2979_p10 }
  0x59   : > { %p2982_p13 = pnand %p2981_p12, %p2975_p9 }
  0x5b   : > { %2985 = shalt.err (!%p2982_p13)
}
  0x5c   : > { %s4263_s29 = smov 8   ;;  %s4264_s18 = smov 128  }
  0x5d   : > { %s4265_s10 = sld [smem:[#allocation65_spill]]  ;;  %s2997_s28 = scalar_lea.vmem %s546_s16, 2048 }
  0x5e   : > { %p2998_p0 = scmp.ne.s32.totalorder %s546_s16, %s2997_s28  ;;  %p3005_p8 = scmp.lt.s32.totalorder %s546_s16, %s546_s16 }
  0x5f   : > { %p3006_p4 = scmp.lt.s32.totalorder %s2997_s28, %s2997_s28 }
  0x60   : > { %p3000_p5 = pnand %p2998_p0, %p3303_p7 }
  0x61   : > { %p3007_p10 = por %p3006_p4, %p3005_p8 }
  0x62   : > { %p3001_p2 = pneg %p3000_p5 }
  0x63   : > { %2715 = dma.hbm_to_vmem [thread:$0]  (!%p3293_p6), %s4265_s10, 2048, %s514_s23, [#allocation9], %s4264_s18, %s4264_s18, %s4263_s29  }
  0x64   : > { %p3008_p9 = pnand %p3007_p10, %p3001_p2 }
  0x66   : > { %3011 = shalt.err (!%p3008_p9)
}
  0x67   : > { %s4266_s14 = sld [smem:[#allocation67_spill]]  ;;  %s2317_s1 = sadd.s32 4294967294, %s3146_s27  }
  0x68   : > { %s3366_s22 = sadd.s32 1, %s3146_s27   ;;  %s73_s23 = sadd.s32 1, %s3142_s26 }
  0x69   : > { %4267 = sst [smem:[#allocation24_spill]] %s3366_s22  ;;  %s70_s21 = ssub.s32 %s3146_s27, %s3366_s22 }
  0x6a   : > { %p71_p7 = scmp.eq.s32.totalorder %s70_s21, 0  ;;  %p80_p11 = scmp.ne.s32.totalorder %s3142_s26, %s3138_s25 }
  0x6b   : > { %p81_p12 = scmp.eq.s32.totalorder %s3146_s27, 0  ;;  %p86_p13 = scmp.ne.s32.totalorder %s3138_s25, %s3134_s24 }
  0x6c   : > { %s3377_s15 = scalar_select %p71_p7, %s3142_s26, %s73_s23  }
  0x6d   : > { %2721 = dma.hbm_to_vmem [thread:$0]  (!%p3293_p6), %s4266_s14, 2048, %s546_s16, [#allocation12], %s4264_s18, %s4264_s18, %s4263_s29  }
  0x6e   : > { %4268 = sst [smem:[#allocation25_spill]] %s3377_s15  ;;  %p3379_p0 = por %p81_p12, %p80_p11 }
  0x6f   : > { %p3385_p6 = por %p4196_p1, %p86_p13  ;;  %p414_p5 = scmp.eq.s32.totalorder %s3279_s0, 1 }
  0x70   : > { %p420_p2 = scmp.eq.s32.totalorder %s2317_s1, 1  ;;  %p2739_p8 = scmp.lt.s32.totalorder %s3146_s27, 2 }
  0x71   : > { %s4270_s16 = scalar_select %p3385_p6, 1, 0 }
  0x72   : > { %s570_s20 = sand.u32 1, %s3142_s26   ;;  %p3392_p4 = por %p414_p5, %p80_p11 }
  0x73   : > { %p3396_p10 = por %p420_p2, %p86_p13  ;;  %s2326_s17 = sshll.u32 %s570_s20, 4 }
  0x74   : > { %s4271_s28 = scalar_select %p3392_p4, 1, 0 }
  0x75   : > { %s4272_s4 = scalar_select %p3396_p10, 1, 0 }
  0x76   : > { %s2366_s21 = sshll.u32 %s3146_s27, 8  ;;  %s4273_s8 = sld [smem:[#allocation59_spill]] }
  0x77   : > { %s574_s1 = scalar_lea.vmem [#allocation2], %s2326_s17  ;;  %p3410_p9 = pnand %p2739_p8, %p3379_p0 }
  0x78   : > { %s581_s12 = sshll.u32 %s574_s1, 4  ;;  %s3414_s15 = scalar_lea.sflag [#allocation3], %s570_s20  ;;  %s3406_s12 = int_to_ptr.vmem [resolvable:$true] %s581_s12 }
  0x79   : > { %p3014_p11 = pneg %p3410_p9 }
  0x7c   : > { %s3404_s10 = scalar_lea.hbm %s4273_s8, %s2366_s21  ;;  %s3017_s17 = scalar_lea.hbm %s4273_s8, 512 }
  0x7d   : > { %s3012_s26 = scalar_lea.hbm %s3404_s10, 256  ;;  %p3018_p0 = scmp.lt.s32.totalorder %s3404_s10, %s4273_s8 }
  0x7e   : > { %p3013_p7 = scmp.ne.s32.totalorder %s3404_s10, %s3012_s26  ;;  %p3019_p5 = scmp.lt.s32.totalorder %s3017_s17, %s3012_s26 }
  0x80   : > { %p3015_p12 = pnand %p3014_p11, %p3013_p7  ;;  %p3020_p2 = por %p3019_p5, %p3018_p0 }
  0x82   : > { %p3016_p13 = pneg %p3015_p12 }
  0x84   : > { %p3021_p8 = pnand %p3020_p2, %p3016_p13 }
  0x86   : > { %3024 = shalt.err (!%p3021_p8)
}
  0x87   : > { %s3025_s19 = scalar_lea.vmem %s3406_s12, 256  ;;  %s3160_s20 = smov [#allocation2]  }
  0x88   : > { %p3026_p1 = scmp.ne.s32.totalorder %s3406_s12, %s3025_s19  ;;  %s3030_s22 = sshll.u32 %s3160_s20, 4  ;;  %s3031_s22 = int_to_ptr.vmem [resolvable:$false] %s3030_s22 }
  0x89   : > { %s3032_s6 = scalar_lea.vmem %s3031_s22, 512  ;;  %p3033_p12 = scmp.lt.s32.totalorder %s3406_s12, %s3031_s22 }
  0x8a   : > { %p3028_p10 = pnand %p3026_p1, %p3014_p11  ;;  %p3034_p4 = scmp.lt.s32.totalorder %s3032_s6, %s3025_s19 }
  0x8c   : > { %p3029_p7 = pneg %p3028_p10  ;;  %p3035_p6 = por %p3034_p4, %p3033_p12 }
  0x8e   : > { %p3036_p3 = pnand %p3035_p6, %p3029_p7 }
  0x90   : > { %3039 = shalt.err (!%p3036_p3)
}
  0x91   : > { %2725 = dma.hbm_to_vmem [thread:$0]  (!%p3410_p9), %s3404_s10, 256, %s3406_s12, %s3414_s15, %s4264_s18, %s4264_s18, %s4263_s29  }
  0x92   : > { %p4275_p1 = scmp.ne.s32.totalorder %s4256_s30, 0 }
  0x94   : > { %607 = sbr.rel (%p4275_p1) target bundleno = 2345 (0x929), region = 84 }
  0x99   : > { %s3441_s26 = sand.u32 1, %s3138_s25   ;;  %p4276_p3 = scmp.ne.s32.totalorder %s4270_s16, 0 }
  0x9a   : > { %s2330_s22 = sshll.u32 %s3441_s26, 4  ;;  %s610_s21 = scalar_lea.sflag [#allocation3], %s3441_s26 }
  0x9b   : > { %s3447_s14 = scalar_lea.vmem [#allocation2], %s2330_s22 }
  0x9c   : > { %3109 = dma.done.wait (%p4276_p3), %s610_s21, 256  }
  0x9d   : > { %3111 = vsyncadd (%p4276_p3), %s610_s21, 4294967040  ;;  %p4277_p6 = scmp.eq.s32.totalorder %s3279_s0, 0 }
  0x9f   : > { %3113 = dma.done.wait (%p4277_p6), [#allocation6], 6656   ;;  %p4278_p4 = pmov %p4277_p6 }
  0xa1   : > { %3115 = vsyncadd (%p4278_p4), [#allocation6], 4294960640  ;;  %p4279_p10 = pmov %p4278_p4 }
  0xa2   : > { %p4280_p9 = pmov %p4278_p4 }
  0xa3   : > { %3117 = dma.done.wait (%p4279_p10), [#allocation9], 6144  }
  0xa4   : > { %3119 = vsyncadd (%p4280_p9), [#allocation9], 4294961152  ;;  %p4281_p11 = pmov %p4278_p4 }
  0xa5   : > { %p4282_p13 = pmov %p4278_p4 }
  0xa6   : > { %3121 = dma.done.wait (%p4281_p11), [#allocation12], 6144  }
  0xa7   : > { %3123 = vsyncadd (%p4282_p13), [#allocation12], 4294961152  ;;  %p705_p0 = scmp.lt.s32.totalorder %s3279_s0, 1  ;;  %v4202_v0 = vmov 0   ;;  %s4283_s18 = sld [smem:[#allocation58_spill]]  ;;  %vm835_vm0 = vcmask 261120  }
  0xa8   : > { %2796 = vset.pattern.permute.xlu0 %v4202_v0  ;;  %2797 = vset.pattern.permute.xlu1 %v4202_v0  ;;  %s4284_s2 = sld [smem:[#allocation60_spill]]  ;;  %v728_v1 = vld [vmem:[#allocation5 + $0x18] sm:$0xff]  ;;  %v727_v2 = vld [vmem:[#allocation5 + $0x10] sm:$0xff]  ;;  %v726_v4 = vld [vmem:[#allocation5 + $0x8] sm:$0xff]  ;;  %vm931_vm2 = vcmask 130048   ;;  %vm3163_vm4 = vmmov 0  }
  0xa9   : > { %s3469_s10 = scalar_select %p705_p0, %s3279_s0, 1  ;;  %2473 = vmatprep.subr.mxu0 %v728_v1  ;;  %v725_v6 = vld [vmem:[#allocation5] sm:$0xff]  ;;  %v3494_v12 = vld [vmem:[#allocation7 + $0x178] sm:$0xff]  ;;  %v3502_v14 = vld [vmem:[#allocation7 + $0x148] sm:$0xff] }
  0xaa   : > { %2474 = vmatpush3.msra.mxu0 %v728_v1  ;;  %s4285_s3 = sld [smem:[#allocation61_spill]]  ;;  %v3490_v11 = vld [vmem:[%s3447_s14] sm:$0xff]  ;;  %v3510_v16 = vld [vmem:[#allocation7 + $0x118] sm:$0xff]  ;;  %v3518_v18 = vld [vmem:[#allocation7 + $0xe8] sm:$0xff]  ;;  %s2100_s21 = scalar_lea.sflag [#allocation16], %s3441_s26 }
  0xab   : > { %s2367_s12 = sshll.u32 %s3469_s10, 4  ;;  %2475 = vmatprep.subr.mxu0 %v727_v2  ;;  %2488 = vmatprep.mubr.msk.f32.mxu1 %vm931_vm2, %v3490_v11  ;;  %v3498_v13 = vld [vmem:[#allocation7 + $0x160] sm:$0xff]  ;;  %v3506_v15 = vld [vmem:[#allocation7 + $0x130] sm:$0xff]  ;;  %v3526_v20 = vld [vmem:[#allocation7 + $0xb8] sm:$0xff]  ;;  %p4353_p2 = scmp.ne.s32.totalorder %s4271_s28, 0 }
  0xac   : > { %2476 = vmatpush3.msra.mxu0 %v727_v2  ;;  %v3514_v17 = vld [vmem:[#allocation7 + $0x100] sm:$0xff]  ;;  %v3522_v19 = vld [vmem:[#allocation7 + $0xd0] sm:$0xff]  ;;  %v3534_v22 = vld [vmem:[#allocation7 + $0x88] sm:$0xff] }
  0xad   : > { %s709_s15 = scalar_lea.vmem %s4283_s18, %s2367_s12  ;;  %2477 = vmatprep.subr.mxu0 %v726_v4  ;;  %v3530_v21 = vld [vmem:[#allocation7 + $0xa0] sm:$0xff]  ;;  %v3538_v23 = vld [vmem:[#allocation7 + $0x70] sm:$0xff]  ;;  %v3542_v24 = vld [vmem:[#allocation7 + $0x58] sm:$0xff] }
  0xae   : > { %s3478_s23 = scalar_lea.vmem %s4284_s2, %s2367_s12  ;;  %v718_v3 = vld [vmem:[%s709_s15] sm:$0xff]  ;;  %2478 = vmatpush3.msra.mxu0 %v726_v4  ;;  %v719_v8 = vld [vmem:[%s709_s15 + $0x8] sm:$0xff]  ;;  %v3562_v38 = vld [vmem:[#allocation7 + $0x170] sm:$0xff]  ;;  %s4053_s15 = scalar_lea.vmem [#allocation15], %s2330_s22 }
  0xaf   : > { %2481 = vmatprep.mubr.msk.f32.mxu0 %vm835_vm0, %v718_v3  ;;  %v723_v5 = vld [vmem:[%s3478_s23 + $0x8] sm:$0xff]  ;;  %v722_v7 = vld [vmem:[%s3478_s23] sm:$0xff]  ;;  %2479 = vmatprep.subr.mxu0 %v725_v6  ;;  %v3568_v40 = vld [vmem:[#allocation7 + $0x158] sm:$0xff]  ;;  %s2126_s17 = sshll.u32 %s4053_s15, 4  ;;  %s4094_s17 = int_to_ptr.vmem [resolvable:$true] %s2126_s17 }
  0xb0   : > { %926 = vperm.xlu0 %2796, %v723_v5   ;;  %vm1968_vm1 = vcmp.gt.f32.partialorder %v722_v7, 0.0  ;;  %2480 = vmatpush3.msra.mxu0 %v725_v6  ;;  %s717_s20 = scalar_lea.vmem %s4285_s3, %s3469_s10  ;;  %v3546_v25 = vld [vmem:[#allocation7 + $0x40] sm:$0xff]  ;;  %v3560_v37 = vld [vmem:[%s3447_s14 + $0x8] sm:$0xff]  ;;  %v3573_v41 = vld [vmem:[#allocation7 + $0x150] sm:$0xff]  ;;  %s3040_s14 = scalar_lea.vmem %s4094_s17, 256 }
  0xb1   : > { %v1970_v9 = vsel %vm1968_vm1, 1, %v4202_v0  ;;  %2482 = vmatmul.mubr.msk.f32.vlgmr.msra.gmra.mxu0 %vm835_vm0, %v719_v8  ;;  %v724_v10 = vld [vmem:[%s717_s20] sm:$0x1]  ;;  %2491 = vmatprep.subr.mxu0 %v3494_v12  ;;  %v3565_v39 = vld [vmem:[#allocation7 + $0x168] sm:$0xff]  ;;  %v3579_v43 = vld [vmem:[#allocation7 + $0x138] sm:$0xff]  ;;  %s4352_s20 = sld [smem:[#allocation70_spill]]  ;;  %p3041_p5 = scmp.ne.s32.totalorder %s4094_s17, %s3040_s14 }
  0xb2   : > { %2492 = vmatpush3.msra.mxu0 %v3494_v12  ;;  %v2342_v26 = vld [vmem:[%s4175_s5] ss:$0 sm:$0xff]  ;;  %v3582_v44 = vld [vmem:[#allocation7 + $0x128] sm:$0xff]  ;;  %v3588_v46 = vld [vmem:[#allocation7 + $0x110] sm:$0xff]  ;;  %s3164_s10 = smov [#allocation15]  }
  0xb3   : > { %2493 = vmatprep.subr.mxu0 %v3498_v13  ;;  %v3576_v42 = vld [vmem:[#allocation7 + $0x140] sm:$0xff]  ;;  %v3591_v47 = vld [vmem:[#allocation7 + $0x108] sm:$0xff]  ;;  %v3594_v48 = vld [vmem:[#allocation7 + $0xf8] sm:$0xff]  ;;  %p3042_p8 = pnand %p3041_p5, %p4353_p2  ;;  %s3044_s12 = sshll.u32 %s3164_s10, 4  ;;  %s3045_s12 = int_to_ptr.vmem [resolvable:$false] %s3044_s12 }
  0xb4   : > { %921 = vperm.xlu0 %2796, %v722_v7   ;;  %2494 = vmatpush3.msra.mxu0 %v3498_v13  ;;  %v3585_v45 = vld [vmem:[#allocation7 + $0x120] sm:$0xff]  ;;  %v3597_v49 = vld [vmem:[#allocation7 + $0xf0] sm:$0xff]  ;;  %v3603_v51 = vld [vmem:[#allocation7 + $0xd8] sm:$0xff]  ;;  %s3046_s30 = scalar_lea.vmem %s3045_s12, 512  ;;  %p3047_p12 = scmp.lt.s32.totalorder %s4094_s17, %s3045_s12 }
  0xb5   : > { %2495 = vmatprep.subr.mxu0 %v3502_v14  ;;  %v3600_v50 = vld [vmem:[#allocation7 + $0xe0] sm:$0xff]  ;;  %v3606_v52 = vld [vmem:[#allocation7 + $0xc8] sm:$0xff]  ;;  %v3612_v54 = vld [vmem:[#allocation7 + $0xb0] sm:$0xff]  ;;  %p3043_p7 = pneg %p3042_p8  ;;  %p3048_p1 = scmp.lt.s32.totalorder %s3046_s30, %s3040_s14 }
  0xb6   : > { %2496 = vmatpush3.msra.mxu0 %v3502_v14  ;;  %v3609_v53 = vld [vmem:[#allocation7 + $0xc0] sm:$0xff]  ;;  %v3615_v55 = vld [vmem:[#allocation7 + $0xa8] sm:$0xff]  ;;  %v3618_v56 = vld [vmem:[#allocation7 + $0x98] sm:$0xff] }
  0xb7   : > { %2497 = vmatprep.subr.mxu0 %v3506_v15  ;;  %v3621_v57 = vld [vmem:[#allocation7 + $0x90] sm:$0xff]  ;;  %v3624_v58 = vld [vmem:[#allocation7 + $0x80] sm:$0xff]  ;;  %v3627_v59 = vld [vmem:[#allocation7 + $0x78] sm:$0xff]  ;;  %p3049_p3 = por %p3048_p1, %p3047_p12 }
  0xb8   : > { %1973 = vperm.xlu0 %2796, %v1970_v9   ;;  %2498 = vmatpush3.msra.mxu0 %v3506_v15  ;;  %v3630_v60 = vld [vmem:[#allocation7 + $0x68] sm:$0xff]  ;;  %v3633_v61 = vld [vmem:[#allocation7 + $0x60] sm:$0xff]  ;;  %v3636_v62 = vld [vmem:[#allocation7 + $0x50] sm:$0xff] }
  0xb9   : > { %2499 = vmatprep.subr.mxu0 %v3510_v16  ;;  %v3639_v63 = vld [vmem:[#allocation7 + $0x48] sm:$0xff]  ;;  %v3642_v1 = vld [vmem:[#allocation7 + $0x38] sm:$0xff]  ;;  %v3645_v2 = vld [vmem:[#allocation7 + $0x30] sm:$0xff]  ;;  %p3050_p6 = pnand %p3049_p3, %p3043_p7 }
  0xba   : > { %2500 = vmatpush3.msra.mxu0 %v3510_v16  ;;  %v3648_v3 = vld [vmem:[#allocation7 + $0x20] sm:$0xff]  ;;  %v3651_v4 = vld [vmem:[#allocation7 + $0x18] sm:$0xff]  ;;  %v3656_v5 = vld [vmem:[#allocation7 + $0x8] sm:$0xff] }
  0xbb   : > { %2501 = vmatprep.subr.mxu0 %v3514_v17  ;;  %v3658_v6 = vld [vmem:[#allocation7 + $0x28] sm:$0xff]  ;;  %v3662_v7 = vld [vmem:[#allocation7] sm:$0xff]  ;;  %v3666_v8 = vld [vmem:[#allocation7 + $0x10] sm:$0xff] }
  0xbc   : > { %1991 = vperm.xlu0 %2796, %v724_v10   ;;  %2502 = vmatpush3.msra.mxu0 %v3514_v17  ;;  %v3668_v9 = vld [vmem:[#allocation8 + $0xf8] sm:$0xff]  ;;  %v4206_v10 = vmov 0.0   ;;  %v3698_v0 = vld [vmem:[#allocation8 + $0xb0] sm:$0xff] }
  0xbd   : > { %2503 = vmatprep.subr.mxu0 %v3518_v18  ;;  %4291 = vst [vmem:[#allocation31_spill] sm:$0xff] %v3698_v0 }
  0xbe   : > { %2504 = vmatpush3.msra.mxu0 %v3518_v18 }
  0xbf   : > { %2505 = vmatprep.subr.mxu0 %v3522_v19 }
  0xc0   : > { %2506 = vmatpush3.msra.mxu0 %v3522_v19 }
  0xc1   : > { %2507 = vmatprep.subr.mxu0 %v3526_v20 }
  0xc2   : > { %2508 = vmatpush3.msra.mxu0 %v3526_v20 }
  0xc3   : > { %2509 = vmatprep.subr.mxu0 %v3530_v21 }
  0xc4   : > { %2510 = vmatpush3.msra.mxu0 %v3530_v21 }
  0xc5   : > { %2511 = vmatprep.subr.mxu0 %v3534_v22 }
  0xc6   : > { %2512 = vmatpush3.msra.mxu0 %v3534_v22 }
  0xc7   : > { %2513 = vmatprep.subr.mxu0 %v3538_v23 }
  0xc8   : > { %2514 = vmatpush3.msra.mxu0 %v3538_v23 }
  0xc9   : > { %2515 = vmatprep.subr.mxu0 %v3542_v24 }
  0xca   : > { %2516 = vmatpush3.msra.mxu0 %v3542_v24 }
  0xcb   : > { %2517 = vmatprep.subr.mxu0 %v3546_v25 }
  0xcc   : > { %2518 = vmatpush3.msra.mxu0 %v3546_v25 }
  0xcd   : > { %2519 = vmatprep.subr.mxu0 %v3658_v6 }
  0xce   : > { %2520 = vmatpush3.msra.mxu0 %v3658_v6 }
  0xcf   : > { %2521 = vmatprep.subr.mxu0 %v3666_v8 }
  0xd0   : > { %2522 = vmatpush3.msra.mxu0 %v3666_v8 }
 0x12b   : > { %v927_v31 = vpop.permute.xlu0 %926 }
 0x12f   : > { %v922_v35 = vpop.permute.xlu0 %921 }
 0x171   : > { %v2483_v27 = vpop.f32.mrf.mxu0 }
 0x172   : > { %v914_v28 = vadd.f32 %v2483_v27, %v2342_v26  ;;  %v3674_v27 = vld [vmem:[#allocation8 + $0xf0] sm:$0xff] }
 0x173   : > { %v908_v29 = vpop.f32.mrf.mxu0 }
 0x174   : > { %2798 = vtanh.f32 %v914_v28  ;;  %v909_v30 = vadd.f32 %v2342_v26, %v908_v29  ;;  %v3676_v29 = vld [vmem:[#allocation8 + $0xe8] sm:$0xff] }
 0x176   : > { %2800 = vtanh.f32 %v909_v30  ;;  %v3678_v30 = vld [vmem:[#allocation8 + $0xe0] sm:$0xff] }
 0x177   : > { %4286 = vst [vmem:[#allocation26_spill] sm:$0xff] %v3678_v30 }
 0x181   : > { %v2799_v32 = vpop.eup %2798 }
 0x182   : > { %v3553_v33 = vmul.f32 %v2799_v32, %v927_v31  ;;  %v3681_v31 = vld [vmem:[#allocation8 + $0xd8] sm:$0xff]  ;;  %v3685_v32 = vld [vmem:[#allocation8 + $0xd0] sm:$0xff] }
 0x183   : > { %v2801_v34 = vpop.eup %2800  ;;  %4287 = vst [vmem:[#allocation27_spill] sm:$0xff] %v3681_v31  ;;  %4288 = vst [vmem:[#allocation28_spill] sm:$0xff] %v3685_v32 }
 0x184   : > { %v3555_v36 = vmul.f32 %v2801_v34, %v922_v35  ;;  %2484 = vmatprep.subr.mxu1 %v3553_v33  ;;  %v3688_v34 = vld [vmem:[#allocation8 + $0xc8] sm:$0xff]  ;;  %v3691_v35 = vld [vmem:[#allocation8 + $0xc0] sm:$0xff] }
 0x185   : > { %2485 = vmatpush3.msra.mxu1 %v3553_v33  ;;  %4289 = vst [vmem:[#allocation29_spill] sm:$0xff] %v3691_v35 }
 0x186   : > { %2486 = vmatprep.subr.mxu1 %v3555_v36 }
 0x187   : > { %2487 = vmatpush3.msra.mxu1 %v3555_v36 }
 0x188   : > { %2489 = vmatmul.mubr.msk.f32.vlgmr.msra.gmra.mxu1 %vm931_vm2, %v3560_v37  ;;  %1029 = vmatprep.subr.mxu1 %v3562_v38 }
 0x189   : > { %1030 = vmatpush1.msra.mxu1 %v3565_v39  ;;  %1093 = vmatprep.mubr.f32.mxu1 %v4206_v10 }
 0x18a   : > { %1031 = vmatprep.subr.mxu1 %v3568_v40 }
 0x18b   : > { %1032 = vmatpush1.msra.mxu1 %v3573_v41 }
 0x18c   : > { %1033 = vmatprep.subr.mxu1 %v3576_v42 }
 0x18d   : > { %1034 = vmatpush1.msra.mxu1 %v3579_v43 }
 0x18e   : > { %1035 = vmatprep.subr.mxu1 %v3582_v44 }
 0x18f   : > { %1036 = vmatpush1.msra.mxu1 %v3585_v45 }
 0x190   : > { %1037 = vmatprep.subr.mxu1 %v3588_v46 }
 0x191   : > { %1038 = vmatpush1.msra.mxu1 %v3591_v47 }
 0x192   : > { %1039 = vmatprep.subr.mxu1 %v3594_v48 }
 0x193   : > { %1040 = vmatpush1.msra.mxu1 %v3597_v49 }
 0x194   : > { %1041 = vmatprep.subr.mxu1 %v3600_v50 }
 0x195   : > { %1042 = vmatpush1.msra.mxu1 %v3603_v51 }
 0x196   : > { %1043 = vmatprep.subr.mxu1 %v3606_v52 }
 0x197   : > { %1044 = vmatpush1.msra.mxu1 %v3609_v53 }
 0x198   : > { %1045 = vmatprep.subr.mxu1 %v3612_v54 }
 0x199   : > { %1046 = vmatpush1.msra.mxu1 %v3615_v55 }
 0x19a   : > { %1047 = vmatprep.subr.mxu1 %v3618_v56 }
 0x19b   : > { %1048 = vmatpush1.msra.mxu1 %v3621_v57 }
 0x19c   : > { %1049 = vmatprep.subr.mxu1 %v3624_v58 }
 0x19d   : > { %1050 = vmatpush1.msra.mxu1 %v3627_v59 }
 0x19e   : > { %1051 = vmatprep.subr.mxu1 %v3630_v60 }
 0x19f   : > { %1052 = vmatpush1.msra.mxu1 %v3633_v61 }
 0x1a0   : > { %1053 = vmatprep.subr.mxu1 %v3636_v62 }
 0x1a1   : > { %1054 = vmatpush1.msra.mxu1 %v3639_v63 }
 0x1a2   : > { %1055 = vmatprep.subr.mxu1 %v3642_v1 }
 0x1a3   : > { %1056 = vmatpush1.msra.mxu1 %v3645_v2 }
 0x1a4   : > { %1057 = vmatprep.subr.mxu1 %v3648_v3 }
 0x1a5   : > { %1058 = vmatpush1.msra.mxu1 %v3651_v4 }
 0x1a6   : > { %1059 = vmatprep.subr.mxu1 %v3656_v5 }
 0x1a7   : > { %1060 = vmatpush1.msra.mxu1 %v3662_v7 }
 0x1a8   : > { %1192 = vmatprep.subr.mxu1 %v3668_v9 }
 0x248   : > { %v2490_v26 = vpop.f32.mrf.mxu1 }
 0x24a   : > { %v1004_v28 = vpop.f32.mrf.mxu1 }
 0x24b   : > { %1094 = vmatmul.mubr.f32.vlgmr.msra.gmra.mxu1 %v1004_v28  ;;  %2523 = vmatprep.mubr.f32.mxu0 %v1004_v28  ;;  %v3694_v28 = vld [vmem:[#allocation8 + $0xb8] sm:$0xff] }
 0x24c   : > { %1193 = vmatpush1.msra.mxu1 %v3674_v27  ;;  %2524 = vmatmul.mubr.f32.vlgmr.msra.gmra.mxu0 %v2490_v26  ;;  %4290 = vst [vmem:[#allocation30_spill] sm:$0xff] %v3694_v28 }
 0x24d   : > { %1194 = vmatprep.subr.mxu1 %v3676_v29  ;;  %1099 = vmatprep.mubr.f32.mxu1 %v4206_v10 }
 0x24e   : > { %1195 = vmatpush1.msra.mxu1 %v3678_v30  ;;  %v3701_v30 = vld [vmem:[#allocation8 + $0xa8] sm:$0xff] }
 0x24f   : > { %1196 = vmatprep.subr.mxu1 %v3681_v31  ;;  %1100 = vmatmul.mubr.f32.gmra.mxu1 %v2490_v26  ;;  %4292 = vst [vmem:[#allocation32_spill] sm:$0xff] %v3701_v30  ;;  %v3704_v31 = vld [vmem:[#allocation8 + $0xa0] sm:$0xff]  ;;  %v3707_v26 = vld [vmem:[#allocation8 + $0x98] sm:$0xff] }
 0x250   : > { %1197 = vmatpush1.msra.mxu1 %v3685_v32  ;;  %1256 = vmatprep.mubr.f32.mxu1 %v4206_v10  ;;  %4293 = vst [vmem:[#allocation33_spill] sm:$0xff] %v3704_v31  ;;  %4294 = vst [vmem:[#allocation34_spill] sm:$0xff] %v3707_v26  ;;  %v3710_v32 = vld [vmem:[#allocation8 + $0x90] sm:$0xff]  ;;  %v3713_v10 = vld [vmem:[#allocation8 + $0x88] sm:$0xff] }
 0x251   : > { %1198 = vmatprep.subr.mxu1 %v3688_v34  ;;  %4295 = vst [vmem:[#allocation35_spill] sm:$0xff] %v3710_v32  ;;  %4296 = vst [vmem:[#allocation36_spill] sm:$0xff] %v3713_v10 }
 0x252   : > { %1199 = vmatpush1.msra.mxu1 %v3691_v35  ;;  %v3716_v35 = vld [vmem:[#allocation8 + $0x80] sm:$0xff] }
 0x253   : > { %1200 = vmatprep.subr.mxu1 %v3694_v28  ;;  %4297 = vst [vmem:[#allocation37_spill] sm:$0xff] %v3716_v35  ;;  %v3719_v28 = vld [vmem:[#allocation8 + $0x78] sm:$0xff] }
 0x254   : > { %1201 = vmatpush1.msra.mxu1 %v3698_v0  ;;  %4298 = vst [vmem:[#allocation38_spill] sm:$0xff] %v3719_v28  ;;  %v3722_v0 = vld [vmem:[#allocation8 + $0x70] sm:$0xff] }
 0x255   : > { %1202 = vmatprep.subr.mxu1 %v3701_v30  ;;  %4299 = vst [vmem:[#allocation39_spill] sm:$0xff] %v3722_v0  ;;  %v3725_v30 = vld [vmem:[#allocation8 + $0x68] sm:$0xff] }
 0x256   : > { %1203 = vmatpush1.msra.mxu1 %v3704_v31  ;;  %4300 = vst [vmem:[#allocation40_spill] sm:$0xff] %v3725_v30  ;;  %v3728_v31 = vld [vmem:[#allocation8 + $0x60] sm:$0xff] }
 0x257   : > { %1204 = vmatprep.subr.mxu1 %v3707_v26  ;;  %4301 = vst [vmem:[#allocation41_spill] sm:$0xff] %v3728_v31  ;;  %v3731_v26 = vld [vmem:[#allocation8 + $0x58] sm:$0xff] }
 0x258   : > { %1205 = vmatpush1.msra.mxu1 %v3710_v32  ;;  %4302 = vst [vmem:[#allocation42_spill] sm:$0xff] %v3731_v26  ;;  %v3734_v32 = vld [vmem:[#allocation8 + $0x50] sm:$0xff] }
 0x259   : > { %1206 = vmatprep.subr.mxu1 %v3713_v10  ;;  %4303 = vst [vmem:[#allocation43_spill] sm:$0xff] %v3734_v32  ;;  %v3737_v10 = vld [vmem:[#allocation8 + $0x48] sm:$0xff] }
 0x25a   : > { %1207 = vmatpush1.msra.mxu1 %v3716_v35  ;;  %4304 = vst [vmem:[#allocation44_spill] sm:$0xff] %v3737_v10  ;;  %v3740_v35 = vld [vmem:[#allocation8 + $0x40] sm:$0xff] }
 0x25b   : > { %1208 = vmatprep.subr.mxu1 %v3719_v28  ;;  %4305 = vst [vmem:[#allocation45_spill] sm:$0xff] %v3740_v35  ;;  %v3743_v28 = vld [vmem:[#allocation8 + $0x38] sm:$0xff] }
 0x25c   : > { %1209 = vmatpush1.msra.mxu1 %v3722_v0  ;;  %v3746_v0 = vld [vmem:[#allocation8 + $0x30] sm:$0xff] }
 0x25d   : > { %1210 = vmatprep.subr.mxu1 %v3725_v30  ;;  %v3749_v30 = vld [vmem:[#allocation8 + $0x28] sm:$0xff] }
 0x25e   : > { %1211 = vmatpush1.msra.mxu1 %v3728_v31  ;;  %4306 = vst [vmem:[#allocation46_spill] sm:$0xff] %v3749_v30  ;;  %v3752_v31 = vld [vmem:[#allocation8 + $0x20] sm:$0xff] }
 0x25f   : > { %1212 = vmatprep.subr.mxu1 %v3731_v26  ;;  %4307 = vst [vmem:[#allocation47_spill] sm:$0xff] %v3752_v31  ;;  %v3755_v26 = vld [vmem:[#allocation8 + $0x18] sm:$0xff] }
 0x260   : > { %1213 = vmatpush1.msra.mxu1 %v3734_v32  ;;  %4308 = vst [vmem:[#allocation48_spill] sm:$0xff] %v3755_v26  ;;  %v3758_v32 = vld [vmem:[#allocation8 + $0x10] sm:$0xff] }
 0x261   : > { %1214 = vmatprep.subr.mxu1 %v3737_v10  ;;  %4309 = vst [vmem:[#allocation49_spill] sm:$0xff] %v3758_v32  ;;  %v3761_v10 = vld [vmem:[#allocation8 + $0x8] sm:$0xff] }
 0x262   : > { %1215 = vmatpush1.msra.mxu1 %v3740_v35  ;;  %4310 = vst [vmem:[#allocation50_spill] sm:$0xff] %v3761_v10  ;;  %v3764_v35 = vld [vmem:[#allocation8] sm:$0xff] }
 0x263   : > { %1216 = vmatprep.subr.mxu1 %v3743_v28  ;;  %4311 = vst [vmem:[#allocation51_spill] sm:$0xff] %v3764_v35 }
 0x264   : > { %1217 = vmatpush1.msra.mxu1 %v3746_v0 }
 0x265   : > { %1218 = vmatprep.subr.mxu1 %v3749_v30  ;;  %v4312_v30 = vmov 0.0  }
 0x266   : > { %1219 = vmatpush1.msra.mxu1 %v3752_v31 }
 0x267   : > { %1220 = vmatprep.subr.mxu1 %v3755_v26 }
 0x268   : > { %1221 = vmatpush1.msra.mxu1 %v3758_v32 }
 0x269   : > { %1222 = vmatprep.subr.mxu1 %v3761_v10 }
 0x26a   : > { %1223 = vmatpush1.msra.mxu1 %v3764_v35 }
 0x26b   : > { %1257 = vmatmul.mubr.f32.vlgmr.msra.gmra.mxu1 %v3555_v36  ;;  %1469 = vmatprep.subr.mxu1 %v3562_v38  ;;  %v3806_v38 = vld [vmem:[#allocation10 + $0x78] sm:$0xff] }
 0x26c   : > { %1262 = vmatprep.mubr.f32.mxu1 %v4312_v30  ;;  %1470 = vmatpush1.msra.mxu1 %v3565_v39  ;;  %v3810_v39 = vld [vmem:[#allocation10 + $0x70] sm:$0xff] }
 0x26d   : > { %1471 = vmatprep.subr.mxu1 %v3568_v40  ;;  %2526 = vmatprep.subr.mxu0 %v3806_v38  ;;  %v3814_v40 = vld [vmem:[#allocation10 + $0x68] sm:$0xff] }
 0x26e   : > { %1472 = vmatpush1.msra.mxu1 %v3573_v41  ;;  %2527 = vmatpush3.msra.mxu0 %v3806_v38  ;;  %v3818_v41 = vld [vmem:[#allocation10 + $0x60] sm:$0xff] }
 0x26f   : > { %1263 = vmatmul.mubr.f32.gmra.mxu1 %v3553_v33  ;;  %1473 = vmatprep.subr.mxu1 %v3576_v42  ;;  %v3822_v42 = vld [vmem:[#allocation10 + $0x58] sm:$0xff] }
 0x270   : > { %1474 = vmatpush1.msra.mxu1 %v3579_v43  ;;  %1533 = vmatprep.mubr.f32.mxu1 %v4312_v30  ;;  %v3826_v43 = vld [vmem:[#allocation10 + $0x50] sm:$0xff] }
 0x271   : > { %1475 = vmatprep.subr.mxu1 %v3582_v44  ;;  %2528 = vmatprep.subr.mxu0 %v3810_v39  ;;  %v3830_v44 = vld [vmem:[#allocation10 + $0x48] sm:$0xff] }
 0x272   : > { %1476 = vmatpush1.msra.mxu1 %v3585_v45  ;;  %2529 = vmatpush3.msra.mxu0 %v3810_v39  ;;  %v3834_v45 = vld [vmem:[#allocation10 + $0x40] sm:$0xff] }
 0x273   : > { %1477 = vmatprep.subr.mxu1 %v3588_v46  ;;  %2530 = vmatprep.subr.mxu0 %v3814_v40  ;;  %v3838_v46 = vld [vmem:[#allocation10 + $0x38] sm:$0xff] }
 0x274   : > { %1478 = vmatpush1.msra.mxu1 %v3591_v47  ;;  %2531 = vmatpush3.msra.mxu0 %v3814_v40  ;;  %v3841_v47 = vld [vmem:[#allocation10 + $0x30] sm:$0xff] }
 0x275   : > { %1479 = vmatprep.subr.mxu1 %v3594_v48  ;;  %2532 = vmatprep.subr.mxu0 %v3818_v41  ;;  %v3844_v48 = vld [vmem:[#allocation10 + $0x28] sm:$0xff] }
 0x276   : > { %1480 = vmatpush1.msra.mxu1 %v3597_v49  ;;  %2533 = vmatpush3.msra.mxu0 %v3818_v41  ;;  %v3848_v49 = vld [vmem:[#allocation10 + $0x20] sm:$0xff] }
 0x277   : > { %1481 = vmatprep.subr.mxu1 %v3600_v50  ;;  %2534 = vmatprep.subr.mxu0 %v3822_v42  ;;  %v3852_v50 = vld [vmem:[#allocation10 + $0x18] sm:$0xff] }
 0x278   : > { %1482 = vmatpush1.msra.mxu1 %v3603_v51  ;;  %2535 = vmatpush3.msra.mxu0 %v3822_v42  ;;  %4313 = vst [vmem:[#allocation52_spill] sm:$0xff] %v3852_v50  ;;  %v3856_v51 = vld [vmem:[#allocation10 + $0x10] sm:$0xff] }
 0x279   : > { %1483 = vmatprep.subr.mxu1 %v3606_v52  ;;  %2536 = vmatprep.subr.mxu0 %v3826_v43  ;;  %4314 = vst [vmem:[#allocation53_spill] sm:$0xff] %v3856_v51  ;;  %v3860_v52 = vld [vmem:[#allocation10 + $0x8] sm:$0xff] }
 0x27a   : > { %1484 = vmatpush1.msra.mxu1 %v3609_v53  ;;  %2537 = vmatpush3.msra.mxu0 %v3826_v43  ;;  %4315 = vst [vmem:[#allocation54_spill] sm:$0xff] %v3860_v52  ;;  %v3865_v53 = vld [vmem:[#allocation10] sm:$0xff] }
 0x27b   : > { %1485 = vmatprep.subr.mxu1 %v3612_v54  ;;  %2538 = vmatprep.subr.mxu0 %v3830_v44  ;;  %4316 = vst [vmem:[#allocation55_spill] sm:$0xff] %v3865_v53 }
 0x27c   : > { %1486 = vmatpush1.msra.mxu1 %v3615_v55  ;;  %2539 = vmatpush3.msra.mxu0 %v3830_v44  ;;  %v1014_v55 = vlaneseq }
 0x27d   : > { %1487 = vmatprep.subr.mxu1 %v3618_v56  ;;  %2540 = vmatprep.subr.mxu0 %v3834_v45 }
 0x27e   : > { %1488 = vmatpush1.msra.mxu1 %v3621_v57  ;;  %2541 = vmatpush3.msra.mxu0 %v3834_v45  ;;  %v1015_v57 = vshrl.u32 %v1014_v55, 7 }
 0x27f   : > { %1489 = vmatprep.subr.mxu1 %v3624_v58  ;;  %2542 = vmatprep.subr.mxu0 %v3838_v46  ;;  %v778_v58 = vld [vmem:[%s4177_s7] sm:$0x7] }
 0x280   : > { %1490 = vmatpush1.msra.mxu1 %v3627_v59  ;;  %2543 = vmatpush3.msra.mxu0 %v3838_v46 }
 0x281   : > { %1491 = vmatprep.subr.mxu1 %v3630_v60  ;;  %2544 = vmatprep.subr.mxu0 %v3841_v47  ;;  %v811_v60 = vld [vmem:[%s4179_s9] sm:$0x3] }
 0x282   : > { %1492 = vmatpush1.msra.mxu1 %v3633_v61  ;;  %2545 = vmatpush3.msra.mxu0 %v3841_v47  ;;  %v3876_v61 = vsub.s32 0, %v1015_v57 }
 0x283   : > { %1493 = vmatprep.subr.mxu1 %v3636_v62  ;;  %2546 = vmatprep.subr.mxu0 %v3844_v48  ;;  %v3878_v62 = vsub.s32 1, %v1015_v57 }
 0x284   : > { %1494 = vmatpush1.msra.mxu1 %v3639_v63  ;;  %2547 = vmatpush3.msra.mxu0 %v3844_v48  ;;  %4317 = vst [vmem:[#allocation56_spill] sm:$0xff] %v3876_v61  ;;  %v3881_v63 = vrot.slane %v778_v58, %v3876_v61 }
 0x285   : > { %1495 = vmatprep.subr.mxu1 %v3642_v1  ;;  %2548 = vmatprep.subr.mxu0 %v3848_v49  ;;  %4318 = vst [vmem:[#allocation57_spill] sm:$0xff] %v3878_v62  ;;  %v3884_v1 = vrot.slane %v811_v60, %v3876_v61 }
 0x286   : > { %1496 = vmatpush1.msra.mxu1 %v3645_v2  ;;  %2549 = vmatpush3.msra.mxu0 %v3848_v49 }
 0x287   : > { %1497 = vmatprep.subr.mxu1 %v3648_v3  ;;  %2550 = vmatprep.subr.mxu0 %v3852_v50  ;;  %v3887_v3 = vrot.slane %v778_v58, %v3878_v62 }
 0x288   : > { %1498 = vmatpush1.msra.mxu1 %v3651_v4  ;;  %2551 = vmatpush3.msra.mxu0 %v3852_v50  ;;  %v3890_v4 = vrot.slane %v811_v60, %v3878_v62 }
 0x289   : > { %1499 = vmatprep.subr.mxu1 %v3656_v5  ;;  %2552 = vmatprep.subr.mxu0 %v3856_v51 }
 0x28a   : > { %1500 = vmatpush1.msra.mxu1 %v3662_v7  ;;  %2553 = vmatpush3.msra.mxu0 %v3856_v51 }
 0x28b   : > { %1621 = vmatprep.subr.mxu1 %v3668_v9  ;;  %2554 = vmatprep.subr.mxu0 %v3860_v52 }
 0x28c   : > { %2555 = vmatpush3.msra.mxu0 %v3860_v52 }
 0x28d   : > { %2556 = vmatprep.subr.mxu0 %v3865_v53 }
 0x28e   : > { %2557 = vmatpush3.msra.mxu0 %v3865_v53 }
 0x30b   : > { %v1095_v54 = vpop.f32.mrf.mxu1 }
 0x30c   : > { %v1096_v7 = vadd.f32 %v1095_v54, %v3881_v63 }
 0x30d   : > { %v1097_v56 = vpop.f32.mrf.mxu1 }
 0x30e   : > { %v1098_v53 = vadd.f32 %v1097_v56, %v3887_v3 }
 0x30f   : > { %v1101_v59 = vpop.f32.mrf.mxu1 }
 0x310   : > { %v1102_v51 = vadd.f32 %v1101_v59, %v3881_v63 }
 0x311   : > { %v1103_v2 = vpop.f32.mrf.mxu1 }
 0x312   : > { %v1104_v60 = vadd.f32 %v1103_v2, %v3887_v3 }
 0x32b   : > { %v1258_v5 = vpop.f32.mrf.mxu1 }
 0x32c   : > { %v1259_v9 = vadd.f32 %v1258_v5, %v3884_v1 }
 0x32d   : > { %v1260_v55 = vpop.f32.mrf.mxu1 }
 0x32e   : > { %v1269_v52 = vadd.f32 %v1259_v9, %v1096_v7  ;;  %v1261_v35 = vadd.f32 %v1260_v55, %v3890_v4 }
 0x32f   : > { %v1264_v61 = vpop.f32.mrf.mxu1 }
 0x330   : > { %v1270_v10 = vadd.f32 %v1261_v35, %v1098_v53  ;;  %v1265_v32 = vadd.f32 %v1264_v61, %v3884_v1 }
 0x331   : > { %v1266_v50 = vpop.f32.mrf.mxu1 }
 0x332   : > { %v2348_v62 = vmul.f32 -1.442695, %v1270_v10  ;;  %v1271_v26 = vadd.f32 %v1265_v32, %v1102_v51  ;;  %v1267_v54 = vadd.f32 %v1266_v50, %v3890_v4  ;;  %v2347_v50 = vmul.f32 -1.442695, %v1269_v52 }
 0x334   : > { %2802 = vpow2.f32 %v2348_v62  ;;  %v1272_v5 = vadd.f32 %v1267_v54, %v1104_v60  ;;  %v2349_v32 = vmul.f32 -1.442695, %v1271_v26  ;;  %v2525_v62 = vpop.f32.mrf.mxu0 }
 0x336   : > { %v2350_v31 = vmul.f32 -1.442695, %v1272_v5  ;;  %v1172_v5 = vpop.f32.mrf.mxu0 }
 0x338   : > { %2804 = vpow2.f32 %v2350_v31  ;;  %v1024_v31 = vsub.s32 2, %v1015_v57 }
 0x33a   : > { %v3904_v2 = vrot.slane %v778_v58, %v1024_v31 }
 0x33c   : > { %v1173_v52 = vadd.f32 %v1172_v5, %v3904_v2  ;;  %v1846_v5 = vld [vmem:[#allocation11 + $0xd8] sm:$0xff] }
 0x341   : > { %v2803_v56 = vpop.eup %2802 }
 0x342   : > { %v1286_v7 = vadd.f32 1.0, %v2803_v56  ;;  %v1178_v56 = vadd.f32 %v2525_v62, %v3904_v2 }
 0x344   : > { %2806 = vrcp.f32 %v1286_v7 }
 0x345   : > { %v2805_v9 = vpop.eup %2804 }
 0x346   : > { %v1288_v55 = vadd.f32 1.0, %v2805_v9 }
 0x348   : > { %2808 = vrcp.f32 %v1288_v55 }
 0x349   : > { %2810 = vpow2.f32 %v2349_v32 }
 0x34a   : > { %2812 = vpow2.f32 %v2347_v50 }
 0x351   : > { %v2807_v35 = vpop.eup %2806 }
 0x352   : > { %v1297_v53 = vmul.f32 %v2807_v35, %v3555_v36 }
 0x354   : > { %2558 = vmatprep.mubr.f32.mxu0 %v1297_v53 }
 0x355   : > { %v2809_v59 = vpop.eup %2808 }
 0x356   : > { %v1298_v10 = vmul.f32 %v2809_v59, %v3553_v33  ;;  %v2811_v51 = vpop.eup %2810 }
 0x357   : > { %v2813_v61 = vpop.eup %2812  ;;  %v1287_v60 = vadd.f32 1.0, %v2811_v51 }
 0x358   : > { %2559 = vmatmul.mubr.f32.vlgmr.msra.gmra.mxu0 %v1298_v10  ;;  %v1285_v54 = vadd.f32 1.0, %v2813_v61 }
 0x359   : > { %2565 = vmatprep.mubr.msk.f32.mxu0 %vm931_vm2, %v3490_v11  ;;  %2814 = vrcp.f32 %v1287_v60  ;;  %v3910_v11 = vld [vmem:[%s4181_s11] ss:$0 sm:$0xff] }
 0x35a   : > { %2816 = vrcp.f32 %v1285_v54 }
 0x366   : > { %v2815_v35 = vpop.eup %2814 }
 0x367   : > { %v2817_v53 = vpop.eup %2816  ;;  %v1389_v59 = vsub.f32 1.0, %v2815_v35 }
 0x368   : > { %v1388_v10 = vsub.f32 1.0, %v2817_v53 }
 0x369   : > { %v1391_v31 = vmul.f32 %v1389_v59, %v3553_v33  ;;  %v4331_v33 = vld [vmem:[#allocation38_spill] sm:$0xff] }
 0x36a   : > { %v1390_v60 = vmul.f32 %v1388_v10, %v3555_v36  ;;  %v4332_v36 = vld [vmem:[#allocation39_spill] sm:$0xff] }
 0x418   : > { %v2560_v26 = vpop.f32.mrf.mxu0 }
 0x419   : > { %v1375_v57 = vadd.f32 %v2560_v26, %v1178_v56  ;;  %v1845_v56 = vld [vmem:[#allocation11 + $0xd0] sm:$0xff]  ;;  %v1844_v26 = vld [vmem:[#allocation11 + $0xc8] sm:$0xff] }
 0x41a   : > { %v1365_v7 = vpop.f32.mrf.mxu0 }
 0x41b   : > { %v1383_v58 = vadd.f32 %v3910_v11, %v1375_v57  ;;  %v1374_v9 = vadd.f32 %v1365_v7, %v1173_v52 }
 0x41d   : > { %2818 = vtanh.f32 %v1383_v58  ;;  %v1382_v55 = vadd.f32 %v3910_v11, %v1374_v9 }
 0x41f   : > { %2820 = vtanh.f32 %v1382_v55 }
 0x42a   : > { %v2819_v32 = vpop.eup %2818 }
 0x42b   : > { %v1387_v50 = vmul.f32 %v2819_v32, %v2815_v35 }
 0x42c   : > { %v2821_v51 = vpop.eup %2820 }
 0x42d   : > { %v3916_v61 = vadd.f32 %v1391_v31, %v1387_v50  ;;  %v1386_v62 = vmul.f32 %v2821_v51, %v2817_v53 }
 0x42f   : > { %2561 = vmatprep.subr.mxu0 %v3916_v61  ;;  %v3920_v54 = vadd.f32 %v1390_v60, %v1386_v62 }
 0x430   : > { %2562 = vmatpush3.msra.mxu0 %v3916_v61 }
 0x431   : > { %2563 = vmatprep.subr.mxu0 %v3920_v54 }
 0x432   : > { %2564 = vmatpush3.msra.mxu0 %v3920_v54 }
 0x433   : > { %2566 = vmatmul.mubr.msk.f32.vlgmr.msra.gmra.mxu0 %vm931_vm2, %v3560_v37  ;;  %2568 = vmatprep.subr.mxu0 %v3494_v12  ;;  %v4333_v37 = vld [vmem:[#allocation40_spill] sm:$0xff] }
 0x434   : > { %2569 = vmatpush3.msra.mxu0 %v3494_v12 }
 0x435   : > { %2570 = vmatprep.subr.mxu0 %v3498_v13 }
 0x436   : > { %2571 = vmatpush3.msra.mxu0 %v3498_v13 }
 0x437   : > { %2572 = vmatprep.subr.mxu0 %v3502_v14 }
 0x438   : > { %2573 = vmatpush3.msra.mxu0 %v3502_v14  ;;  %v4319_v14 = vld [vmem:[#allocation26_spill] sm:$0xff] }
 0x439   : > { %2574 = vmatprep.subr.mxu0 %v3506_v15 }
 0x43a   : > { %2575 = vmatpush3.msra.mxu0 %v3506_v15  ;;  %v4320_v15 = vld [vmem:[#allocation27_spill] sm:$0xff] }
 0x43b   : > { %2576 = vmatprep.subr.mxu0 %v3510_v16 }
 0x43c   : > { %2577 = vmatpush3.msra.mxu0 %v3510_v16  ;;  %v4321_v16 = vld [vmem:[#allocation28_spill] sm:$0xff] }
 0x43d   : > { %2578 = vmatprep.subr.mxu0 %v3514_v17 }
 0x43e   : > { %2579 = vmatpush3.msra.mxu0 %v3514_v17  ;;  %v4322_v17 = vld [vmem:[#allocation29_spill] sm:$0xff] }
 0x43f   : > { %2580 = vmatprep.subr.mxu0 %v3518_v18 }
 0x440   : > { %2581 = vmatpush3.msra.mxu0 %v3518_v18  ;;  %v4323_v18 = vld [vmem:[#allocation30_spill] sm:$0xff] }
 0x441   : > { %2582 = vmatprep.subr.mxu0 %v3522_v19 }
 0x442   : > { %2583 = vmatpush3.msra.mxu0 %v3522_v19  ;;  %v4324_v19 = vld [vmem:[#allocation31_spill] sm:$0xff] }
 0x443   : > { %2584 = vmatprep.subr.mxu0 %v3526_v20 }
 0x444   : > { %2585 = vmatpush3.msra.mxu0 %v3526_v20  ;;  %v4325_v20 = vld [vmem:[#allocation32_spill] sm:$0xff] }
 0x445   : > { %2586 = vmatprep.subr.mxu0 %v3530_v21 }
 0x446   : > { %2587 = vmatpush3.msra.mxu0 %v3530_v21  ;;  %v4326_v21 = vld [vmem:[#allocation33_spill] sm:$0xff] }
 0x447   : > { %2588 = vmatprep.subr.mxu0 %v3534_v22 }
 0x448   : > { %2589 = vmatpush3.msra.mxu0 %v3534_v22  ;;  %v4327_v22 = vld [vmem:[#allocation34_spill] sm:$0xff] }
 0x449   : > { %2590 = vmatprep.subr.mxu0 %v3538_v23 }
 0x44a   : > { %2591 = vmatpush3.msra.mxu0 %v3538_v23  ;;  %v4328_v23 = vld [vmem:[#allocation35_spill] sm:$0xff] }
 0x44b   : > { %2592 = vmatprep.subr.mxu0 %v3542_v24 }
 0x44c   : > { %2593 = vmatpush3.msra.mxu0 %v3542_v24  ;;  %v4329_v24 = vld [vmem:[#allocation36_spill] sm:$0xff] }
 0x44d   : > { %2594 = vmatprep.subr.mxu0 %v3546_v25 }
 0x44e   : > { %2595 = vmatpush3.msra.mxu0 %v3546_v25  ;;  %v4330_v25 = vld [vmem:[#allocation37_spill] sm:$0xff] }
 0x44f   : > { %2596 = vmatprep.subr.mxu0 %v3658_v6 }
 0x450   : > { %2597 = vmatpush3.msra.mxu0 %v3658_v6  ;;  %v4334_v6 = vld [vmem:[#allocation41_spill] sm:$0xff] }
 0x451   : > { %2598 = vmatprep.subr.mxu0 %v3666_v8 }
 0x452   : > { %2599 = vmatpush3.msra.mxu0 %v3666_v8  ;;  %v4335_v8 = vld [vmem:[#allocation42_spill] sm:$0xff] }
 0x453   : > { %2603 = vmatprep.subr.mxu0 %v3806_v38 }
 0x4f3   : > { %v2567_v12 = vpop.f32.mrf.mxu0 }
 0x4f5   : > { %v1460_v13 = vpop.f32.mrf.mxu0 }
 0x4f6   : > { %1534 = vmatmul.mubr.f32.vlgmr.msra.gmra.mxu1 %v1460_v13  ;;  %2600 = vmatprep.mubr.f32.mxu0 %v1460_v13 }
 0x4f7   : > { %1622 = vmatpush1.msra.mxu1 %v3674_v27  ;;  %2601 = vmatmul.mubr.f32.vlgmr.msra.gmra.mxu0 %v2567_v12  ;;  %v4336_v27 = vld [vmem:[#allocation43_spill] sm:$0xff] }
 0x4f8   : > { %1623 = vmatprep.subr.mxu1 %v3676_v29  ;;  %1539 = vmatprep.mubr.f32.mxu1 %v4312_v30  ;;  %v4337_v29 = vld [vmem:[#allocation44_spill] sm:$0xff] }
 0x4f9   : > { %1624 = vmatpush1.msra.mxu1 %v4319_v14  ;;  %2604 = vmatpush3.msra.mxu0 %v3806_v38  ;;  %v4339_v38 = vld [vmem:[#allocation46_spill] sm:$0xff] }
 0x4fa   : > { %1625 = vmatprep.subr.mxu1 %v4320_v15  ;;  %1540 = vmatmul.mubr.f32.gmra.mxu1 %v2567_v12 }
 0x4fb   : > { %1626 = vmatpush1.msra.mxu1 %v4321_v16  ;;  %1685 = vmatprep.mubr.f32.mxu1 %v4312_v30 }
 0x4fc   : > { %1627 = vmatprep.subr.mxu1 %v3688_v34  ;;  %2605 = vmatprep.subr.mxu0 %v3810_v39  ;;  %v4338_v34 = vld [vmem:[#allocation45_spill] sm:$0xff] }
 0x4fd   : > { %1628 = vmatpush1.msra.mxu1 %v4322_v17  ;;  %2606 = vmatpush3.msra.mxu0 %v3810_v39  ;;  %v4340_v39 = vld [vmem:[#allocation47_spill] sm:$0xff] }
 0x4fe   : > { %1629 = vmatprep.subr.mxu1 %v4323_v18  ;;  %2607 = vmatprep.subr.mxu0 %v3814_v40 }
 0x4ff   : > { %1630 = vmatpush1.msra.mxu1 %v4324_v19  ;;  %2608 = vmatpush3.msra.mxu0 %v3814_v40  ;;  %v4341_v40 = vld [vmem:[#allocation48_spill] sm:$0xff] }
 0x500   : > { %1631 = vmatprep.subr.mxu1 %v4325_v20  ;;  %2609 = vmatprep.subr.mxu0 %v3818_v41 }
 0x501   : > { %1632 = vmatpush1.msra.mxu1 %v4326_v21  ;;  %2610 = vmatpush3.msra.mxu0 %v3818_v41  ;;  %v4342_v41 = vld [vmem:[#allocation52_spill] sm:$0xff] }
 0x502   : > { %1633 = vmatprep.subr.mxu1 %v4327_v22  ;;  %2611 = vmatprep.subr.mxu0 %v3822_v42 }
 0x503   : > { %1634 = vmatpush1.msra.mxu1 %v4328_v23  ;;  %2612 = vmatpush3.msra.mxu0 %v3822_v42  ;;  %v4343_v42 = vld [vmem:[#allocation49_spill] sm:$0xff] }
 0x504   : > { %1635 = vmatprep.subr.mxu1 %v4329_v24  ;;  %2613 = vmatprep.subr.mxu0 %v3826_v43  ;;  %v1843_v23 = vld [vmem:[#allocation11 + $0xc0] sm:$0xff]  ;;  %v1841_v24 = vld [vmem:[#allocation11 + $0xb0] sm:$0xff] }
 0x505   : > { %1636 = vmatpush1.msra.mxu1 %v4330_v25  ;;  %2614 = vmatpush3.msra.mxu0 %v3826_v43  ;;  %v4346_v43 = vld [vmem:[#allocation51_spill] sm:$0xff] }
 0x506   : > { %1637 = vmatprep.subr.mxu1 %v4331_v33  ;;  %2615 = vmatprep.subr.mxu0 %v3830_v44  ;;  %v1840_v25 = vld [vmem:[#allocation11 + $0xa8] sm:$0xff]  ;;  %v1839_v33 = vld [vmem:[#allocation11 + $0xa0] sm:$0xff] }
 0x507   : > { %1638 = vmatpush1.msra.mxu1 %v4332_v36  ;;  %2616 = vmatpush3.msra.mxu0 %v3830_v44  ;;  %v4347_v44 = vld [vmem:[#allocation54_spill] sm:$0xff]  ;;  %v1838_v36 = vld [vmem:[#allocation11 + $0x98] sm:$0xff] }
 0x508   : > { %1639 = vmatprep.subr.mxu1 %v4333_v37  ;;  %2617 = vmatprep.subr.mxu0 %v3834_v45  ;;  %v1837_v37 = vld [vmem:[#allocation11 + $0x90] sm:$0xff] }
 0x509   : > { %1640 = vmatpush1.msra.mxu1 %v4334_v6  ;;  %2618 = vmatpush3.msra.mxu0 %v3834_v45  ;;  %v4348_v45 = vld [vmem:[#allocation55_spill] sm:$0xff] }
 0x50a   : > { %1641 = vmatprep.subr.mxu1 %v4335_v8  ;;  %2619 = vmatprep.subr.mxu0 %v3838_v46  ;;  %v1836_v6 = vld [vmem:[#allocation11 + $0x88] sm:$0xff]  ;;  %v1835_v8 = vld [vmem:[#allocation11 + $0x80] sm:$0xff] }
 0x50b   : > { %1642 = vmatpush1.msra.mxu1 %v4336_v27  ;;  %2620 = vmatpush3.msra.mxu0 %v3838_v46  ;;  %v1850_v46 = vld [vmem:[#allocation11 + $0xf8] sm:$0xff] }
 0x50c   : > { %1643 = vmatprep.subr.mxu1 %v4337_v29  ;;  %2621 = vmatprep.subr.mxu0 %v3841_v47  ;;  %v1834_v27 = vld [vmem:[#allocation11 + $0x78] sm:$0xff]  ;;  %v1833_v29 = vld [vmem:[#allocation11 + $0x70] sm:$0xff] }
 0x50d   : > { %1644 = vmatpush1.msra.mxu1 %v4338_v34  ;;  %2622 = vmatpush3.msra.mxu0 %v3841_v47  ;;  %v1849_v47 = vld [vmem:[#allocation11 + $0xf0] sm:$0xff]  ;;  %v1832_v34 = vld [vmem:[#allocation11 + $0x68] sm:$0xff] }
 0x50e   : > { %1645 = vmatprep.subr.mxu1 %v3743_v28  ;;  %2623 = vmatprep.subr.mxu0 %v3844_v48  ;;  %v4344_v28 = vld [vmem:[#allocation50_spill] sm:$0xff] }
 0x50f   : > { %1646 = vmatpush1.msra.mxu1 %v3746_v0  ;;  %2624 = vmatpush3.msra.mxu0 %v3844_v48  ;;  %v4345_v0 = vld [vmem:[#allocation53_spill] sm:$0xff]  ;;  %v1848_v48 = vld [vmem:[#allocation11 + $0xe8] sm:$0xff] }
 0x510   : > { %1647 = vmatprep.subr.mxu1 %v4339_v38  ;;  %2625 = vmatprep.subr.mxu0 %v3848_v49  ;;  %v1831_v38 = vld [vmem:[#allocation11 + $0x60] sm:$0xff] }
 0x511   : > { %1648 = vmatpush1.msra.mxu1 %v4340_v39  ;;  %2626 = vmatpush3.msra.mxu0 %v3848_v49  ;;  %v1847_v49 = vld [vmem:[#allocation11 + $0xe0] sm:$0xff]  ;;  %v1830_v39 = vld [vmem:[#allocation11 + $0x58] sm:$0xff] }
 0x512   : > { %1649 = vmatprep.subr.mxu1 %v4341_v40  ;;  %2627 = vmatprep.subr.mxu0 %v4342_v41  ;;  %v1829_v40 = vld [vmem:[#allocation11 + $0x50] sm:$0xff] }
 0x513   : > { %1650 = vmatpush1.msra.mxu1 %v4343_v42  ;;  %2628 = vmatpush3.msra.mxu0 %v4342_v41  ;;  %v1828_v41 = vld [vmem:[#allocation11 + $0x48] sm:$0xff]  ;;  %v1827_v42 = vld [vmem:[#allocation11 + $0x40] sm:$0xff] }
 0x514   : > { %1651 = vmatprep.subr.mxu1 %v4344_v28  ;;  %2629 = vmatprep.subr.mxu0 %v4345_v0  ;;  %v1826_v28 = vld [vmem:[#allocation11 + $0x38] sm:$0xff] }
 0x515   : > { %1652 = vmatpush1.msra.mxu1 %v4346_v43  ;;  %2630 = vmatpush3.msra.mxu0 %v4345_v0  ;;  %v1825_v0 = vld [vmem:[#allocation11 + $0x30] sm:$0xff]  ;;  %v1824_v43 = vld [vmem:[#allocation11 + $0x28] sm:$0xff] }
 0x516   : > { %1686 = vmatmul.mubr.f32.vlgmr.msra.gmra.mxu1 %v3920_v54  ;;  %2631 = vmatprep.subr.mxu0 %v4347_v44 }
 0x517   : > { %1691 = vmatprep.mubr.f32.mxu1 %v4312_v30  ;;  %2632 = vmatpush3.msra.mxu0 %v4347_v44  ;;  %v1823_v44 = vld [vmem:[#allocation11 + $0x20] sm:$0xff] }
 0x518   : > { %2633 = vmatprep.subr.mxu0 %v4348_v45  ;;  %1863 = vmatprep.subr.mxu1 %v1850_v46  ;;  %v1821_v46 = vld [vmem:[#allocation11 + $0x10] sm:$0xff] }
 0x519   : > { %2634 = vmatpush3.msra.mxu0 %v4348_v45  ;;  %1864 = vmatpush1.msra.mxu1 %v1849_v47  ;;  %v1822_v45 = vld [vmem:[#allocation11 + $0x18] sm:$0xff]  ;;  %v1820_v47 = vld [vmem:[#allocation11 + $0x8] sm:$0xff] }
 0x51a   : > { %1692 = vmatmul.mubr.f32.gmra.mxu1 %v3916_v61  ;;  %2638 = vmatprep.subr.mxu0 %v4312_v30 }
 0x51b   : > { %1927 = vmatprep.mubr.f32.mxu1 %v4312_v30  ;;  %1865 = vmatprep.subr.mxu1 %v1848_v48  ;;  %v1819_v48 = vld [vmem:[#allocation11] sm:$0xff] }
 0x51c   : > { %1866 = vmatpush1.msra.mxu1 %v1847_v49 }
 0x51d   : > { %1867 = vmatprep.subr.mxu1 %v1846_v5 }
 0x51e   : > { %1868 = vmatpush1.msra.mxu1 %v1845_v56 }
 0x51f   : > { %1869 = vmatprep.subr.mxu1 %v1844_v26 }
 0x520   : > { %1870 = vmatpush1.msra.mxu1 %v1843_v23 }
 0x5b6   : > { %v1535_v52 = vpop.f32.mrf.mxu1 }
 0x5b7   : > { %v1536_v55 = vadd.f32 %v1535_v52, %v3881_v63  ;;  %v2602_v52 = vpop.f32.mrf.mxu0 }
 0x5b8   : > { %v1537_v57 = vpop.f32.mrf.mxu1 }
 0x5b9   : > { %v1538_v59 = vadd.f32 %v1537_v57, %v3887_v3 }
 0x5ba   : > { %v1541_v7 = vpop.f32.mrf.mxu1 }
 0x5bb   : > { %v1542_v31 = vadd.f32 %v1541_v7, %v3881_v63 }
 0x5bc   : > { %v1543_v58 = vpop.f32.mrf.mxu1 }
 0x5bd   : > { %v1544_v12 = vadd.f32 %v1543_v58, %v3887_v3  ;;  %v1612_v58 = vpop.f32.mrf.mxu0 }
 0x5d6   : > { %v1687_v9 = vpop.f32.mrf.mxu1 }
 0x5d7   : > { %v1688_v35 = vadd.f32 %v1687_v9, %v3884_v1  ;;  %v1618_v9 = vadd.f32 %v2602_v52, %v3904_v2  ;;  %v4351_v52 = vld [vmem:[#allocation56_spill] sm:$0xff] }
 0x5d8   : > { %v1689_v53 = vpop.f32.mrf.mxu1 }
 0x5d9   : > { %v4032_v10 = vadd.f32 %v1688_v35, %v1536_v55  ;;  %v1690_v32 = vadd.f32 %v1689_v53, %v3890_v4  ;;  %v1613_v35 = vadd.f32 %v1612_v58, %v3904_v2 }
 0x5da   : > { %v1693_v50 = vpop.f32.mrf.mxu1 }
 0x5db   : > { %v1699_v51 = vadd.f32 %v1690_v32, %v1538_v59  ;;  %v1694_v62 = vadd.f32 %v1693_v50, %v3884_v1  ;;  %v2354_v5 = vmul.f32 -1.442695, %v4032_v10 }
 0x5dc   : > { %v1695_v60 = vpop.f32.mrf.mxu1 }
 0x5dd   : > { %v2355_v13 = vmul.f32 -1.442695, %v1699_v51  ;;  %v4038_v14 = vadd.f32 %v1694_v62, %v1542_v31  ;;  %v1696_v15 = vadd.f32 %v1695_v60, %v3890_v4  ;;  %v1842_v4 = vld [vmem:[#allocation11 + $0xb8] sm:$0xff] }
 0x5de   : > { %1871 = vmatprep.subr.mxu1 %v1842_v4 }
 0x5df   : > { %2822 = vpow2.f32 %v2355_v13  ;;  %v1701_v16 = vadd.f32 %v1696_v15, %v1544_v12  ;;  %1872 = vmatpush1.msra.mxu1 %v1841_v24  ;;  %v2356_v49 = vmul.f32 -1.442695, %v4038_v14 }
 0x5e0   : > { %1873 = vmatprep.subr.mxu1 %v1840_v25 }
 0x5e1   : > { %v2357_v17 = vmul.f32 -1.442695, %v1701_v16  ;;  %1874 = vmatpush1.msra.mxu1 %v1839_v33 }
 0x5e2   : > { %1875 = vmatprep.subr.mxu1 %v1838_v36 }
 0x5e3   : > { %2824 = vpow2.f32 %v2357_v17  ;;  %1876 = vmatpush1.msra.mxu1 %v1837_v37 }
 0x5e4   : > { %1877 = vmatprep.subr.mxu1 %v1836_v6 }
 0x5e5   : > { %1878 = vmatpush1.msra.mxu1 %v1835_v8 }
 0x5e6   : > { %1879 = vmatprep.subr.mxu1 %v1834_v27  ;;  %v2019_v27 = vld [vmem:[#allocation13 + $0x60] sm:$0xff] }
 0x5e7   : > { %1880 = vmatpush1.msra.mxu1 %v1833_v29  ;;  %v2854_v29 = vld [vmem:[%s3478_s23] sm:$0xff] }
 0x5e8   : > { %1881 = vmatprep.subr.mxu1 %v1832_v34 }
 0x5e9   : > { %1882 = vmatpush1.msra.mxu1 %v1831_v38  ;;  %v2018_v38 = vld [vmem:[#allocation13 + $0x58] sm:$0xff] }
 0x5ea   : > { %1883 = vmatprep.subr.mxu1 %v1830_v39 }
 0x5eb   : > { %1884 = vmatpush1.msra.mxu1 %v1829_v40  ;;  %v2017_v40 = vld [vmem:[#allocation13 + $0x50] sm:$0xff] }
 0x5ec   : > { %v2823_v18 = vpop.eup %2822  ;;  %1885 = vmatprep.subr.mxu1 %v1828_v41  ;;  %v2855_v41 = vld [vmem:[%s3478_s23 + $0x8] sm:$0xff]  ;;  %s2369_s23 = sshll.u32 %s3279_s0, 8 }
 0x5ed   : > { %v1715_v19 = vadd.f32 1.0, %v2823_v18  ;;  %1886 = vmatpush1.msra.mxu1 %v1827_v42  ;;  %vm1969_vm3 = vcmp.gt.f32.partialorder %v2855_v41, 0.0  ;;  %s4100_s6 = scalar_lea.hbm %s4352_s20, %s2369_s23 }
 0x5ee   : > { %1887 = vmatprep.subr.mxu1 %v1826_v28  ;;  %v2016_v28 = vld [vmem:[#allocation13 + $0x48] sm:$0xff] }
 0x5ef   : > { %2826 = vrcp.f32 %v1715_v19  ;;  %1888 = vmatpush1.msra.mxu1 %v1825_v0  ;;  %v2021_v19 = vld [vmem:[#allocation13 + $0x70] sm:$0xff]  ;;  %v4350_v0 = vmov 0  }
 0x5f0   : > { %v2825_v20 = vpop.eup %2824  ;;  %1889 = vmatprep.subr.mxu1 %v1824_v43  ;;  %v1971_v43 = vsel %vm1969_vm3, 1, %v4350_v0 }
 0x5f1   : > { %v1717_v63 = vadd.f32 1.0, %v2825_v20  ;;  %1890 = vmatpush1.msra.mxu1 %v1823_v44  ;;  %v4349_v20 = vld [vmem:[#allocation57_spill] sm:$0xff] }
 0x5f2   : > { %1891 = vmatprep.subr.mxu1 %v1822_v45  ;;  %v2015_v44 = vld [vmem:[#allocation13 + $0x40] sm:$0xff]  ;;  %v2014_v45 = vld [vmem:[#allocation13 + $0x38] sm:$0xff] }
 0x5f3   : > { %2828 = vrcp.f32 %v1717_v63  ;;  %1892 = vmatpush1.msra.mxu1 %v1821_v46  ;;  %v2013_v46 = vld [vmem:[#allocation13 + $0x30] sm:$0xff] }
 0x5f4   : > { %1893 = vmatprep.subr.mxu1 %v1820_v47  ;;  %2830 = vpow2.f32 %v2356_v49  ;;  %v2012_v47 = vld [vmem:[#allocation13 + $0x28] sm:$0xff]  ;;  %v2010_v49 = vld [vmem:[#allocation13 + $0x18] sm:$0xff] }
 0x5f5   : > { %1894 = vmatpush1.msra.mxu1 %v1819_v48  ;;  %2832 = vpow2.f32 %v2354_v5  ;;  %v2011_v48 = vld [vmem:[#allocation13 + $0x20] sm:$0xff]  ;;  %v2009_v5 = vld [vmem:[#allocation13 + $0x10] sm:$0xff] }
 0x5fc   : > { %v2827_v21 = vpop.eup %2826 }
 0x5fd   : > { %v1726_v1 = vmul.f32 %v2827_v21, %v3920_v54 }
 0x5ff   : > { %2635 = vmatprep.mubr.f32.mxu0 %v1726_v1 }
 0x600   : > { %v2829_v3 = vpop.eup %2828 }
 0x601   : > { %v1727_v22 = vmul.f32 %v2829_v3, %v3916_v61  ;;  %v2831_v56 = vpop.eup %2830 }
 0x602   : > { %v2833_v26 = vpop.eup %2832  ;;  %v1716_v57 = vadd.f32 1.0, %v2831_v56  ;;  %v2008_v56 = vld [vmem:[#allocation13 + $0x8] sm:$0xff] }
 0x603   : > { %2636 = vmatmul.mubr.f32.vlgmr.msra.gmra.mxu0 %v1727_v22  ;;  %v1714_v7 = vadd.f32 1.0, %v2833_v26  ;;  %v2007_v26 = vld [vmem:[#allocation13] sm:$0xff] }
 0x604   : > { %2834 = vrcp.f32 %v1716_v57  ;;  %2670 = vmatprep.mubr.msk.f32.mxu0 %vm3163_vm4, %v4312_v30 }
 0x605   : > { %2836 = vrcp.f32 %v1714_v7 }
 0x611   : > { %v2835_v31 = vpop.eup %2834 }
 0x612   : > { %v2837_v51 = vpop.eup %2836  ;;  %v1812_v62 = vsub.f32 1.0, %v2835_v31 }
 0x613   : > { %v1811_v60 = vsub.f32 1.0, %v2837_v51 }
 0x614   : > { %v1814_v14 = vmul.f32 %v1812_v62, %v3916_v61  ;;  %v2020_v61 = vld [vmem:[#allocation13 + $0x68] sm:$0xff] }
 0x615   : > { %v1813_v16 = vmul.f32 %v1811_v60, %v3920_v54  ;;  %v4064_v54 = vld [vmem:[%s4183_s13] sm:$0x3] }
 0x616   : > { %v1860_v63 = vrot.slane %v4064_v54, %v4349_v20  ;;  %v1856_v57 = vrot.slane %v4064_v54, %v4351_v52 }
 0x6c3   : > { %v2637_v55 = vpop.f32.mrf.mxu0 }
 0x6c4   : > { %v1804_v53 = vadd.f32 %v2637_v55, %v1618_v9 }
 0x6c5   : > { %v1794_v59 = vpop.f32.mrf.mxu0 }
 0x6c6   : > { %v1806_v32 = vadd.f32 %v3910_v11, %v1804_v53  ;;  %v1803_v10 = vadd.f32 %v1794_v59, %v1613_v35 }
 0x6c8   : > { %2838 = vtanh.f32 %v1806_v32  ;;  %v1805_v50 = vadd.f32 %v3910_v11, %v1803_v10  ;;  %v2022_v11 = vld [vmem:[#allocation13 + $0x78] sm:$0xff] }
 0x6c9   : > { %2639 = vmatpush3.msra.mxu0 %v2022_v11 }
 0x6ca   : > { %2840 = vtanh.f32 %v1805_v50  ;;  %2640 = vmatprep.subr.mxu0 %v4312_v30  ;;  %v1974_v50 = vpop.permute.xlu0 %1973 }
 0x6cb   : > { %2641 = vmatpush3.msra.mxu0 %v2021_v19  ;;  %vm1978_vm5 = vcmp.eq.s32.totalorder %v1974_v50, 1 }
 0x6cc   : > { %2642 = vmatprep.subr.mxu0 %v4312_v30 }
 0x6cd   : > { %2643 = vmatpush3.msra.mxu0 %v2020_v61 }
 0x6ce   : > { %2644 = vmatprep.subr.mxu0 %v4312_v30 }
 0x6cf   : > { %2645 = vmatpush3.msra.mxu0 %v2019_v27 }
 0x6d0   : > { %2646 = vmatprep.subr.mxu0 %v4312_v30 }
 0x6d1   : > { %2647 = vmatpush3.msra.mxu0 %v2018_v38 }
 0x6d2   : > { %2648 = vmatprep.subr.mxu0 %v4312_v30 }
 0x6d3   : > { %2649 = vmatpush3.msra.mxu0 %v2017_v40 }
 0x6d4   : > { %2650 = vmatprep.subr.mxu0 %v4312_v30 }
 0x6d5   : > { %v2839_v12 = vpop.eup %2838  ;;  %2651 = vmatpush3.msra.mxu0 %v2016_v28 }
 0x6d6   : > { %v1810_v13 = vmul.f32 %v2839_v12, %v2835_v31  ;;  %2652 = vmatprep.subr.mxu0 %v4312_v30 }
 0x6d7   : > { %v2841_v2 = vpop.eup %2840  ;;  %2653 = vmatpush3.msra.mxu0 %v2015_v44 }
 0x6d8   : > { %v1809_v15 = vmul.f32 %v2841_v2, %v2837_v51  ;;  %v1816_v17 = vadd.f32 %v1814_v14, %v1810_v13  ;;  %2654 = vmatprep.subr.mxu0 %v4312_v30 }
 0x6d9   : > { %2655 = vmatpush3.msra.mxu0 %v2014_v45 }
 0x6da   : > { %v1815_v18 = vadd.f32 %v1813_v16, %v1809_v15  ;;  %1818 = vst [vmem:[%s4053_s15 + $0x8] sm:$0xff] %v1816_v17  ;;  %2656 = vmatprep.subr.mxu0 %v4312_v30 }
 0x6db   : > { %2657 = vmatpush3.msra.mxu0 %v2013_v46 }
 0x6dc   : > { %1928 = vmatmul.mubr.f32.vlgmr.msra.gmra.mxu1 %v1815_v18  ;;  %1817 = vst [vmem:[%s4053_s15] sm:$0xff] %v1815_v18  ;;  %2658 = vmatprep.subr.mxu0 %v4312_v30  ;;  %v1992_v18 = vpop.permute.xlu0 %1991 }
 0x6dd   : > { %1933 = vmatprep.mubr.f32.mxu1 %v4312_v30  ;;  %2659 = vmatpush3.msra.mxu0 %v2012_v47  ;;  %v1997_v61 = vrot.slane %v1992_v18, %v4351_v52 }
 0x6de   : > { %2660 = vmatprep.subr.mxu0 %v4312_v30 }
 0x6df   : > { %2661 = vmatpush3.msra.mxu0 %v2011_v48 }
 0x6e0   : > { %1934 = vmatmul.mubr.f32.gmra.mxu1 %v1816_v17  ;;  %2662 = vmatprep.subr.mxu0 %v4312_v30 }
 0x6e1   : > { %2663 = vmatpush3.msra.mxu0 %v2010_v49 }
 0x6e2   : > { %2664 = vmatprep.subr.mxu0 %v4312_v30 }
 0x6e3   : > { %2665 = vmatpush3.msra.mxu0 %v2009_v5 }
 0x6e4   : > { %2666 = vmatprep.subr.mxu0 %v4312_v30 }
 0x6e5   : > { %2667 = vmatpush3.msra.mxu0 %v2008_v56 }
 0x6e6   : > { %2668 = vmatprep.subr.mxu0 %v4312_v30 }
 0x6e7   : > { %2669 = vmatpush3.msra.mxu0 %v2007_v26 }
 0x79c   : > { %v4068_v21 = vpop.f32.mrf.mxu1 }
 0x79d   : > { %v1930_v7 = vadd.f32 %v4068_v21, %v1856_v57 }
 0x79e   : > { %v1931_v1 = vpop.f32.mrf.mxu1 }
 0x79f   : > { %v1932_v3 = vadd.f32 %v1931_v1, %v1860_v63 }
 0x7a0   : > { %v4070_v22 = vpop.f32.mrf.mxu1 }
 0x7a1   : > { %v2358_v23 = vmul.f32 -1.442695, %v1932_v3  ;;  %v1936_v58 = vadd.f32 %v4070_v22, %v1856_v57 }
 0x7a2   : > { %v1937_v4 = vpop.f32.mrf.mxu1 }
 0x7a3   : > { %2842 = vpow2.f32 %v2358_v23  ;;  %v1938_v24 = vadd.f32 %v1937_v4, %v1860_v63 }
 0x7a5   : > { %v2359_v25 = vmul.f32 -1.442695, %v1938_v24 }
 0x7a7   : > { %2844 = vpow2.f32 %v2359_v25 }
 0x7b0   : > { %v2843_v33 = vpop.eup %2842 }
 0x7b1   : > { %v1948_v36 = vadd.f32 1.0, %v2843_v33 }
 0x7b3   : > { %2846 = vrcp.f32 %v1948_v36 }
 0x7b4   : > { %v2845_v37 = vpop.eup %2844 }
 0x7b5   : > { %v1949_v6 = vadd.f32 1.0, %v2845_v37 }
 0x7b7   : > { %2848 = vrcp.f32 %v1949_v6 }
 0x7b8   : > { %2850 = vtanh.f32 %v1930_v7 }
 0x7b9   : > { %2852 = vtanh.f32 %v1936_v58 }
 0x7c0   : > { %v2847_v8 = vpop.eup %2846 }
 0x7c1   : > { %v1954_v34 = vmul.f32 %v2854_v29, %v2847_v8 }
 0x7c3   : > { %1958 = vperm.xlu1 %2797, %v1954_v34  }
 0x7c4   : > { %v2849_v39 = vpop.eup %2848 }
 0x7c5   : > { %v1955_v42 = vmul.f32 %v2855_v41, %v2849_v39  ;;  %v2851_v55 = vpop.eup %2850 }
 0x7c6   : > { %v2853_v35 = vpop.eup %2852 }
 0x7c7   : > { %1963 = vperm.xlu1 %2797, %v1955_v42  }
 0x7cb   : > { %1976 = vperm.xlu1 %2797, %v1971_v43  }
 0x83e   : > { %v1959_v9 = vpop.permute.xlu1 %1958 }
 0x83f   : > { %v1966_v59 = vmul.f32 %v2851_v55, %v1959_v9 }
 0x841   : > { %v1980_v51 = vsel %vm1978_vm5, %v1966_v59, -1e+09 }
 0x842   : > { %v1964_v53 = vpop.permute.xlu1 %1963 }
 0x843   : > { %v1967_v32 = vmul.f32 %v2853_v35, %v1964_v53 }
 0x845   : > { %v1982_v10 = vadd.f32 %v1967_v32, %v1966_v59 }
 0x846   : > { %v1977_v31 = vpop.permute.xlu1 %1976 }
 0x847   : > { %v1983_v30 = vrot.slane %v1982_v10, 4  ;;  %vm1979_vm6 = vcmp.eq.s32.totalorder %v1977_v31, 1 }
 0x848   : > { %v1981_v62 = vsel %vm1979_vm6, %v1967_v32, -1e+09 }
 0x849   : > { %v1984_v60 = vadd.f32 %v1983_v30, %v1982_v10  ;;  %v1999_v12 = vmax.f32 %v1980_v51, %v1981_v62 }
 0x84b   : > { %v1985_v13 = vrot.slane %v1984_v60, 2  ;;  %v2000_v14 = vrot.slane %v1999_v12, 4 }
 0x84d   : > { %v1986_v2 = vadd.f32 %v1985_v13, %v1984_v60  ;;  %v2001_v15 = vmax.f32 %v1999_v12, %v2000_v14 }
 0x84f   : > { %v1987_v16 = vrot.slane %v1986_v2, 1  ;;  %v2002_v17 = vrot.slane %v2001_v15, 2 }
 0x851   : > { %v1988_v11 = vadd.f32 %v1987_v16, %v1986_v2  ;;  %v2003_v19 = vmax.f32 %v2001_v15, %v2002_v17 }
 0x853   : > { %v2004_v54 = vrot.slane %v2003_v19, 1  ;;  %v1998_v63 = vmul.f32 %v1997_v61, %v1988_v11 }
 0x855   : > { %v2005_v20 = vmax.f32 %v2003_v19, %v2004_v54 }
 0x857   : > { %v2006_v21 = vadd.f32 %v2005_v20, %v1998_v63 }
 0x859   : > { %2671 = vmatmul.mubr.f32.vlgmr.msra.gmra.mxu0 %v2006_v21 }
 0x85a   : > { %3053 = shalt.err (!%p3050_p6)
}
 0x85b   : > { %s3054_s29 = scalar_lea.hbm %s4100_s6, 256  ;;  %s3058_s22 = scalar_lea.hbm %s4352_s20, 512 }
 0x85c   : > { %p3055_p4 = scmp.ne.s32.totalorder %s4100_s6, %s3054_s29  ;;  %p3059_p11 = scmp.lt.s32.totalorder %s4100_s6, %s4352_s20 }
 0x85d   : > { %p3060_p13 = scmp.lt.s32.totalorder %s3058_s22, %s3054_s29 }
 0x85e   : > { %p3056_p10 = pnand %p3055_p4, %p4353_p2 }
 0x85f   : > { %p3061_p0 = por %p3060_p13, %p3059_p11 }
 0x860   : > { %p3057_p9 = pneg %p3056_p10 }
 0x862   : > { %p3062_p5 = pnand %p3061_p0, %p3057_p9 }
 0x864   : > { %3065 = shalt.err (!%p3062_p5)
}
 0x865   : > { %s3165_s1 = smov 128   ;;  %s3166_s19 = smov 8  }
 0x866   : > { %2700 = dma.vmem_to_hbm [thread:$0]  (%p4353_p2), %s4094_s17, 256, %s4100_s6, %s2100_s21, %s3165_s1, %s3165_s1, %s3166_s19  }
 0x867   : > { %s4354_s12 = sld [smem:[#allocation68_spill]]  ;;  %s2361_s30 = sshll.u32 %s3279_s0, 4 }
 0x868   : > { %s697_s29 = scalar_lea.vmem [#allocation14], %s3441_s26  ;;  %s4355_s16 = sld [smem:[#allocation69_spill]] }
 0x869   : > { %s2113_s18 = sshll.u32 %s697_s29, 4  ;;  %s2096_s2 = scalar_lea.sflag [#allocation4], %s3441_s26  ;;  %s2114_s18 = int_to_ptr.vmem [resolvable:$true] %s2113_s18 }
 0x86a   : > { %s3066_s3 = scalar_lea.vmem %s2114_s18, 16  ;;  %s3167_s17 = smov [#allocation14]  }
 0x86b   : > { %p3067_p8 = scmp.ne.s32.totalorder %s2114_s18, %s3066_s3  ;;  %s3070_s0 = sshll.u32 %s3167_s17, 4  ;;  %s3071_s0 = int_to_ptr.vmem [resolvable:$false] %s3070_s0 }
 0x86c   : > { %s3072_s6 = scalar_lea.vmem %s3071_s0, 32  ;;  %p3073_p1 = scmp.lt.s32.totalorder %s2114_s18, %s3071_s0 }
 0x86d   : > { %v2023_v1 = vld [vmem:[%s4354_s12] sm:$0x1]  ;;  %p3068_p7 = pnand %p3067_p8, %p4353_p2  ;;  %p3074_p3 = scmp.lt.s32.totalorder %s3072_s6, %s3066_s3 }
 0x86e   : > { %s4133_s23 = scalar_lea.hbm %s4355_s16, %s2361_s30 }
 0x86f   : > { %p3069_p12 = pneg %p3068_p7  ;;  %p3075_p6 = por %p3074_p3, %p3073_p1 }
 0x871   : > { %p3076_p4 = pnand %p3075_p6, %p3069_p12 }
 0x919   : > { %v2090_v3 = vpop.f32.mrf.mxu0 }
 0x91a   : > { %v2091_v22 = vadd.f32 %v2090_v3, %v2023_v1 }
 0x91b   : > { %v2672_v23 = vpop.f32.mrf.mxu0 }
 0x91c   : > { %2094 = vst [vmem:[%s697_s29] sm:$0x1] %v2091_v22 }
 0x91d   : > { %3079 = shalt.err (!%p3076_p4)
}
 0x91e   : > { %s3080_s21 = scalar_lea.hbm %s4133_s23, 16  ;;  %s3084_s19 = scalar_lea.hbm %s4355_s16, 32 }
 0x91f   : > { %p3081_p10 = scmp.ne.s32.totalorder %s4133_s23, %s3080_s21  ;;  %p3085_p13 = scmp.lt.s32.totalorder %s4133_s23, %s4355_s16 }
 0x920   : > { %p3086_p0 = scmp.lt.s32.totalorder %s3084_s19, %s3080_s21 }
 0x921   : > { %p3082_p9 = pnand %p3081_p10, %p4353_p2 }
 0x922   : > { %p3087_p5 = por %p3086_p0, %p3085_p13 }
 0x923   : > { %p3083_p11 = pneg %p3082_p9 }
 0x925   : > { %p3088_p8 = pnand %p3087_p5, %p3083_p11 }
 0x927   : > { %3091 = shalt.err (!%p3088_p8)
}
 0x928   : > { %2699 = dma.vmem_to_hbm [thread:$0]  (%p4353_p2), %s2114_s18, 16, %s4133_s23, %s2096_s2  }
 0x929 PF: > { %s2141_s3 = sand.u32 1, %s3134_s24   ;;  %p4356_p7 = scmp.ne.s32.totalorder %s4272_s4, 0 }
 0x92a   : > { %p4357_p12 = scmp.ge.s32.totalorder %s3146_s27, 2  ;;  %s2142_s12 = scalar_lea.sflag [#allocation4], %s2141_s3 }
 0x92c   : > { %p2727_p1 = pnand %p4357_p12, %p4356_p7 }
 0x92e   : > { %p2728_p3 = pneg %p2727_p1 }
 0x930   : > { %3125 = dma.done.wait (%p2728_p3), %s2142_s12, 16  }
 0x931   : > { %3127 = vsyncadd (%p2728_p3), %s2142_s12, 4294967280  ;;  %s2150_s30 = scalar_lea.sflag [#allocation16], %s2141_s3 }
 0x932   : > { %3129 = dma.done.wait (%p2728_p3), %s2150_s30, 256  }
 0x933   : > { %3131 = vsyncadd (%p2728_p3), %s2150_s30, 4294967040  ;;  %s4358_s27 = sld [smem:[#allocation24_spill]]  ;;  %s4361_s24 = smov %s3138_s25 }
 0x934   : > { %s4359_s28 = sld [smem:[#allocation23_spill]] }
 0x935   : > { %s4360_s26 = sld [smem:[#allocation25_spill]] }
 0x939   : > { %p37_p2 = scmp.ge.s32.totalorder %s4358_s27, 4  }
 0x93a   : > { %s4362_s25 = smov %s4359_s28 }
 0x93b   :  { %39 = sbr.rel (!%p37_p2) target bundleno = 24 (0x18), region = 179 }
 0x940   :  { %2155 = vsyncpa [#allocation3], 1 }
 0x941   :  { %2157 = vsyncpa [#allocation3 + $0x1], 1 }
 0x942   :  { %2158 = vsyncpa [#allocation6], 1 }
 0x943   :  { %2159 = vsyncpa [#allocation9], 1 }
 0x944   :  { %2160 = vsyncpa [#allocation12], 1 }
 0x945   :  { %2161 = vsyncpa [#allocation4], 1 }
 0x946   :  { %2163 = vsyncpa [#allocation4 + $0x1], 1 }
 0x947   :  { %2164 = vsyncpa [#allocation16], 1 }
 0x948   :  { %2166 = vsyncpa [#allocation16 + $0x1], 1 }

</bundles_post_ra>
